<compile_context>
chip_gen: v7x
topology: tpu7x:2x2x1
jax: 0.10.0
libtpu: 0.0.40
codegen_flags: <defaults>
</compile_context>

<pallas_src>
import jax
import jax.numpy as jnp
from jax.experimental import pallas as pl
from jax.experimental.pallas import tpu as pltpu


# -----------------------------------------------------------------------------
# Kernel
# -----------------------------------------------------------------------------
def mlp_kernel(x_ref,
               w1_ref, b1_ref,
               w2_ref, b2_ref,
               w3_ref, b3_ref,
               w4_ref, b4_ref,
               w5_ref, b5_ref,
               o_ref):
    """Whole 5-layer MLP on one batch tile; all weights resident in VMEM."""

    def layer(h, w_ref, b_ref, relu):
        # bf16 x bf16 MXU matmul with f32 accumulation; bias/ReLU in f32 (VPU).
        y = jnp.dot(h.astype(w_ref.dtype), w_ref[...],
                    preferred_element_type=jnp.float32) + b_ref[...]
        return jnp.maximum(y, 0.0) if relu else y

    h = x_ref[...]                       # f32 activations
    h = layer(h, w1_ref, b1_ref, True)
    h = layer(h, w2_ref, b2_ref, True)
    h = layer(h, w3_ref, b3_ref, True)
    h = layer(h, w4_ref, b4_ref, True)
    o_ref[...] = layer(h, w5_ref, b5_ref, False).astype(o_ref.dtype)


# -----------------------------------------------------------------------------
# Wrapper
# -----------------------------------------------------------------------------
def _round_up(x, m):
    return ((x + m - 1) // m) * m


def mlp_forward(x, params, out_dim, *, batch_tile=256):
    """params: list of (W[in, out] bf16, b[1, out] f32), tail layers lane-padded.

    Returns [batch, out_dim] f32.
    """
    B, D_in = x.shape
    padded_out = params[-1][0].shape[1]          # lane-padded (multiple of 128)

    # Batch tiling: tile rows must be a multiple of 8 (sublane); pad batch so
    # it divides evenly into tiles.
    TB = min(batch_tile, _round_up(B, 8))
    Bp = _round_up(B, TB)
    if Bp != B:
        x = jnp.pad(x, ((0, Bp - B), (0, 0)))
    nb = Bp // TB

    flat_inputs = [x]
    # x/out stream per batch tile; weights use a constant index_map so the
    # pipeline keeps them resident (one DMA per call, amortized over nb tiles).
    in_specs = [pl.BlockSpec((TB, D_in), lambda i: (i, 0))]
    weight_bytes = 0
    flops = 0
    for (w, b) in params:
        flat_inputs += [w, b]
        in_specs += [pl.BlockSpec(w.shape, lambda i: (0, 0)),
                     pl.BlockSpec(b.shape, lambda i: (0, 0))]
        weight_bytes += int(w.size) * w.dtype.itemsize
        weight_bytes += int(b.size) * b.dtype.itemsize
        flops += 2 * Bp * int(w.shape[0]) * int(w.shape[1])

    cost = pl.CostEstimate(
        flops=flops,
        transcendentals=0,
        bytes_accessed=int(x.size) * x.dtype.itemsize
        + Bp * padded_out * 4
        + weight_bytes,
    )

    out = pl.pallas_call(
        mlp_kernel,
        out_shape=jax.ShapeDtypeStruct((Bp, padded_out), jnp.float32),
        grid=(nb,),
        in_specs=in_specs,
        out_specs=pl.BlockSpec((TB, padded_out), lambda i: (i, 0)),
        compiler_params=pltpu.CompilerParams(
            dimension_semantics=("parallel",)),
        cost_estimate=cost,
    )(*flat_inputs)

    # Un-pad batch rows and lane-padded output columns outside the kernel.
    return out[:B, :out_dim]


# -----------------------------------------------------------------------------
# Parameter setup (synthetic, deterministic; PyTorch-Linear-like scale)
# -----------------------------------------------------------------------------
def init_params(key, dims):
    params = []
    for i in range(len(dims) - 1):
        fan_in, fan_out = dims[i], dims[i + 1]
        key, kw, kb = jax.random.split(key, 3)
        bound = 1.0 / jnp.sqrt(fan_in)
        w = jax.random.uniform(kw, (fan_in, fan_out), jnp.float32, -bound, bound)
        b = jax.random.uniform(kb, (1, fan_out), jnp.float32, -bound, bound)
        params.append((w, b))
    return params


def prepare_params(raw_params, lane=128):
    """Cast weights to bf16 and zero-pad narrow tail dims.

    Any layer whose output dim is < 128 (here layer 4: 40) and the final layer
    (20) get their output columns zero-padded to a multiple of 128; the next
    layer's input rows are zero-padded to match. Zero bias pads + ReLU keep the
    padded activations at exactly 0, so the math is unchanged while every tail
    tensor (and the final HBM store) is lane-dense.
    """
    n = len(raw_params)
    prepped = []
    pad_rows = 0
    for i, (w, b) in enumerate(raw_params):
        w = jnp.asarray(w, jnp.float32)
        b = jnp.asarray(b, jnp.float32).reshape(1, -1)
        if pad_rows:
            w = jnp.pad(w, ((0, pad_rows), (0, 0)))
        out = w.shape[1]
        needs_pad = (out % lane != 0) and (out < lane or i == n - 1)
        out_p = _round_up(out, lane) if needs_pad else out
        if out_p != out:
            w = jnp.pad(w, ((0, 0), (0, out_p - out)))
            b = jnp.pad(b, ((0, 0), (0, out_p - out)))
        pad_rows = out_p - out
        prepped.append((w.astype(jnp.bfloat16), b))
    return prepped


# -----------------------------------------------------------------------------
# Pure-JAX reference (mirrors the kernel's mixed precision)
# -----------------------------------------------------------------------------
def mlp_reference(x, prepped_params, out_dim):
    h = x
    for i, (w, b) in enumerate(prepped_params):
        h = jnp.dot(h.astype(w.dtype), w, preferred_element_type=jnp.float32) + b
        if i < len(prepped_params) - 1:
            h = jnp.maximum(h, 0.0)
    return h[:, :out_dim]


# -----------------------------------------------------------------------------
# Demo / self-check
# -----------------------------------------------------------------------------
if __name__ == "__main__":
    n_players = 2
    amp_factor = 4
    input_size = 100 * n_players + 5 + 25 + 2          # 232
    output_size = 10 + 10 * (n_players - 1)            # 20
    dims = [input_size,
            input_size * amp_factor,                    # 928
            input_size * amp_factor,                    # 928
            input_size * (amp_factor // 2),             # 464
            output_size * 2,                            # 40
            output_size]                                # 20

    key = jax.random.PRNGKey(0)
    key, kparam = jax.random.split(key)
    raw_params = init_params(kparam, dims)
    params = prepare_params(raw_params)

    # Case 1: small batch (single tile, rounded to sublane multiple).
    key, kx = jax.random.split(key)
    x_small = jax.random.normal(kx, (8, input_size), jnp.float32)
    out_small = jax.block_until_ready(mlp_forward(x_small, params, output_size))
    ref_small = mlp_reference(x_small, params, output_size)
    assert out_small.shape == (8, output_size), out_small.shape
    assert jnp.allclose(out_small, ref_small, atol=1e-2, rtol=1e-2), \
        float(jnp.max(jnp.abs(out_small - ref_small)))

    # Case 2: batch that exercises multiple grid tiles + batch padding.
    key, kx2 = jax.random.split(key)
    x_big = jax.random.normal(kx2, (1000, input_size), jnp.float32)
    out_big = jax.block_until_ready(mlp_forward(x_big, params, output_size))
    ref_big = mlp_reference(x_big, params, output_size)
    assert out_big.shape == (1000, output_size), out_big.shape
    assert jnp.allclose(out_big, ref_big, atol=1e-2, rtol=1e-2), \
        float(jnp.max(jnp.abs(out_big - ref_big)))

    print("KERNEL_OK")
</pallas_src>

<mosaic_0001>
module attributes {stable_mosaic.version = 11 : i64} {
  func.func @mlp_kernel(%arg0: i32, %arg1: memref<8x232xf32, #tpu.memory_space<vmem>>, %arg2: memref<232x928xbf16, #tpu.memory_space<vmem>>, %arg3: memref<1x928xf32, #tpu.memory_space<vmem>>, %arg4: memref<928x928xbf16, #tpu.memory_space<vmem>>, %arg5: memref<1x928xf32, #tpu.memory_space<vmem>>, %arg6: memref<928x464xbf16, #tpu.memory_space<vmem>>, %arg7: memref<1x464xf32, #tpu.memory_space<vmem>>, %arg8: memref<464x128xbf16, #tpu.memory_space<vmem>>, %arg9: memref<1x128xf32, #tpu.memory_space<vmem>>, %arg10: memref<128x128xbf16, #tpu.memory_space<vmem>>, %arg11: memref<1x128xf32, #tpu.memory_space<vmem>>, %arg12: memref<8x128xf32, #tpu.memory_space<vmem>>) attributes {dimension_semantics = [#tpu.dimension_semantics<parallel>], iteration_bounds = array<i64: 1>, scalar_prefetch = 0 : i64, scratch_operands = 0 : i64, tpu.core_type = #tpu.core_type<tc>, window_params = [{transform_indices = @transform_0, window_bounds = array<i64: 8, 232>}, {pipeline_mode = #tpu.pipeline_mode<synchronous>, transform_indices = @transform_1, window_bounds = array<i64: 232, 928>}, {pipeline_mode = #tpu.pipeline_mode<synchronous>, transform_indices = @transform_2, window_bounds = array<i64: 1, 928>}, {pipeline_mode = #tpu.pipeline_mode<synchronous>, transform_indices = @transform_3, window_bounds = array<i64: 928, 928>}, {pipeline_mode = #tpu.pipeline_mode<synchronous>, transform_indices = @transform_4, window_bounds = array<i64: 1, 928>}, {pipeline_mode = #tpu.pipeline_mode<synchronous>, transform_indices = @transform_5, window_bounds = array<i64: 928, 464>}, {pipeline_mode = #tpu.pipeline_mode<synchronous>, transform_indices = @transform_6, window_bounds = array<i64: 1, 464>}, {pipeline_mode = #tpu.pipeline_mode<synchronous>, transform_indices = @transform_7, window_bounds = array<i64: 464, 128>}, {pipeline_mode = #tpu.pipeline_mode<synchronous>, transform_indices = @transform_8, window_bounds = array<i64: 1, 128>}, {pipeline_mode = #tpu.pipeline_mode<synchronous>, transform_indices = @transform_9, window_bounds = array<i64: 128, 128>}, {pipeline_mode = #tpu.pipeline_mode<synchronous>, transform_indices = @transform_10, window_bounds = array<i64: 1, 128>}, {transform_indices = @transform_11, window_bounds = array<i64: 8, 128>}]} {
    %c0 = arith.constant 0 : index
    %c0_0 = arith.constant 0 : index
    %0 = vector.load %arg1[%c0, %c0_0] : memref<8x232xf32, #tpu.memory_space<vmem>>, vector<8x232xf32>
    %1 = arith.truncf %0 : vector<8x232xf32> to vector<8x232xbf16>
    %c0_1 = arith.constant 0 : index
    %c0_2 = arith.constant 0 : index
    %2 = vector.load %arg2[%c0_1, %c0_2] : memref<232x928xbf16, #tpu.memory_space<vmem>>, vector<232x928xbf16>
    %cst = arith.constant dense<0.000000e+00> : vector<8x928xf32>
    %3 = tpu.matmul %1, %2, %cst {dimension_numbers = #tpu.dot_dimension_numbers<[1], [0], [0], [1], [0, 0, 1, 1], [], []>} : vector<8x232xbf16>, vector<232x928xbf16>, vector<8x928xf32> -> vector<8x928xf32>
    %c0_3 = arith.constant 0 : index
    %c0_4 = arith.constant 0 : index
    %4 = vector.load %arg3[%c0_3, %c0_4] : memref<1x928xf32, #tpu.memory_space<vmem>>, vector<1x928xf32>
    %5 = vector.broadcast %4 : vector<1x928xf32> to vector<8x928xf32>
    %6 = arith.addf %3, %5 : vector<8x928xf32>
    %cst_5 = arith.constant 0.000000e+00 : f32
    %7 = vector.broadcast %cst_5 : f32 to vector<8x928xf32>
    %8 = arith.maximumf %6, %7 : vector<8x928xf32>
    %9 = arith.truncf %8 : vector<8x928xf32> to vector<8x928xbf16>
    %c0_6 = arith.constant 0 : index
    %c0_7 = arith.constant 0 : index
    %10 = vector.load %arg4[%c0_6, %c0_7] : memref<928x928xbf16, #tpu.memory_space<vmem>>, vector<928x928xbf16>
    %cst_8 = arith.constant dense<0.000000e+00> : vector<8x928xf32>
    %11 = tpu.matmul %9, %10, %cst_8 {dimension_numbers = #tpu.dot_dimension_numbers<[1], [0], [0], [1], [0, 0, 1, 1], [], []>} : vector<8x928xbf16>, vector<928x928xbf16>, vector<8x928xf32> -> vector<8x928xf32>
    %c0_9 = arith.constant 0 : index
    %c0_10 = arith.constant 0 : index
    %12 = vector.load %arg5[%c0_9, %c0_10] : memref<1x928xf32, #tpu.memory_space<vmem>>, vector<1x928xf32>
    %13 = vector.broadcast %12 : vector<1x928xf32> to vector<8x928xf32>
    %14 = arith.addf %11, %13 : vector<8x928xf32>
    %cst_11 = arith.constant 0.000000e+00 : f32
    %15 = vector.broadcast %cst_11 : f32 to vector<8x928xf32>
    %16 = arith.maximumf %14, %15 : vector<8x928xf32>
    %17 = arith.truncf %16 : vector<8x928xf32> to vector<8x928xbf16>
    %c0_12 = arith.constant 0 : index
    %c0_13 = arith.constant 0 : index
    %18 = vector.load %arg6[%c0_12, %c0_13] : memref<928x464xbf16, #tpu.memory_space<vmem>>, vector<928x464xbf16>
    %cst_14 = arith.constant dense<0.000000e+00> : vector<8x464xf32>
    %19 = tpu.matmul %17, %18, %cst_14 {dimension_numbers = #tpu.dot_dimension_numbers<[1], [0], [0], [1], [0, 0, 1, 1], [], []>} : vector<8x928xbf16>, vector<928x464xbf16>, vector<8x464xf32> -> vector<8x464xf32>
    %c0_15 = arith.constant 0 : index
    %c0_16 = arith.constant 0 : index
    %20 = vector.load %arg7[%c0_15, %c0_16] : memref<1x464xf32, #tpu.memory_space<vmem>>, vector<1x464xf32>
    %21 = vector.broadcast %20 : vector<1x464xf32> to vector<8x464xf32>
    %22 = arith.addf %19, %21 : vector<8x464xf32>
    %cst_17 = arith.constant 0.000000e+00 : f32
    %23 = vector.broadcast %cst_17 : f32 to vector<8x464xf32>
    %24 = arith.maximumf %22, %23 : vector<8x464xf32>
    %25 = arith.truncf %24 : vector<8x464xf32> to vector<8x464xbf16>
    %c0_18 = arith.constant 0 : index
    %c0_19 = arith.constant 0 : index
    %26 = vector.load %arg8[%c0_18, %c0_19] : memref<464x128xbf16, #tpu.memory_space<vmem>>, vector<464x128xbf16>
    %cst_20 = arith.constant dense<0.000000e+00> : vector<8x128xf32>
    %27 = tpu.matmul %25, %26, %cst_20 {dimension_numbers = #tpu.dot_dimension_numbers<[1], [0], [0], [1], [0, 0, 1, 1], [], []>} : vector<8x464xbf16>, vector<464x128xbf16>, vector<8x128xf32> -> vector<8x128xf32>
    %c0_21 = arith.constant 0 : index
    %c0_22 = arith.constant 0 : index
    %28 = vector.load %arg9[%c0_21, %c0_22] : memref<1x128xf32, #tpu.memory_space<vmem>>, vector<1x128xf32>
    %29 = vector.broadcast %28 : vector<1x128xf32> to vector<8x128xf32>
    %30 = arith.addf %27, %29 : vector<8x128xf32>
    %cst_23 = arith.constant 0.000000e+00 : f32
    %31 = vector.broadcast %cst_23 : f32 to vector<8x128xf32>
    %32 = arith.maximumf %30, %31 : vector<8x128xf32>
    %33 = arith.truncf %32 : vector<8x128xf32> to vector<8x128xbf16>
    %c0_24 = arith.constant 0 : index
    %c0_25 = arith.constant 0 : index
    %34 = vector.load %arg10[%c0_24, %c0_25] : memref<128x128xbf16, #tpu.memory_space<vmem>>, vector<128x128xbf16>
    %cst_26 = arith.constant dense<0.000000e+00> : vector<8x128xf32>
    %35 = tpu.matmul %33, %34, %cst_26 {dimension_numbers = #tpu.dot_dimension_numbers<[1], [0], [0], [1], [0, 0, 1, 1], [], []>} : vector<8x128xbf16>, vector<128x128xbf16>, vector<8x128xf32> -> vector<8x128xf32>
    %c0_27 = arith.constant 0 : index
    %c0_28 = arith.constant 0 : index
    %36 = vector.load %arg11[%c0_27, %c0_28] : memref<1x128xf32, #tpu.memory_space<vmem>>, vector<1x128xf32>
    %37 = vector.broadcast %36 : vector<1x128xf32> to vector<8x128xf32>
    %38 = arith.addf %35, %37 : vector<8x128xf32>
    %c0_29 = arith.constant 0 : index
    %c0_30 = arith.constant 0 : index
    %39 = vector.load %arg12[%c0_29, %c0_30] : memref<8x128xf32, #tpu.memory_space<vmem>>, vector<8x128xf32>
    tpu.vector_store %arg12[%c0_29, %c0_30], %38 {strides = array<i32>} : memref<8x128xf32, #tpu.memory_space<vmem>>, vector<8x128xf32>,
    return
  }
  func.func @transform_0(%arg0: i32) -> (i32, i32) {
    %c0_i32 = arith.constant 0 : i32
    %c0_i32_0 = arith.constant 0 : i32
    return %arg0, %c0_i32 : i32, i32
  }
  func.func @transform_1(%arg0: i32) -> (i32, i32) {
    %c0_i32 = arith.constant 0 : i32
    %c0_i32_0 = arith.constant 0 : i32
    %c0_i32_1 = arith.constant 0 : i32
    return %c0_i32, %c0_i32_0 : i32, i32
  }
  func.func @transform_2(%arg0: i32) -> (i32, i32) {
    %c0_i32 = arith.constant 0 : i32
    %c0_i32_0 = arith.constant 0 : i32
    %c0_i32_1 = arith.constant 0 : i32
    return %c0_i32, %c0_i32_0 : i32, i32
  }
  func.func @transform_3(%arg0: i32) -> (i32, i32) {
    %c0_i32 = arith.constant 0 : i32
    %c0_i32_0 = arith.constant 0 : i32
    %c0_i32_1 = arith.constant 0 : i32
    return %c0_i32, %c0_i32_0 : i32, i32
  }
  func.func @transform_4(%arg0: i32) -> (i32, i32) {
    %c0_i32 = arith.constant 0 : i32
    %c0_i32_0 = arith.constant 0 : i32
    %c0_i32_1 = arith.constant 0 : i32
    return %c0_i32, %c0_i32_0 : i32, i32
  }
  func.func @transform_5(%arg0: i32) -> (i32, i32) {
    %c0_i32 = arith.constant 0 : i32
    %c0_i32_0 = arith.constant 0 : i32
    %c0_i32_1 = arith.constant 0 : i32
    return %c0_i32, %c0_i32_0 : i32, i32
  }
  func.func @transform_6(%arg0: i32) -> (i32, i32) {
    %c0_i32 = arith.constant 0 : i32
    %c0_i32_0 = arith.constant 0 : i32
    %c0_i32_1 = arith.constant 0 : i32
    return %c0_i32, %c0_i32_0 : i32, i32
  }
  func.func @transform_7(%arg0: i32) -> (i32, i32) {
    %c0_i32 = arith.constant 0 : i32
    %c0_i32_0 = arith.constant 0 : i32
    %c0_i32_1 = arith.constant 0 : i32
    return %c0_i32, %c0_i32_0 : i32, i32
  }
  func.func @transform_8(%arg0: i32) -> (i32, i32) {
    %c0_i32 = arith.constant 0 : i32
    %c0_i32_0 = arith.constant 0 : i32
    %c0_i32_1 = arith.constant 0 : i32
    return %c0_i32, %c0_i32_0 : i32, i32
  }
  func.func @transform_9(%arg0: i32) -> (i32, i32) {
    %c0_i32 = arith.constant 0 : i32
    %c0_i32_0 = arith.constant 0 : i32
    %c0_i32_1 = arith.constant 0 : i32
    return %c0_i32, %c0_i32_0 : i32, i32
  }
  func.func @transform_10(%arg0: i32) -> (i32, i32) {
    %c0_i32 = arith.constant 0 : i32
    %c0_i32_0 = arith.constant 0 : i32
    %c0_i32_1 = arith.constant 0 : i32
    return %c0_i32, %c0_i32_0 : i32, i32
  }
  func.func @transform_11(%arg0: i32) -> (i32, i32) {
    %c0_i32 = arith.constant 0 : i32
    %c0_i32_0 = arith.constant 0 : i32
    return %arg0, %c0_i32 : i32, i32
  }
}

</mosaic_0001>

<bundles_post_ra>
// kernel: tpu_custom_call.1
= control target key start
LH: loop header
LB: loop body
LE: loop exit
PB: predicated region body
PF: predicated region fallthrough
CT: control target
= control target key end

     0   :  { %16 = vsyncpa [#allocation3], 0  ;;  %s8965_s0 = inlined_call_operand.hbm [shape: f32[8,232], index: 0, kind: input, shape index: {}]   ;;  %s8966_s1 = inlined_call_operand.hbm [shape: bf16[232,928], index: 1, kind: input, shape index: {}]   ;;  %s8967_s2 = inlined_call_operand.hbm [shape: f32[1,928], index: 2, kind: input, shape index: {}]   ;;  %s8968_s3 = inlined_call_operand.hbm [shape: bf16[928,928], index: 3, kind: input, shape index: {}]   ;;  %s8969_s4 = inlined_call_operand.hbm [shape: f32[1,928], index: 4, kind: input, shape index: {}]   ;;  %s8970_s5 = inlined_call_operand.hbm [shape: bf16[928,464], index: 5, kind: input, shape index: {}]   ;;  %s8971_s6 = inlined_call_operand.hbm [shape: f32[1,464], index: 6, kind: input, shape index: {}]   ;;  %s8972_s7 = inlined_call_operand.hbm [shape: bf16[464,128], index: 7, kind: input, shape index: {}]   ;;  %s8973_s8 = inlined_call_operand.hbm [shape: f32[1,128], index: 8, kind: input, shape index: {}]   ;;  %s8974_s9 = inlined_call_operand.hbm [shape: bf16[128,128], index: 9, kind: input, shape index: {}]   ;;  %s8975_s10 = inlined_call_operand.hbm [shape: f32[1,128], index: 10, kind: input, shape index: {}]   ;;  %s8976_s11 = inlined_call_operand.hbm [shape: f32[8,128], index: 11, kind: output, shape index: {}]  }
   0x1   :  { %17 = vsyncpa [#allocation6], 0 }
   0x2   :  { %18 = vsyncpa [#allocation9], 0 }
   0x3   :  { %19 = vsyncpa [#allocation12], 0 }
   0x4   :  { %20 = vsyncpa [#allocation15], 0 }
   0x5   :  { %21 = vsyncpa [#allocation18], 0 }
   0x6   :  { %22 = vsyncpa [#allocation4], 0  ;;  %s8539_s17 = smov [#allocation5]   ;;  %s8261_s21 = scalar_lea.hbm %s8966_s1, 14848 }
   0x7   :  { %s38_s18 = sshll.u32 %s8539_s17, 4  ;;  %p8262_p0 = scmp.ne.s32.totalorder %s8966_s1, %s8261_s21  ;;  %s39_s18 = int_to_ptr.vmem [resolvable:$true] %s38_s18 }
   0x8   :  { %p8265_p1 = scmp.lt.u32.totalorder %s8261_s21, %s8966_s1 }
   0xa   :  { %p8267_p2 = pnand %p8265_p1, %p8262_p0 }
   0xc   :  { %8270 = shalt.err (!%p8267_p2)
}
   0xd   :  { %s8271_s26 = scalar_lea.vmem %s39_s18, 14848  ;;  %p8276_p4 = scmp.lt.s32.totalorder %s39_s18, %s39_s18 }
   0xe   :  { %p8272_p3 = scmp.ne.s32.totalorder %s39_s18, %s8271_s26  ;;  %p8277_p5 = scmp.lt.s32.totalorder %s8271_s26, %s8271_s26 }
  0x10   :  { %p8278_p6 = por %p8277_p5, %p8276_p4 }
  0x12   :  { %p8279_p7 = pnand %p8278_p6, %p8272_p3 }
  0x14   :  { %8282 = shalt.err (!%p8279_p7)
}
  0x15   :  { %s8540_s27 = smov 512   ;;  %s8541_s28 = smov 32  }
  0x16   :  { %44 = dma.hbm_to_vmem [thread:$0]  %s8966_s1, 14848, %s39_s18, [#allocation6], %s8540_s27, %s8540_s27, %s8541_s28  }
  0x17   :  { %s8542_s12 = smov [#allocation8]   ;;  %s8543_s14 = smov [#allocation11]  }
  0x18   :  { %s60_s13 = sshll.u32 %s8542_s12, 4  ;;  %s82_s15 = sshll.u32 %s8543_s14, 4  ;;  %s61_s13 = int_to_ptr.vmem [resolvable:$true] %s60_s13  ;;  %s83_s15 = int_to_ptr.vmem [resolvable:$true] %s82_s15 }
  0x19   :  { %s8283_s19 = scalar_lea.hbm %s8968_s3, 59392 }
  0x1a   :  { %p8284_p8 = scmp.ne.s32.totalorder %s8968_s3, %s8283_s19  ;;  %p8287_p9 = scmp.lt.u32.totalorder %s8283_s19, %s8968_s3 }
  0x1c   :  { %p8289_p10 = pnand %p8287_p9, %p8284_p8 }
  0x1e   :  { %8292 = shalt.err (!%p8289_p10)
}
  0x1f   :  { %s8293_s1 = scalar_lea.vmem %s61_s13, 59392  ;;  %p8298_p12 = scmp.lt.s32.totalorder %s61_s13, %s61_s13 }
  0x20   :  { %p8294_p11 = scmp.ne.s32.totalorder %s61_s13, %s8293_s1  ;;  %p8299_p13 = scmp.lt.s32.totalorder %s8293_s1, %s8293_s1 }
  0x22   :  { %p8300_p0 = por %p8299_p13, %p8298_p12 }
  0x24   :  { %p8301_p1 = pnand %p8300_p0, %p8294_p11 }
  0x26   :  { %8304 = shalt.err (!%p8301_p1)
}
  0x27   :  { %66 = dma.hbm_to_vmem [thread:$0]  %s8968_s3, 59392, %s61_s13, [#allocation9], %s8540_s27, %s8540_s27, %s8541_s28  }
  0x28   :  { %s8305_s29 = scalar_lea.hbm %s8970_s5, 29696 }
  0x29   :  { %p8306_p2 = scmp.ne.s32.totalorder %s8970_s5, %s8305_s29  ;;  %p8309_p3 = scmp.lt.u32.totalorder %s8305_s29, %s8970_s5 }
  0x2b   :  { %p8311_p4 = pnand %p8309_p3, %p8306_p2 }
  0x2d   :  { %8314 = shalt.err (!%p8311_p4)
}
  0x2e   :  { %s8315_s17 = scalar_lea.vmem %s83_s15, 29696  ;;  %p8320_p6 = scmp.lt.s32.totalorder %s83_s15, %s83_s15 }
  0x2f   :  { %p8316_p5 = scmp.ne.s32.totalorder %s83_s15, %s8315_s17  ;;  %p8321_p7 = scmp.lt.s32.totalorder %s8315_s17, %s8315_s17 }
  0x31   :  { %p8322_p8 = por %p8321_p7, %p8320_p6 }
  0x33   :  { %p8323_p9 = pnand %p8322_p8, %p8316_p5 }
  0x35   :  { %8326 = shalt.err (!%p8323_p9)
}
  0x36   :  { %s8544_s3 = smov 256   ;;  %s8545_s27 = smov 16  }
  0x37   :  { %88 = dma.hbm_to_vmem [thread:$0]  %s8970_s5, 29696, %s83_s15, [#allocation12], %s8544_s3, %s8544_s3, %s8545_s27  }
  0x38   :  { %s8546_s19 = smov [#allocation14]   ;;  %s8327_s23 = scalar_lea.hbm %s8972_s7, 3712 }
  0x39   :  { %s104_s20 = sshll.u32 %s8546_s19, 4  ;;  %p8328_p10 = scmp.ne.s32.totalorder %s8972_s7, %s8327_s23  ;;  %s105_s20 = int_to_ptr.vmem [resolvable:$true] %s104_s20 }
  0x3a   :  { %p8331_p11 = scmp.lt.u32.totalorder %s8327_s23, %s8972_s7 }
  0x3c   :  { %p8333_p12 = pnand %p8331_p11, %p8328_p10 }
  0x3e   :  { %8336 = shalt.err (!%p8333_p12)
}
  0x3f   :  { %s8337_s26 = scalar_lea.vmem %s105_s20, 3712  ;;  %p8342_p0 = scmp.lt.s32.totalorder %s105_s20, %s105_s20 }
  0x40   :  { %p8338_p13 = scmp.ne.s32.totalorder %s105_s20, %s8337_s26  ;;  %p8343_p1 = scmp.lt.s32.totalorder %s8337_s26, %s8337_s26 }
  0x42   :  { %p8344_p2 = por %p8343_p1, %p8342_p0 }
  0x44   :  { %p8345_p3 = pnand %p8344_p2, %p8338_p13 }
  0x46   :  { %8348 = shalt.err (!%p8345_p3)
}
  0x47   :  { %s8547_s5 = smov 64   ;;  %s8548_s15 = smov 4  }
  0x48   :  { %110 = dma.hbm_to_vmem [thread:$0]  %s8972_s7, 3712, %s105_s20, [#allocation15], %s8547_s5, %s8547_s5, %s8548_s15  }
  0x49   :  { %s8549_s12 = smov [#allocation17]   ;;  %s8550_s16 = smov [#allocation2]  }
  0x4a   :  { %s126_s14 = sshll.u32 %s8549_s12, 4  ;;  %s29_s17 = sshll.u32 %s8550_s16, 4  ;;  %s127_s14 = int_to_ptr.vmem [resolvable:$true] %s126_s14  ;;  %s30_s17 = int_to_ptr.vmem [resolvable:$true] %s29_s17 }
  0x4b   :  { %s8349_s28 = scalar_lea.hbm %s8974_s9, 1024 }
  0x4c   :  { %p8350_p4 = scmp.ne.s32.totalorder %s8974_s9, %s8349_s28  ;;  %p8353_p5 = scmp.lt.u32.totalorder %s8349_s28, %s8974_s9 }
  0x4e   :  { %p8355_p6 = pnand %p8353_p5, %p8350_p4 }
  0x50   :  { %8358 = shalt.err (!%p8355_p6)
}
  0x51   :  { %s8359_s7 = scalar_lea.vmem %s127_s14, 1024  ;;  %p8364_p8 = scmp.lt.s32.totalorder %s127_s14, %s127_s14 }
  0x52   :  { %p8360_p7 = scmp.ne.s32.totalorder %s127_s14, %s8359_s7  ;;  %p8365_p9 = scmp.lt.s32.totalorder %s8359_s7, %s8359_s7 }
  0x54   :  { %p8366_p10 = por %p8365_p9, %p8364_p8 }
  0x56   :  { %p8367_p11 = pnand %p8366_p10, %p8360_p7 }
  0x58   :  { %8370 = shalt.err (!%p8367_p11)
}
  0x59   :  { %132 = dma.hbm_to_vmem [thread:$0]  %s8974_s9, 1024, %s127_s14, [#allocation18], %s8547_s5, %s8547_s5, %s8548_s15  }
  0x5a   :  { %s8371_s24 = scalar_lea.hbm %s8965_s0, 256 }
  0x5b   :  { %p8372_p12 = scmp.ne.s32.totalorder %s8965_s0, %s8371_s24  ;;  %p8375_p13 = scmp.lt.u32.totalorder %s8371_s24, %s8965_s0 }
  0x5d   :  { %p8377_p0 = pnand %p8375_p13, %p8372_p12 }
  0x5f   :  { %8380 = shalt.err (!%p8377_p0)
}
  0x60   :  { %s8381_s12 = scalar_lea.vmem %s30_s17, 256  ;;  %p8386_p2 = scmp.lt.s32.totalorder %s30_s17, %s30_s17 }
  0x61   :  { %p8382_p1 = scmp.ne.s32.totalorder %s30_s17, %s8381_s12  ;;  %p8387_p3 = scmp.lt.s32.totalorder %s8381_s12, %s8381_s12 }
  0x63   :  { %p8388_p4 = por %p8387_p3, %p8386_p2 }
  0x65   :  { %p8389_p5 = pnand %p8388_p4, %p8382_p1 }
  0x67   :  { %8392 = shalt.err (!%p8389_p5)
}
  0x68   :  { %32 = dma.hbm_to_vmem [thread:$0]  %s8965_s0, 256, %s30_s17, [#allocation3]  }
  0x69   :  { %s8551_s15 = smov [#allocation7]   ;;  %s8552_s16 = smov [#allocation10]  }
  0x6a   :  { %s51_s14 = sshll.u32 %s8551_s15, 4  ;;  %s73_s3 = sshll.u32 %s8552_s16, 4  ;;  %s52_s14 = int_to_ptr.vmem [resolvable:$true] %s51_s14  ;;  %s74_s3 = int_to_ptr.vmem [resolvable:$true] %s73_s3 }
  0x6b   :  { %s8393_s13 = scalar_lea.hbm %s8967_s2, 128 }
  0x6c   :  { %p8394_p6 = scmp.ne.s32.totalorder %s8967_s2, %s8393_s13  ;;  %p8397_p7 = scmp.lt.u32.totalorder %s8393_s13, %s8967_s2 }
  0x6e   :  { %p8399_p8 = pnand %p8397_p7, %p8394_p6 }
  0x70   :  { %8402 = shalt.err (!%p8399_p8)
}
  0x71   :  { %s8403_s0 = scalar_lea.vmem %s52_s14, 128  ;;  %p8408_p10 = scmp.lt.s32.totalorder %s52_s14, %s52_s14 }
  0x72   :  { %p8404_p9 = scmp.ne.s32.totalorder %s52_s14, %s8403_s0  ;;  %p8409_p11 = scmp.lt.s32.totalorder %s8403_s0, %s8403_s0 }
  0x74   :  { %p8410_p12 = por %p8409_p11, %p8408_p10 }
  0x76   :  { %p8411_p13 = pnand %p8410_p12, %p8404_p9 }
  0x78   :  { %8414 = shalt.err (!%p8411_p13)
}
  0x79   :  { %54 = dma.hbm_to_vmem [thread:$0]  %s8967_s2, 128, %s52_s14, [#allocation6]  }
  0x7a   :  { %s8415_s18 = scalar_lea.hbm %s8969_s4, 128 }
  0x7b   :  { %p8416_p0 = scmp.ne.s32.totalorder %s8969_s4, %s8415_s18  ;;  %p8419_p1 = scmp.lt.u32.totalorder %s8415_s18, %s8969_s4 }
  0x7d   :  { %p8421_p2 = pnand %p8419_p1, %p8416_p0 }
  0x7f   :  { %8424 = shalt.err (!%p8421_p2)
}
  0x80   :  { %s8425_s30 = scalar_lea.vmem %s74_s3, 128  ;;  %p8430_p4 = scmp.lt.s32.totalorder %s74_s3, %s74_s3 }
  0x81   :  { %p8426_p3 = scmp.ne.s32.totalorder %s74_s3, %s8425_s30  ;;  %p8431_p5 = scmp.lt.s32.totalorder %s8425_s30, %s8425_s30 }
  0x83   :  { %p8432_p6 = por %p8431_p5, %p8430_p4 }
  0x85   :  { %p8433_p7 = pnand %p8432_p6, %p8426_p3 }
  0x87   :  { %8436 = shalt.err (!%p8433_p7)
}
  0x88   :  { %76 = dma.hbm_to_vmem [thread:$0]  %s8969_s4, 128, %s74_s3, [#allocation9]  }
  0x89   :  { %s8553_s9 = smov [#allocation13]   ;;  %s8554_s15 = smov [#allocation16]  }
  0x8a   :  { %s95_s5 = sshll.u32 %s8553_s9, 4  ;;  %s117_s14 = sshll.u32 %s8554_s15, 4  ;;  %s96_s5 = int_to_ptr.vmem [resolvable:$true] %s95_s5  ;;  %s118_s14 = int_to_ptr.vmem [resolvable:$true] %s117_s14 }
  0x8b   :  { %s8437_s28 = scalar_lea.hbm %s8971_s6, 64 }
  0x8c   :  { %p8438_p8 = scmp.ne.s32.totalorder %s8971_s6, %s8437_s28  ;;  %p8441_p9 = scmp.lt.u32.totalorder %s8437_s28, %s8971_s6 }
  0x8e   :  { %p8443_p10 = pnand %p8441_p9, %p8438_p8 }
  0x90   :  { %8446 = shalt.err (!%p8443_p10)
}
  0x91   :  { %s8447_s4 = scalar_lea.vmem %s96_s5, 64  ;;  %p8452_p12 = scmp.lt.s32.totalorder %s96_s5, %s96_s5 }
  0x92   :  { %p8448_p11 = scmp.ne.s32.totalorder %s96_s5, %s8447_s4  ;;  %p8453_p13 = scmp.lt.s32.totalorder %s8447_s4, %s8447_s4 }
  0x94   :  { %p8454_p0 = por %p8453_p13, %p8452_p12 }
  0x96   :  { %p8455_p1 = pnand %p8454_p0, %p8448_p11 }
  0x98   :  { %8458 = shalt.err (!%p8455_p1)
}
  0x99   :  { %98 = dma.hbm_to_vmem [thread:$0]  %s8971_s6, 64, %s96_s5, [#allocation12]  }
  0x9a   :  { %s8459_s20 = scalar_lea.hbm %s8973_s8, 16 }
  0x9b   :  { %p8460_p2 = scmp.ne.s32.totalorder %s8973_s8, %s8459_s20  ;;  %p8463_p3 = scmp.lt.u32.totalorder %s8459_s20, %s8973_s8 }
  0x9d   :  { %p8465_p4 = pnand %p8463_p3, %p8460_p2 }
  0x9f   :  { %8468 = shalt.err (!%p8465_p4)
}
  0xa0   :  { %s8469_s25 = scalar_lea.vmem %s118_s14, 16  ;;  %s8473_s26 = scalar_lea.vmem %s118_s14, 32 }
  0xa1   :  { %p8470_p5 = scmp.ne.s32.totalorder %s118_s14, %s8469_s25  ;;  %p8474_p6 = scmp.lt.s32.totalorder %s118_s14, %s118_s14 }
  0xa2   :  { %p8475_p7 = scmp.lt.s32.totalorder %s8473_s26, %s8469_s25 }
  0xa4   :  { %p8476_p8 = por %p8475_p7, %p8474_p6 }
  0xa6   :  { %p8477_p9 = pnand %p8476_p8, %p8470_p5 }
  0xa8   :  { %8480 = shalt.err (!%p8477_p9)
}
  0xa9   :  { %120 = dma.hbm_to_vmem [thread:$0]  %s8973_s8, 16, %s118_s14, [#allocation15]  }
  0xaa   :  { %s8555_s30 = smov [#allocation19]   ;;  %s8481_s5 = scalar_lea.hbm %s8975_s10, 16 }
  0xab   :  { %s139_s2 = sshll.u32 %s8555_s30, 4  ;;  %p8482_p10 = scmp.ne.s32.totalorder %s8975_s10, %s8481_s5  ;;  %s140_s2 = int_to_ptr.vmem [resolvable:$true] %s139_s2 }
  0xac   :  { %p8485_p11 = scmp.lt.u32.totalorder %s8481_s5, %s8975_s10 }
  0xae   :  { %p8487_p12 = pnand %p8485_p11, %p8482_p10 }
  0xb0   :  { %8490 = shalt.err (!%p8487_p12)
}
  0xb1   :  { %s8491_s13 = scalar_lea.vmem %s140_s2, 16  ;;  %s8495_s8 = scalar_lea.vmem %s140_s2, 32 }
  0xb2   :  { %p8492_p13 = scmp.ne.s32.totalorder %s140_s2, %s8491_s13  ;;  %p8496_p0 = scmp.lt.s32.totalorder %s140_s2, %s140_s2 }
  0xb3   :  { %p8497_p1 = scmp.lt.s32.totalorder %s8495_s8, %s8491_s13 }
  0xb5   :  { %p8498_p2 = por %p8497_p1, %p8496_p0 }
  0xb7   :  { %p8499_p3 = pnand %p8498_p2, %p8492_p13 }
  0xb9   :  { %8502 = shalt.err (!%p8499_p3)
}
  0xba   :  { %142 = dma.hbm_to_vmem [thread:$0]  %s8975_s10, 16, %s140_s2, [#allocation18]  }
  0xbb   :  { %8525 = dma.done.wait [#allocation3], 256  }
  0xbc   :  { %8526 = vsyncadd [#allocation3], 4294967040 }
  0xbd   :  { %8527 = dma.done.wait [#allocation6], 14976  }
  0xbe   :  { %8528 = vsyncadd [#allocation6], 4294952320 }
  0xbf   :  { %8529 = dma.done.wait [#allocation9], 59520  }
  0xc0   :  { %8530 = vsyncadd [#allocation9], 4294907776 }
  0xc1   :  { %8531 = dma.done.wait [#allocation12], 29760  }
  0xc2   :  { %8532 = vsyncadd [#allocation12], 4294937536 }
  0xc3   :  { %8533 = dma.done.wait [#allocation15], 3728  }
  0xc4   :  { %8534 = vsyncadd [#allocation15], 4294963568 }
  0xc5   :  { %8535 = dma.done.wait [#allocation18], 1040  }
  0xc6   :  { %8536 = vsyncadd [#allocation18], 4294966256  ;;  %v181_v0 = vld [vmem:[#allocation5] sm:$0xff]  ;;  %v178_v16 = vld [vmem:[#allocation2 + $0x8] sm:$0xff]  ;;  %vm919_vm0 = vcmask 850944   ;;  %vm923_vm1 = vcmask 1043456  }
  0xc7   :  { %v185_v1 = vld [vmem:[#allocation5 + $0x20] sm:$0xff]  ;;  %v182_v18 = vld [vmem:[#allocation5 + $0x8] sm:$0xff]  ;;  %v8752_v20 = vpack.c.bf16 %v178_v16, %v178_v16  ;;  %vm3954_vm2 = vcmask 261120   ;;  %vm6622_vm3 = vcmask 654336   ;;  %vm8558_vm4 = vmmov 0   ;;  %s8559_s10 = smov [#allocation20]  }
  0xc8   :  { %v189_v2 = vld [vmem:[#allocation5 + $0x40] sm:$0xff]  ;;  %v6841_v3 = vcombine.high %v181_v0, %v185_v1  ;;  %v6840_v4 = vcombine.low %v181_v0, %v185_v1  ;;  %v186_v19 = vld [vmem:[#allocation5 + $0x28] sm:$0xff]  ;;  %s6826_s21 = sshll.u32 %s8559_s10, 4  ;;  %s6827_s21 = int_to_ptr.vmem [resolvable:$true] %s6826_s21 }
  0xc9   :  { %v193_v5 = vld [vmem:[#allocation5 + $0x60] sm:$0xff]  ;;  %v6843_v21 = vcombine.high %v182_v18, %v186_v19  ;;  %v6842_v22 = vcombine.low %v182_v18, %v186_v19  ;;  %v190_v23 = vld [vmem:[#allocation5 + $0x48] sm:$0xff]  ;;  %6961 = vmatprep.mubr.msk.bf16.mxu0 %vm919_vm0, %v8752_v20  ;;  %6963 = vmatprep.mubr.msk.bf16.mxu1 %vm919_vm0, %v8752_v20  ;;  %s8503_s22 = scalar_lea.vmem %s6827_s21, 128  ;;  %p8508_p5 = scmp.lt.s32.totalorder %s6827_s21, %s6827_s21 }
  0xca   :  { %v6849_v6 = vcombine.high %v189_v2, %v193_v5  ;;  %v197_v7 = vld [vmem:[#allocation5 + $0x80] sm:$0xff]  ;;  %948 = vmatprep.subr.bf16.mxu0 %v6841_v3  ;;  %v6848_v9 = vcombine.low %v189_v2, %v193_v5  ;;  %v194_v24 = vld [vmem:[#allocation5 + $0x68] sm:$0xff]  ;;  %p8504_p4 = scmp.ne.s32.totalorder %s6827_s21, %s8503_s22  ;;  %p8509_p6 = scmp.lt.s32.totalorder %s8503_s22, %s8503_s22 }
  0xcb   :  { %v201_v8 = vld [vmem:[#allocation5 + $0xa0] sm:$0xff]  ;;  %949 = vmatpush1.bf16.msra.mxu0 %v6840_v4  ;;  %v6851_v26 = vcombine.high %v190_v23, %v194_v24  ;;  %v198_v28 = vld [vmem:[#allocation5 + $0x88] sm:$0xff]  ;;  %989 = vmatprep.subr.bf16.mxu1 %v6843_v21  ;;  %v6850_v32 = vcombine.low %v190_v23, %v194_v24 }
  0xcc   :  { %950 = vmatprep.subr.bf16.mxu0 %v6849_v6  ;;  %v6857_v10 = vcombine.high %v197_v7, %v201_v8  ;;  %v205_v11 = vld [vmem:[#allocation5 + $0xc0] sm:$0xff]  ;;  %v6856_v13 = vcombine.low %v197_v7, %v201_v8  ;;  %v202_v29 = vld [vmem:[#allocation5 + $0xa8] sm:$0xff]  ;;  %990 = vmatpush1.bf16.msra.mxu1 %v6842_v22  ;;  %p8510_p7 = por %p8509_p6, %p8508_p5 }
  0xcd   :  { %v209_v12 = vld [vmem:[#allocation5 + $0xe0] sm:$0xff]  ;;  %991 = vmatprep.subr.bf16.mxu1 %v6851_v26  ;;  %v6859_v34 = vcombine.high %v198_v28, %v202_v29  ;;  %v206_v36 = vld [vmem:[#allocation5 + $0xc8] sm:$0xff]  ;;  %v6858_v40 = vcombine.low %v198_v28, %v202_v29 }
  0xce   :  { %v6865_v14 = vcombine.high %v205_v11, %v209_v12  ;;  %v213_v15 = vld [vmem:[#allocation5 + $0x100] sm:$0xff]  ;;  %v6864_v25 = vcombine.low %v205_v11, %v209_v12  ;;  %v210_v37 = vld [vmem:[#allocation5 + $0xe8] sm:$0xff]  ;;  %p8511_p8 = pnand %p8510_p7, %p8504_p4 }
  0xcf   :  { %951 = vmatpush1.bf16.msra.mxu0 %v6848_v9  ;;  %v217_v17 = vld [vmem:[#allocation5 + $0x120] sm:$0xff]  ;;  %v6867_v42 = vcombine.high %v206_v36, %v210_v37  ;;  %v214_v44 = vld [vmem:[#allocation5 + $0x108] sm:$0xff]  ;;  %v6866_v48 = vcombine.low %v206_v36, %v210_v37 }
  0xd0   :  { %952 = vmatprep.subr.bf16.mxu0 %v6857_v10  ;;  %v6873_v27 = vcombine.high %v213_v15, %v217_v17  ;;  %v221_v30 = vld [vmem:[#allocation5 + $0x140] sm:$0xff]  ;;  %v6872_v33 = vcombine.low %v213_v15, %v217_v17  ;;  %992 = vmatpush1.bf16.msra.mxu1 %v6850_v32  ;;  %v218_v45 = vld [vmem:[#allocation5 + $0x128] sm:$0xff] }
  0xd1   :  { %v225_v31 = vld [vmem:[#allocation5 + $0x160] sm:$0xff]  ;;  %993 = vmatprep.subr.bf16.mxu1 %v6859_v34  ;;  %v6875_v50 = vcombine.high %v214_v44, %v218_v45  ;;  %v222_v52 = vld [vmem:[#allocation5 + $0x148] sm:$0xff]  ;;  %v6874_v56 = vcombine.low %v214_v44, %v218_v45 }
  0xd2   :  { %v6881_v35 = vcombine.high %v221_v30, %v225_v31  ;;  %v229_v38 = vld [vmem:[#allocation5 + $0x180] sm:$0xff]  ;;  %v6880_v41 = vcombine.low %v221_v30, %v225_v31  ;;  %v226_v53 = vld [vmem:[#allocation5 + $0x168] sm:$0xff] }
  0xd3   :  { %953 = vmatpush1.bf16.msra.mxu0 %v6856_v13  ;;  %v233_v39 = vld [vmem:[#allocation5 + $0x1a0] sm:$0xff]  ;;  %v6883_v58 = vcombine.high %v222_v52, %v226_v53  ;;  %v230_v60 = vld [vmem:[#allocation5 + $0x188] sm:$0xff]  ;;  %v6882_v0 = vcombine.low %v222_v52, %v226_v53 }
  0xd4   :  { %954 = vmatprep.subr.bf16.mxu0 %v6865_v14  ;;  %v6889_v43 = vcombine.high %v229_v38, %v233_v39  ;;  %v237_v46 = vld [vmem:[#allocation5 + $0x1c0] sm:$0xff]  ;;  %994 = vmatpush1.bf16.msra.mxu1 %v6858_v40  ;;  %v6888_v49 = vcombine.low %v229_v38, %v233_v39  ;;  %v234_v61 = vld [vmem:[#allocation5 + $0x1a8] sm:$0xff] }
  0xd5   :  { %v241_v47 = vld [vmem:[#allocation5 + $0x1e0] sm:$0xff]  ;;  %995 = vmatprep.subr.bf16.mxu1 %v6867_v42  ;;  %v6891_v2 = vcombine.high %v230_v60, %v234_v61  ;;  %v238_v4 = vld [vmem:[#allocation5 + $0x1c8] sm:$0xff]  ;;  %v6890_v8 = vcombine.low %v230_v60, %v234_v61 }
  0xd6   :  { %v6897_v51 = vcombine.high %v237_v46, %v241_v47  ;;  %v245_v54 = vld [vmem:[#allocation5 + $0x200] sm:$0xff]  ;;  %v6896_v57 = vcombine.low %v237_v46, %v241_v47  ;;  %v242_v5 = vld [vmem:[#allocation5 + $0x1e8] sm:$0xff]  ;;  %v183_v47 = vld [vmem:[#allocation5 + $0x10] sm:$0xff] }
  0xd7   :  { %955 = vmatpush1.bf16.msra.mxu0 %v6864_v25  ;;  %v249_v55 = vld [vmem:[#allocation5 + $0x220] sm:$0xff]  ;;  %v6899_v10 = vcombine.high %v238_v4, %v242_v5  ;;  %v246_v12 = vld [vmem:[#allocation5 + $0x208] sm:$0xff]  ;;  %v6898_v16 = vcombine.low %v238_v4, %v242_v5  ;;  %v188_v4 = vld [vmem:[#allocation5 + $0x38] sm:$0xff] }
  0xd8   :  { %956 = vmatprep.subr.bf16.mxu0 %v6873_v27  ;;  %996 = vmatpush1.bf16.msra.mxu1 %v6866_v48  ;;  %v6905_v59 = vcombine.high %v245_v54, %v249_v55  ;;  %v253_v62 = vld [vmem:[#allocation5 + $0x240] sm:$0xff]  ;;  %v6904_v1 = vcombine.low %v245_v54, %v249_v55  ;;  %v250_v13 = vld [vmem:[#allocation5 + $0x228] sm:$0xff]  ;;  %v187_v48 = vld [vmem:[#allocation5 + $0x30] sm:$0xff] }
  0xd9   :  { %997 = vmatprep.subr.bf16.mxu1 %v6875_v50  ;;  %v257_v63 = vld [vmem:[#allocation5 + $0x260] sm:$0xff]  ;;  %v6907_v18 = vcombine.high %v246_v12, %v250_v13  ;;  %v254_v21 = vld [vmem:[#allocation5 + $0x248] sm:$0xff]  ;;  %v6906_v25 = vcombine.low %v246_v12, %v250_v13  ;;  %v177_v50 = vld [vmem:[#allocation2] sm:$0xff]  ;;  %v6845_v55 = vcombine.high %v183_v47, %v187_v48 }
  0xda   :  { %v6913_v3 = vcombine.high %v253_v62, %v257_v63  ;;  %v261_v6 = vld [vmem:[#allocation5 + $0x280] sm:$0xff]  ;;  %v6912_v9 = vcombine.low %v253_v62, %v257_v63  ;;  %v258_v22 = vld [vmem:[#allocation5 + $0x268] sm:$0xff]  ;;  %v6844_v62 = vcombine.low %v183_v47, %v187_v48  ;;  %v199_v63 = vld [vmem:[#allocation5 + $0x90] sm:$0xff] }
  0xdb   :  { %957 = vmatpush1.bf16.msra.mxu0 %v6872_v33  ;;  %v265_v7 = vld [vmem:[#allocation5 + $0x2a0] sm:$0xff]  ;;  %v6915_v27 = vcombine.high %v254_v21, %v258_v22  ;;  %v262_v29 = vld [vmem:[#allocation5 + $0x288] sm:$0xff]  ;;  %v6914_v33 = vcombine.low %v254_v21, %v258_v22  ;;  %v196_v12 = vld [vmem:[#allocation5 + $0x78] sm:$0xff] }
  0xdc   :  { %958 = vmatprep.subr.bf16.mxu0 %v6881_v35  ;;  %998 = vmatpush1.bf16.msra.mxu1 %v6874_v56  ;;  %v6921_v11 = vcombine.high %v261_v6, %v265_v7  ;;  %v269_v14 = vld [vmem:[#allocation5 + $0x2c0] sm:$0xff]  ;;  %v6920_v17 = vcombine.low %v261_v6, %v265_v7  ;;  %v266_v30 = vld [vmem:[#allocation5 + $0x2a8] sm:$0xff]  ;;  %v191_v56 = vld [vmem:[#allocation5 + $0x50] sm:$0xff] }
  0xdd   :  { %999 = vmatprep.subr.bf16.mxu1 %v6883_v58  ;;  %v273_v15 = vld [vmem:[#allocation5 + $0x2e0] sm:$0xff]  ;;  %v6923_v35 = vcombine.high %v262_v29, %v266_v30  ;;  %v270_v37 = vld [vmem:[#allocation5 + $0x2c8] sm:$0xff]  ;;  %v6922_v40 = vcombine.low %v262_v29, %v266_v30  ;;  %v8760_v58 = vpack.c.bf16 %v177_v50, %v177_v50  ;;  %v200_v21 = vld [vmem:[#allocation5 + $0x98] sm:$0xff] }
  0xde   :  { %v6929_v19 = vcombine.high %v269_v14, %v273_v15  ;;  %v277_v23 = vld [vmem:[#allocation5 + $0x300] sm:$0xff]  ;;  %v6928_v26 = vcombine.low %v269_v14, %v273_v15  ;;  %v274_v38 = vld [vmem:[#allocation5 + $0x2e8] sm:$0xff]  ;;  %v215_v15 = vld [vmem:[#allocation5 + $0x110] sm:$0xff] }
  0xdf   :  { %959 = vmatpush1.bf16.msra.mxu0 %v6880_v41  ;;  %v281_v24 = vld [vmem:[#allocation5 + $0x320] sm:$0xff]  ;;  %v6931_v42 = vcombine.high %v270_v37, %v274_v38  ;;  %v278_v45 = vld [vmem:[#allocation5 + $0x308] sm:$0xff]  ;;  %v204_v22 = vld [vmem:[#allocation5 + $0xb8] sm:$0xff] }
  0xe0   :  { %960 = vmatprep.subr.bf16.mxu0 %v6889_v43  ;;  %1000 = vmatpush1.bf16.msra.mxu1 %v6882_v0  ;;  %v6937_v28 = vcombine.high %v277_v23, %v281_v24  ;;  %v285_v31 = vld [vmem:[#allocation5 + $0x340] sm:$0xff]  ;;  %v6936_v34 = vcombine.low %v277_v23, %v281_v24  ;;  %v282_v46 = vld [vmem:[#allocation5 + $0x328] sm:$0xff]  ;;  %v203_v0 = vld [vmem:[#allocation5 + $0xb0] sm:$0xff] }
  0xe1   :  { %1001 = vmatprep.subr.bf16.mxu1 %v6891_v2  ;;  %v289_v32 = vld [vmem:[#allocation5 + $0x360] sm:$0xff]  ;;  %v286_v52 = vld [vmem:[#allocation5 + $0x348] sm:$0xff]  ;;  %v6860_v14 = vcombine.low %v199_v63, %v203_v0  ;;  %v223_v24 = vld [vmem:[#allocation5 + $0x150] sm:$0xff] }
  0xe2   :  { %v6945_v36 = vcombine.high %v285_v31, %v289_v32  ;;  %v293_v39 = vld [vmem:[#allocation5 + $0x380] sm:$0xff]  ;;  %v6944_v41 = vcombine.low %v285_v31, %v289_v32  ;;  %v290_v54 = vld [vmem:[#allocation5 + $0x368] sm:$0xff]  ;;  %v208_v29 = vld [vmem:[#allocation5 + $0xd8] sm:$0xff] }
  0xe3   :  { %961 = vmatpush1.bf16.msra.mxu0 %v6888_v49  ;;  %v6953_v43 = vcombine.high %v293_v39, %v293_v39  ;;  %v6952_v44 = vcombine.low %v293_v39, %v293_v39  ;;  %v6930_v49 = vcombine.low %v270_v37, %v274_v38  ;;  %v294_v60 = vld [vmem:[#allocation5 + $0x388] sm:$0xff]  ;;  %v6947_v61 = vcombine.high %v286_v52, %v290_v54  ;;  %v212_v30 = vld [vmem:[#allocation5 + $0xf8] sm:$0xff]  ;;  %v231_v32 = vld [vmem:[#allocation5 + $0x190] sm:$0xff] }
  0xe4   :  { %962 = vmatprep.subr.bf16.mxu0 %v6897_v51  ;;  %1002 = vmatpush1.bf16.msra.mxu1 %v6890_v8  ;;  %v6939_v51 = vcombine.high %v278_v45, %v282_v46  ;;  %v6946_v2 = vcombine.low %v286_v52, %v290_v54  ;;  %v6955_v5 = vcombine.high %v294_v60, %v294_v60  ;;  %v207_v8 = vld [vmem:[#allocation5 + $0xd0] sm:$0xff]  ;;  %v216_v37 = vld [vmem:[#allocation5 + $0x118] sm:$0xff] }
  0xe5   :  { %1003 = vmatprep.subr.bf16.mxu1 %v6899_v10  ;;  %v925_v53 = vsel %vm923_vm1, %v6952_v44, 0  ;;  %v6954_v6 = vcombine.low %v294_v60, %v294_v60  ;;  %v6861_v10 = vcombine.high %v199_v63, %v203_v0  ;;  %v220_v38 = vld [vmem:[#allocation5 + $0x138] sm:$0xff]  ;;  %v247_v47 = vld [vmem:[#allocation5 + $0x210] sm:$0xff] }
  0xe6   :  { %v224_v44 = vld [vmem:[#allocation5 + $0x158] sm:$0xff]  ;;  %v251_v48 = vld [vmem:[#allocation5 + $0x230] sm:$0xff] }
  0xe7   :  { %963 = vmatpush1.bf16.msra.mxu0 %v6896_v57  ;;  %v195_v57 = vld [vmem:[#allocation5 + $0x70] sm:$0xff]  ;;  %v931_v13 = vsel %vm923_vm1, %v6954_v6, 0  ;;  %v232_v52 = vld [vmem:[#allocation5 + $0x198] sm:$0xff]  ;;  %v6908_v63 = vcombine.low %v247_v47, %v251_v48 }
  0xe8   :  { %964 = vmatprep.subr.bf16.mxu0 %v6905_v59  ;;  %1004 = vmatpush1.bf16.msra.mxu1 %v6898_v16  ;;  %v6938_v59 = vcombine.low %v278_v45, %v282_v46  ;;  %v6852_v7 = vcombine.low %v191_v56, %v195_v57  ;;  %v219_v16 = vld [vmem:[#allocation5 + $0x130] sm:$0xff]  ;;  %v228_v45 = vld [vmem:[#allocation5 + $0x178] sm:$0xff] }
  0xe9   :  { %1005 = vmatprep.subr.bf16.mxu1 %v6907_v18  ;;  %v6876_v31 = vcombine.low %v215_v15, %v219_v16  ;;  %v6886_v60 = vcombine.low %v224_v44, %v228_v45  ;;  %v263_v0 = vld [vmem:[#allocation5 + $0x290] sm:$0xff]  ;;  %v252_v6 = vld [vmem:[#allocation5 + $0x238] sm:$0xff] }
  0xeb   :  { %965 = vmatpush1.bf16.msra.mxu0 %v6904_v1  ;;  %v6853_v1 = vcombine.high %v191_v56, %v195_v57  ;;  %v259_v56 = vld [vmem:[#allocation5 + $0x270] sm:$0xff]  ;;  %v6887_v57 = vcombine.high %v224_v44, %v228_v45  ;;  %v288_v45 = vld [vmem:[#allocation5 + $0x358] sm:$0xff] }
  0xec   :  { %966 = vmatprep.subr.bf16.mxu0 %v6913_v3  ;;  %1006 = vmatpush1.bf16.msra.mxu1 %v6906_v25  ;;  %v184_v3 = vld [vmem:[#allocation5 + $0x18] sm:$0xff]  ;;  %v227_v25 = vld [vmem:[#allocation5 + $0x170] sm:$0xff] }
  0xed   :  { %1007 = vmatprep.subr.bf16.mxu1 %v6915_v27  ;;  %v6877_v27 = vcombine.high %v215_v15, %v219_v16  ;;  %v6884_v39 = vcombine.low %v223_v24, %v227_v25  ;;  %v279_v16 = vld [vmem:[#allocation5 + $0x310] sm:$0xff] }
  0xef   :  { %967 = vmatpush1.bf16.msra.mxu0 %v6912_v9  ;;  %v211_v9 = vld [vmem:[#allocation5 + $0xf0] sm:$0xff] }
  0xf0   :  { %968 = vmatprep.subr.bf16.mxu0 %v6921_v11  ;;  %1008 = vmatpush1.bf16.msra.mxu1 %v6914_v33  ;;  %v192_v11 = vld [vmem:[#allocation5 + $0x58] sm:$0xff]  ;;  %v6869_v18 = vcombine.high %v207_v8, %v211_v9  ;;  %v6868_v23 = vcombine.low %v207_v8, %v211_v9  ;;  %v235_v33 = vld [vmem:[#allocation5 + $0x1b0] sm:$0xff] }
  0xf1   :  { %1009 = vmatprep.subr.bf16.mxu1 %v6923_v35  ;;  %v6885_v35 = vcombine.high %v223_v24, %v227_v25  ;;  %v6892_v46 = vcombine.low %v231_v32, %v235_v33  ;;  %v271_v8 = vld [vmem:[#allocation5 + $0x2d0] sm:$0xff] }
  0xf2   :  { %v275_v9 = vld [vmem:[#allocation5 + $0x2f0] sm:$0xff] }
  0xf3   :  { %969 = vmatpush1.bf16.msra.mxu0 %v6920_v17  ;;  %v6847_v17 = vcombine.high %v184_v3, %v188_v4  ;;  %v6932_v24 = vcombine.low %v271_v8, %v275_v9  ;;  %v287_v25 = vld [vmem:[#allocation5 + $0x350] sm:$0xff] }
  0xf4   :  { %970 = vmatprep.subr.bf16.mxu0 %v6929_v19  ;;  %1010 = vmatpush1.bf16.msra.mxu1 %v6922_v40  ;;  %v6846_v19 = vcombine.low %v184_v3, %v188_v4  ;;  %v239_v40 = vld [vmem:[#allocation5 + $0x1d0] sm:$0xff] }
  0xf5   :  { %1011 = vmatprep.subr.bf16.mxu1 %v6931_v42  ;;  %v6871_v42 = vcombine.high %v208_v29, %v212_v30 }
  0xf7   :  { %971 = vmatpush1.bf16.msra.mxu0 %v6928_v26  ;;  %v6855_v26 = vcombine.high %v192_v11, %v196_v12 }
  0xf8   :  { %972 = vmatprep.subr.bf16.mxu0 %v6937_v28  ;;  %1012 = vmatpush1.bf16.msra.mxu1 %v6930_v49  ;;  %v6854_v28 = vcombine.low %v192_v11, %v196_v12  ;;  %v6879_v49 = vcombine.high %v216_v37, %v220_v38 }
  0xf9   :  { %1013 = vmatprep.subr.bf16.mxu1 %v6939_v51  ;;  %v6878_v51 = vcombine.low %v216_v37, %v220_v38  ;;  %v280_v37 = vld [vmem:[#allocation5 + $0x318] sm:$0xff] }
  0xfa   :  { %v284_v38 = vld [vmem:[#allocation5 + $0x338] sm:$0xff] }
  0xfb   :  { %973 = vmatpush1.bf16.msra.mxu0 %v6936_v34  ;;  %v6863_v34 = vcombine.high %v200_v21, %v204_v22 }
  0xfc   :  { %974 = vmatprep.subr.bf16.mxu0 %v6945_v36  ;;  %1014 = vmatpush1.bf16.msra.mxu1 %v6938_v59  ;;  %v6862_v36 = vcombine.low %v200_v21, %v204_v22  ;;  %v6909_v59 = vcombine.high %v247_v47, %v251_v48  ;;  %v264_v22 = vld [vmem:[#allocation5 + $0x298] sm:$0xff]  ;;  %v6943_v47 = vcombine.high %v280_v37, %v284_v38  ;;  %v1136_v48 = vld [vmem:[#allocation8 + $0x40] sm:$0xff] }
  0xfd   :  { %1015 = vmatprep.subr.bf16.mxu1 %v6947_v61  ;;  %v240_v61 = vld [vmem:[#allocation5 + $0x1d8] sm:$0xff] }
  0xff   :  { %975 = vmatpush1.bf16.msra.mxu0 %v6944_v41  ;;  %v243_v41 = vld [vmem:[#allocation5 + $0x1f0] sm:$0xff] }
 0x100   :  { %6960 = vmatprep.subr.msk.bf16.mxu0 %vm923_vm1, %v6953_v43  ;;  %1016 = vmatpush1.bf16.msra.mxu1 %v6946_v2  ;;  %v6870_v43 = vcombine.low %v208_v29, %v212_v30  ;;  %v6901_v50 = vcombine.high %v239_v40, %v243_v41  ;;  %v6900_v54 = vcombine.low %v239_v40, %v243_v41  ;;  %v272_v30 = vld [vmem:[#allocation5 + $0x2d8] sm:$0xff]  ;;  %v1128_v41 = vld [vmem:[#allocation8] sm:$0xff] }
 0x101   :  { %6962 = vmatprep.subr.msk.bf16.mxu1 %vm923_vm1, %v6955_v5  ;;  %v248_v5 = vld [vmem:[#allocation5 + $0x218] sm:$0xff] }
 0x102   :  { %v6910_v21 = vcombine.low %v248_v5, %v252_v6 }
 0x103   :  { %977 = vmatpush1.bf16.msra.mxu0 %v925_v53  ;;  %v236_v53 = vld [vmem:[#allocation5 + $0x1b8] sm:$0xff] }
 0x104   :  { %1030 = vmatprep.subr.bf16.mxu0 %v6845_v55  ;;  %1018 = vmatpush1.bf16.msra.mxu1 %v931_v13  ;;  %v255_v55 = vld [vmem:[#allocation5 + $0x250] sm:$0xff]  ;;  %v6895_v2 = vcombine.high %v232_v52, %v236_v53  ;;  %v6894_v4 = vcombine.low %v232_v52, %v236_v53  ;;  %v256_v13 = vld [vmem:[#allocation5 + $0x258] sm:$0xff]  ;;  %v6942_v52 = vcombine.low %v280_v37, %v284_v38 }
 0x105   :  { %1071 = vmatprep.subr.bf16.mxu1 %v6847_v17  ;;  %v6917_v3 = vcombine.high %v255_v55, %v259_v56  ;;  %v283_v17 = vld [vmem:[#allocation5 + $0x330] sm:$0xff]  ;;  %v296_v53 = vld [vmem:[#allocation5 + $0x398] sm:$0xff] }
 0x106   :  { %981 = vmatmul.mubr.bf16.vlgmr.msra.gmra.mrb[0].mxu0 %v8760_v58  ;;  %v1169_v38 = vld [vmem:[#allocation8 + $0x148] sm:$0xff] }
 0x107   :  { %1031 = vmatpush1.bf16.msra.mxu0 %v6844_v62  ;;  %6965 = vmatprep.mubr.msk.bf16.mxu0 %vm919_vm0, %v8752_v20  ;;  %v244_v62 = vld [vmem:[#allocation5 + $0x1f8] sm:$0xff] }
 0x108   :  { %1032 = vmatprep.subr.bf16.mxu0 %v6853_v1  ;;  %1022 = vmatmul.mubr.bf16.vlgmr.msra.gmra.mrb[0].mxu1 %v8760_v58  ;;  %v267_v1 = vld [vmem:[#allocation5 + $0x2b0] sm:$0xff]  ;;  %v6902_v12 = vcombine.low %v240_v61, %v244_v62 }
 0x109   :  { %1072 = vmatpush1.bf16.msra.mxu1 %v6846_v19  ;;  %6967 = vmatprep.mubr.msk.bf16.mxu1 %vm919_vm0, %v8752_v20  ;;  %v6893_v20 = vcombine.high %v231_v32, %v235_v33  ;;  %v6925_v11 = vcombine.high %v263_v0, %v267_v1  ;;  %v6924_v15 = vcombine.low %v263_v0, %v267_v1  ;;  %v295_v33 = vld [vmem:[#allocation5 + $0x390] sm:$0xff] }
 0x10a   :  { %1073 = vmatprep.subr.bf16.mxu1 %v6855_v26  ;;  %v6933_v19 = vcombine.high %v271_v8, %v275_v9  ;;  %v291_v26 = vld [vmem:[#allocation5 + $0x370] sm:$0xff]  ;;  %v6940_v32 = vcombine.low %v279_v16, %v283_v17  ;;  %v6958_v0 = vcombine.low %v296_v53, %v296_v53 }
 0x10b   :  { %1033 = vmatpush1.bf16.msra.mxu0 %v6852_v7  ;;  %v6916_v7 = vcombine.low %v255_v55, %v259_v56  ;;  %v1144_v56 = vld [vmem:[#allocation8 + $0x80] sm:$0xff] }
 0x10c   :  { %1034 = vmatprep.subr.bf16.mxu0 %v6861_v10  ;;  %v6903_v10 = vcombine.high %v240_v61, %v244_v62  ;;  %v1129_v61 = vld [vmem:[#allocation8 + $0x8] sm:$0xff] }
 0x10d   :  { %1074 = vmatpush1.bf16.msra.mxu1 %v6854_v28  ;;  %v6941_v28 = vcombine.high %v279_v16, %v283_v17  ;;  %v1133_v62 = vld [vmem:[#allocation8 + $0x28] sm:$0xff] }
 0x10e   :  { %1075 = vmatprep.subr.bf16.mxu1 %v6863_v34  ;;  %v6971_v8 = vcombine.high %v1129_v61, %v1133_v62 }
 0x10f   :  { %1035 = vmatpush1.bf16.msra.mxu0 %v6860_v14  ;;  %v260_v14 = vld [vmem:[#allocation5 + $0x278] sm:$0xff] }
 0x110   :  { %1036 = vmatprep.subr.bf16.mxu0 %v6869_v18  ;;  %v6911_v18 = vcombine.high %v248_v5, %v252_v6  ;;  %v6918_v29 = vcombine.low %v256_v13, %v260_v14  ;;  %v1137_v5 = vld [vmem:[#allocation8 + $0x48] sm:$0xff] }
 0x111   :  { %1076 = vmatpush1.bf16.msra.mxu1 %v6862_v36  ;;  %v1141_v6 = vld [vmem:[#allocation8 + $0x68] sm:$0xff] }
 0x112   :  { %1077 = vmatprep.subr.bf16.mxu1 %v6871_v42  ;;  %v1132_v42 = vld [vmem:[#allocation8 + $0x20] sm:$0xff]  ;;  %v6979_v16 = vcombine.high %v1137_v5, %v1141_v6 }
 0x113   :  { %1037 = vmatpush1.bf16.msra.mxu0 %v6868_v23  ;;  %v268_v23 = vld [vmem:[#allocation5 + $0x2b8] sm:$0xff]  ;;  %v6968_v55 = vcombine.low %v1128_v41, %v1132_v42 }
 0x114   :  { %1038 = vmatprep.subr.bf16.mxu0 %v6877_v27  ;;  %v6919_v27 = vcombine.high %v256_v13, %v260_v14  ;;  %v6927_v34 = vcombine.high %v264_v22, %v268_v23  ;;  %v6926_v36 = vcombine.low %v264_v22, %v268_v23  ;;  %v6970_v13 = vcombine.low %v1129_v61, %v1133_v62  ;;  %v1145_v14 = vld [vmem:[#allocation8 + $0x88] sm:$0xff]  ;;  %v1208_v61 = vld [vmem:[#allocation8 + $0x280] sm:$0xff] }
 0x115   :  { %1078 = vmatpush1.bf16.msra.mxu1 %v6870_v43  ;;  %v6956_v43 = vcombine.low %v295_v33, %v295_v33  ;;  %v6978_v22 = vcombine.low %v1137_v5, %v1141_v6  ;;  %v1153_v23 = vld [vmem:[#allocation8 + $0xc8] sm:$0xff]  ;;  %v1212_v62 = vld [vmem:[#allocation8 + $0x2a0] sm:$0xff] }
 0x116   :  { %1079 = vmatprep.subr.bf16.mxu1 %v6879_v49  ;;  %v1140_v49 = vld [vmem:[#allocation8 + $0x60] sm:$0xff]  ;;  %v1193_v5 = vld [vmem:[#allocation8 + $0x208] sm:$0xff] }
 0x117   :  { %1039 = vmatpush1.bf16.msra.mxu0 %v6876_v31  ;;  %v276_v31 = vld [vmem:[#allocation5 + $0x2f8] sm:$0xff]  ;;  %v6976_v1 = vcombine.low %v1136_v48, %v1140_v49  ;;  %v1197_v6 = vld [vmem:[#allocation8 + $0x228] sm:$0xff] }
 0x118   :  { %1040 = vmatprep.subr.bf16.mxu0 %v6885_v35  ;;  %v6949_v35 = vcombine.high %v287_v25, %v291_v26  ;;  %v6935_v40 = vcombine.high %v272_v30, %v276_v31  ;;  %v6934_v44 = vcombine.low %v272_v30, %v276_v31  ;;  %v1161_v31 = vld [vmem:[#allocation8 + $0x108] sm:$0xff] }
 0x119   :  { %1080 = vmatpush1.bf16.msra.mxu1 %v6878_v51  ;;  %v6969_v51 = vcombine.high %v1128_v41, %v1132_v42  ;;  %v1192_v42 = vld [vmem:[#allocation8 + $0x200] sm:$0xff] }
 0x11a   :  { %1081 = vmatprep.subr.bf16.mxu1 %v6887_v57  ;;  %v1148_v57 = vld [vmem:[#allocation8 + $0xa0] sm:$0xff] }
 0x11b   :  { %1041 = vmatpush1.bf16.msra.mxu0 %v6884_v39  ;;  %v6948_v39 = vcombine.low %v287_v25, %v291_v26  ;;  %v6984_v9 = vcombine.low %v1144_v56, %v1148_v57 }
 0x11c   :  { %1042 = vmatprep.subr.bf16.mxu0 %v6893_v20  ;;  %v6957_v20 = vcombine.high %v295_v33, %v295_v33 }
 0x11d   :  { %1082 = vmatpush1.bf16.msra.mxu1 %v6886_v60 }
 0x11e   :  { %1083 = vmatprep.subr.bf16.mxu1 %v6895_v2  ;;  %v1152_v2 = vld [vmem:[#allocation8 + $0xc0] sm:$0xff] }
 0x11f   :  { %1043 = vmatpush1.bf16.msra.mxu0 %v6892_v46  ;;  %v292_v46 = vld [vmem:[#allocation5 + $0x378] sm:$0xff] }
 0x120   :  { %1044 = vmatprep.subr.bf16.mxu0 %v6901_v50  ;;  %v937_v50 = vsel %vm923_vm1, %v6956_v43, 0  ;;  %v6950_v60 = vcombine.low %v288_v45, %v292_v46 }
 0x121   :  { %1084 = vmatpush1.bf16.msra.mxu1 %v6894_v4  ;;  %v6985_v4 = vcombine.high %v1144_v56, %v1148_v57  ;;  %v8778_v56 = vld [vmem:[#allocation8 + $0x420] sm:$0xff]  ;;  %v8780_v57 = vld [vmem:[#allocation8 + $0x408] sm:$0xff] }
 0x122   :  { %1085 = vmatprep.subr.bf16.mxu1 %v6903_v10  ;;  %v1160_v10 = vld [vmem:[#allocation8 + $0x100] sm:$0xff] }
 0x123   :  { %1045 = vmatpush1.bf16.msra.mxu0 %v6900_v54  ;;  %v6951_v54 = vcombine.high %v288_v45, %v292_v46  ;;  %v1177_v45 = vld [vmem:[#allocation8 + $0x188] sm:$0xff] }
 0x124   :  { %1046 = vmatprep.subr.bf16.mxu0 %v6909_v59  ;;  %v6977_v59 = vcombine.high %v1136_v48, %v1140_v49  ;;  %v1181_v46 = vld [vmem:[#allocation8 + $0x1a8] sm:$0xff]  ;;  %v1200_v49 = vld [vmem:[#allocation8 + $0x240] sm:$0xff] }
 0x125   :  { %1086 = vmatpush1.bf16.msra.mxu1 %v6902_v12 }
 0x126   :  { %1087 = vmatprep.subr.bf16.mxu1 %v6911_v18  ;;  %v1168_v18 = vld [vmem:[#allocation8 + $0x140] sm:$0xff] }
 0x127   :  { %1047 = vmatpush1.bf16.msra.mxu0 %v6908_v63  ;;  %v6959_v63 = vcombine.high %v296_v53, %v296_v53  ;;  %v1185_v53 = vld [vmem:[#allocation8 + $0x1c8] sm:$0xff] }
 0x128   :  { %1048 = vmatprep.subr.bf16.mxu0 %v6917_v3  ;;  %v1156_v3 = vld [vmem:[#allocation8 + $0xe0] sm:$0xff] }
 0x129   :  { %1088 = vmatpush1.bf16.msra.mxu1 %v6910_v21  ;;  %v6993_v12 = vcombine.high %v1152_v2, %v1156_v3  ;;  %v6992_v17 = vcombine.low %v1152_v2, %v1156_v3  ;;  %v7018_v3 = vcombine.low %v1177_v45, %v1181_v46 }
 0x12a   :  { %1089 = vmatprep.subr.bf16.mxu1 %v6919_v27  ;;  %v1176_v27 = vld [vmem:[#allocation8 + $0x180] sm:$0xff] }
 0x12b   :  { %1049 = vmatpush1.bf16.msra.mxu0 %v6916_v7  ;;  %v943_v7 = vsel %vm923_vm1, %v6958_v0, 0 }
 0x12c   :  { %1050 = vmatprep.subr.bf16.mxu0 %v6925_v11  ;;  %v1164_v11 = vld [vmem:[#allocation8 + $0x120] sm:$0xff] }
 0x12d   :  { %1090 = vmatpush1.bf16.msra.mxu1 %v6918_v29  ;;  %v7001_v21 = vcombine.high %v1160_v10, %v1164_v11  ;;  %v7000_v26 = vcombine.low %v1160_v10, %v1164_v11  ;;  %v1220_v10 = vld [vmem:[#allocation8 + $0x2e0] sm:$0xff] }
 0x12e   :  { %1091 = vmatprep.subr.bf16.mxu1 %v6927_v34  ;;  %v1184_v34 = vld [vmem:[#allocation8 + $0x1c0] sm:$0xff] }
 0x12f   :  { %1051 = vmatpush1.bf16.msra.mxu0 %v6924_v15  ;;  %v1149_v15 = vld [vmem:[#allocation8 + $0xa8] sm:$0xff] }
 0x130   :  { %1052 = vmatprep.subr.bf16.mxu0 %v6933_v19  ;;  %v1172_v19 = vld [vmem:[#allocation8 + $0x160] sm:$0xff]  ;;  %v6987_v25 = vcombine.high %v1145_v14, %v1149_v15  ;;  %v6986_v30 = vcombine.low %v1145_v14, %v1149_v15  ;;  %v1205_v14 = vld [vmem:[#allocation8 + $0x268] sm:$0xff]  ;;  %v7048_v15 = vcombine.low %v1208_v61, %v1212_v62 }
 0x131   :  { %1092 = vmatpush1.bf16.msra.mxu1 %v6926_v36  ;;  %v7009_v29 = vcombine.high %v1168_v18, %v1172_v19 }
 0x132   :  { %1093 = vmatprep.subr.bf16.mxu1 %v6935_v40 }
 0x133   :  { %1053 = vmatpush1.bf16.msra.mxu0 %v6932_v24  ;;  %v1157_v24 = vld [vmem:[#allocation8 + $0xe8] sm:$0xff] }
 0x134   :  { %1054 = vmatprep.subr.bf16.mxu0 %v6941_v28  ;;  %v1180_v28 = vld [vmem:[#allocation8 + $0x1a0] sm:$0xff]  ;;  %v6995_v33 = vcombine.high %v1153_v23, %v1157_v24  ;;  %v6994_v37 = vcombine.low %v1153_v23, %v1157_v24  ;;  %v1213_v23 = vld [vmem:[#allocation8 + $0x2a8] sm:$0xff] }
 0x135   :  { %1094 = vmatpush1.bf16.msra.mxu1 %v6934_v44  ;;  %v7017_v36 = vcombine.high %v1176_v27, %v1180_v28  ;;  %v7016_v41 = vcombine.low %v1176_v27, %v1180_v28  ;;  %v1236_v27 = vld [vmem:[#allocation8 + $0x360] sm:$0xff] }
 0x136   :  { %1095 = vmatprep.subr.bf16.mxu1 %v6943_v47 }
 0x137   :  { %1055 = vmatpush1.bf16.msra.mxu0 %v6940_v32  ;;  %v1165_v32 = vld [vmem:[#allocation8 + $0x128] sm:$0xff] }
 0x138   :  { %1056 = vmatprep.subr.bf16.mxu0 %v6949_v35  ;;  %v1188_v35 = vld [vmem:[#allocation8 + $0x1e0] sm:$0xff]  ;;  %v7003_v40 = vcombine.high %v1161_v31, %v1165_v32  ;;  %v7002_v44 = vcombine.low %v1161_v31, %v1165_v32  ;;  %v1217_v31 = vld [vmem:[#allocation8 + $0x2c8] sm:$0xff] }
 0x139   :  { %1096 = vmatpush1.bf16.msra.mxu1 %v6942_v52  ;;  %v7025_v43 = vcombine.high %v1184_v34, %v1188_v35  ;;  %v7024_v48 = vcombine.low %v1184_v34, %v1188_v35  ;;  %v1221_v32 = vld [vmem:[#allocation8 + $0x2e8] sm:$0xff]  ;;  %v1244_v34 = vld [vmem:[#allocation8 + $0x3a0] sm:$0xff] }
 0x13a   :  { %1097 = vmatprep.subr.bf16.mxu1 %v6951_v54  ;;  %v1189_v54 = vld [vmem:[#allocation8 + $0x1e8] sm:$0xff] }
 0x13b   :  { %1057 = vmatpush1.bf16.msra.mxu0 %v6948_v39  ;;  %v1173_v39 = vld [vmem:[#allocation8 + $0x168] sm:$0xff]  ;;  %v7026_v11 = vcombine.low %v1185_v53, %v1189_v54 }
 0x13c   :  { %6964 = vmatprep.subr.msk.bf16.mxu0 %vm923_vm1, %v6957_v20  ;;  %v1196_v20 = vld [vmem:[#allocation8 + $0x220] sm:$0xff]  ;;  %v7011_v47 = vcombine.high %v1169_v38, %v1173_v39  ;;  %v7010_v52 = vcombine.low %v1169_v38, %v1173_v39  ;;  %v1225_v38 = vld [vmem:[#allocation8 + $0x308] sm:$0xff] }
 0x13d   :  { %1098 = vmatpush1.bf16.msra.mxu1 %v6950_v60  ;;  %v7032_v60 = vcombine.low %v1192_v42, %v1196_v20  ;;  %v1229_v39 = vld [vmem:[#allocation8 + $0x328] sm:$0xff] }
 0x13e   :  { %6966 = vmatprep.subr.msk.bf16.mxu1 %vm923_vm1, %v6959_v63  ;;  %v8782_v63 = vld [vmem:[#allocation8 + $0x428] sm:$0xff] }
 0x13f   :  { %1059 = vmatpush1.bf16.msra.mxu0 %v937_v50  ;;  %v1204_v50 = vld [vmem:[#allocation8 + $0x260] sm:$0xff]  ;;  %v7098_v2 = vcombine.low %v8780_v57, %v8782_v63 }
 0x140   :  { %3958 = vmatprep.subr.bf16.mxu0 %v6969_v51  ;;  %v7033_v51 = vcombine.high %v1192_v42, %v1196_v20  ;;  %v7041_v0 = vcombine.high %v1200_v49, %v1204_v50  ;;  %v1252_v42 = vld [vmem:[#allocation8 + $0x3e0] sm:$0xff]  ;;  %v7058_v20 = vcombine.low %v1217_v31, %v1221_v32 }
 0x141   :  { %1100 = vmatpush1.bf16.msra.mxu1 %v943_v7  ;;  %v7040_v7 = vcombine.low %v1200_v49, %v1204_v50 }
 0x142   :  { %1063 = vmatmul.mubr.bf16.vlgmr.msra.gmra.mrb[4].mxu0 %v8760_v58  ;;  %4122 = vmatprep.subr.bf16.mxu1 %v6971_v8  ;;  %v1216_v8 = vld [vmem:[#allocation8 + $0x2c0] sm:$0xff] }
 0x143   :  { %3959 = vmatpush1.bf16.msra.mxu0 %v6968_v55  ;;  %v8776_v55 = vld [vmem:[#allocation8 + $0x400] sm:$0xff]  ;;  %v7056_v24 = vcombine.low %v1216_v8, %v1220_v10 }
 0x144   :  { %3960 = vmatprep.subr.bf16.mxu0 %v6977_v59  ;;  %1104 = vmatmul.mubr.bf16.vlgmr.msra.gmra.mrb[4].mxu1 %v8760_v58  ;;  %v7008_v58 = vcombine.low %v1168_v18, %v1172_v19  ;;  %v7019_v59 = vcombine.high %v1177_v45, %v1181_v46  ;;  %v1228_v18 = vld [vmem:[#allocation8 + $0x320] sm:$0xff]  ;;  %v7034_v19 = vcombine.low %v1193_v5, %v1197_v6  ;;  %v1233_v45 = vld [vmem:[#allocation8 + $0x348] sm:$0xff] }
 0x145   :  { %4123 = vmatpush1.bf16.msra.mxu1 %v6970_v13  ;;  %v1201_v13 = vld [vmem:[#allocation8 + $0x248] sm:$0xff] }
 0x146   :  { %4124 = vmatprep.subr.bf16.mxu1 %v6979_v16  ;;  %v1224_v16 = vld [vmem:[#allocation8 + $0x300] sm:$0xff]  ;;  %v7042_v28 = vcombine.low %v1201_v13, %v1205_v14  ;;  %v1237_v46 = vld [vmem:[#allocation8 + $0x368] sm:$0xff] }
 0x147   :  { %3961 = vmatpush1.bf16.msra.mxu0 %v6976_v1  ;;  %v7096_v1 = vcombine.low %v8776_v55, %v8778_v56  ;;  %v7075_v49 = vcombine.high %v1233_v45, %v1237_v46 }
 0x148   :  { %3962 = vmatprep.subr.bf16.mxu0 %v6985_v4  ;;  %v7027_v4 = vcombine.high %v1185_v53, %v1189_v54  ;;  %v7097_v53 = vcombine.high %v8776_v55, %v8778_v56  ;;  %v7074_v54 = vcombine.low %v1233_v45, %v1237_v46  ;;  %v1292_v46 = vld [vmem:[#allocation8 + $0x520] sm:$0xff] }
 0x149   :  { %4125 = vmatpush1.bf16.msra.mxu1 %v6978_v22  ;;  %v1209_v22 = vld [vmem:[#allocation8 + $0x288] sm:$0xff] }
 0x14a   :  { %4126 = vmatprep.subr.bf16.mxu1 %v6987_v25  ;;  %v1232_v25 = vld [vmem:[#allocation8 + $0x340] sm:$0xff]  ;;  %v7050_v35 = vcombine.low %v1209_v22, %v1213_v23 }
 0x14b   :  { %3963 = vmatpush1.bf16.msra.mxu0 %v6984_v9  ;;  %v7049_v9 = vcombine.high %v1208_v61, %v1212_v62  ;;  %v1253_v61 = vld [vmem:[#allocation8 + $0x3e8] sm:$0xff] }
 0x14c   :  { %3964 = vmatprep.subr.bf16.mxu0 %v6993_v12  ;;  %v7035_v12 = vcombine.high %v1193_v5, %v1197_v6  ;;  %v299_v5 = vlaneseq }
 0x14d   :  { %4127 = vmatpush1.bf16.msra.mxu1 %v6986_v30  ;;  %v7064_v30 = vcombine.low %v1224_v16, %v1228_v18 }
 0x14e   :  { %4128 = vmatprep.subr.bf16.mxu1 %v6995_v33  ;;  %v7073_v33 = vcombine.high %v1232_v25, %v1236_v27  ;;  %v8792_v6 = vshrl.u32 %v299_v5, 7  ;;  %v1304_v5 = vld [vmem:[#allocation8 + $0x580] sm:$0xff] }
 0x14f   :  { %3965 = vmatpush1.bf16.msra.mxu0 %v6992_v17  ;;  %v7057_v17 = vcombine.high %v1216_v8, %v1220_v10  ;;  %v8797_v8 = vld [vmem:[#allocation7] sm:$0xff] }
 0x150   :  { %3966 = vmatprep.subr.bf16.mxu0 %v7001_v21  ;;  %v7043_v21 = vcombine.high %v1201_v13, %v1205_v14 }
 0x151   :  { %4129 = vmatpush1.bf16.msra.mxu1 %v6994_v37  ;;  %v7072_v37 = vcombine.low %v1232_v25, %v1236_v27  ;;  %v8807_v25 = vsub.s32 3, %v8792_v6 }
 0x152   :  { %4130 = vmatprep.subr.bf16.mxu1 %v7003_v40 }
 0x153   :  { %3967 = vmatpush1.bf16.msra.mxu0 %v7000_v26  ;;  %v7065_v26 = vcombine.high %v1224_v16, %v1228_v18 }
 0x154   :  { %3968 = vmatprep.subr.bf16.mxu0 %v7009_v29  ;;  %v7051_v29 = vcombine.high %v1209_v22, %v1213_v23  ;;  %v1268_v22 = vld [vmem:[#allocation8 + $0x460] sm:$0xff]  ;;  %v1265_v23 = vld [vmem:[#allocation8 + $0x448] sm:$0xff] }
 0x155   :  { %4131 = vmatpush1.bf16.msra.mxu1 %v7002_v44 }
 0x156   :  { %4132 = vmatprep.subr.bf16.mxu1 %v7011_v47 }
 0x157   :  { %3969 = vmatpush1.bf16.msra.mxu0 %v7008_v58  ;;  %v1240_v58 = vld [vmem:[#allocation8 + $0x380] sm:$0xff] }
 0x158   :  { %3970 = vmatprep.subr.bf16.mxu0 %v7017_v36  ;;  %v7059_v36 = vcombine.high %v1217_v31, %v1221_v32  ;;  %v7081_v40 = vcombine.high %v1240_v58, %v1244_v34  ;;  %v7080_v44 = vcombine.low %v1240_v58, %v1244_v34  ;;  %v1276_v31 = vld [vmem:[#allocation8 + $0x4a0] sm:$0xff]  ;;  %v1273_v32 = vld [vmem:[#allocation8 + $0x488] sm:$0xff]  ;;  %v314_v58 = vrot.slane %v8797_v8, %v8807_v25 }
 0x159   :  { %4133 = vmatpush1.bf16.msra.mxu1 %v7010_v52  ;;  %v1245_v52 = vld [vmem:[#allocation8 + $0x3a8] sm:$0xff] }
 0x15a   :  { %4134 = vmatprep.subr.bf16.mxu1 %v7019_v59 }
 0x15b   :  { %3971 = vmatpush1.bf16.msra.mxu0 %v7016_v41  ;;  %v1248_v41 = vld [vmem:[#allocation8 + $0x3c0] sm:$0xff] }
 0x15c   :  { %3972 = vmatprep.subr.bf16.mxu0 %v7025_v43  ;;  %v7067_v43 = vcombine.high %v1225_v38, %v1229_v39  ;;  %v7089_v47 = vcombine.high %v1248_v41, %v1252_v42  ;;  %v7088_v50 = vcombine.low %v1248_v41, %v1252_v42  ;;  %v1281_v41 = vld [vmem:[#allocation8 + $0x4c8] sm:$0xff] }
 0x15d   :  { %4135 = vmatpush1.bf16.msra.mxu1 %v7018_v3  ;;  %v1285_v42 = vld [vmem:[#allocation8 + $0x4e8] sm:$0xff] }
 0x15e   :  { %4136 = vmatprep.subr.bf16.mxu1 %v7027_v4  ;;  %v7099_v4 = vcombine.high %v8780_v57, %v8782_v63 }
 0x15f   :  { %3973 = vmatpush1.bf16.msra.mxu0 %v7024_v48  ;;  %v7066_v48 = vcombine.low %v1225_v38, %v1229_v39  ;;  %v1280_v38 = vld [vmem:[#allocation8 + $0x4c0] sm:$0xff] }
 0x160   :  { %3974 = vmatprep.subr.bf16.mxu0 %v7033_v51  ;;  %v1241_v51 = vld [vmem:[#allocation8 + $0x388] sm:$0xff] }
 0x161   :  { %4137 = vmatpush1.bf16.msra.mxu1 %v7026_v11  ;;  %v7083_v59 = vcombine.high %v1241_v51, %v1245_v52  ;;  %v7082_v62 = vcombine.low %v1241_v51, %v1245_v52  ;;  %v7122_v51 = vcombine.low %v1281_v41, %v1285_v42 }
 0x162   :  { %4138 = vmatprep.subr.bf16.mxu1 %v7035_v12 }
 0x163   :  { %3975 = vmatpush1.bf16.msra.mxu0 %v7032_v60  ;;  %v1249_v60 = vld [vmem:[#allocation8 + $0x3c8] sm:$0xff] }
 0x164   :  { %3976 = vmatprep.subr.bf16.mxu0 %v7041_v0  ;;  %v7091_v0 = vcombine.high %v1249_v60, %v1253_v61  ;;  %v7090_v3 = vcombine.low %v1249_v60, %v1253_v61  ;;  %v1297_v60 = vld [vmem:[#allocation8 + $0x548] sm:$0xff] }
 0x165   :  { %4139 = vmatpush1.bf16.msra.mxu1 %v7034_v19  ;;  %v1264_v19 = vld [vmem:[#allocation8 + $0x440] sm:$0xff]  ;;  %v1301_v61 = vld [vmem:[#allocation8 + $0x568] sm:$0xff] }
 0x166   :  { %4140 = vmatprep.subr.bf16.mxu1 %v7043_v21  ;;  %v7104_v34 = vcombine.low %v1264_v19, %v1268_v22 }
 0x167   :  { %3977 = vmatpush1.bf16.msra.mxu0 %v7040_v7  ;;  %v8795_v7 = vsub.s32 0, %v8792_v6 }
 0x168   :  { %3978 = vmatprep.subr.bf16.mxu0 %v7049_v9  ;;  %v8800_v9 = vsub.s32 1, %v8792_v6 }
 0x169   :  { %4141 = vmatpush1.bf16.msra.mxu1 %v7042_v28  ;;  %v302_v10 = vrot.slane %v8797_v8, %v8795_v7  ;;  %v7105_v28 = vcombine.high %v1264_v19, %v1268_v22  ;;  %v1313_v19 = vld [vmem:[#allocation8 + $0x5c8] sm:$0xff] }
 0x16a   :  { %4142 = vmatprep.subr.bf16.mxu1 %v7051_v29  ;;  %v306_v11 = vrot.slane %v8797_v8, %v8800_v9 }
 0x16b   :  { %3979 = vmatpush1.bf16.msra.mxu0 %v7048_v15 }
 0x16c   :  { %3980 = vmatprep.subr.bf16.mxu0 %v7057_v17 }
 0x16d   :  { %4143 = vmatpush1.bf16.msra.mxu1 %v7050_v35 }
 0x16e   :  { %4144 = vmatprep.subr.bf16.mxu1 %v7059_v36 }
 0x16f   :  { %3981 = vmatpush1.bf16.msra.mxu0 %v7056_v24  ;;  %v1269_v24 = vld [vmem:[#allocation8 + $0x468] sm:$0xff] }
 0x170   :  { %3982 = vmatprep.subr.bf16.mxu0 %v7065_v26  ;;  %v7107_v29 = vcombine.high %v1265_v23, %v1269_v24  ;;  %v7106_v35 = vcombine.low %v1265_v23, %v1269_v24 }
 0x171   :  { %4145 = vmatpush1.bf16.msra.mxu1 %v7058_v20 }
 0x172   :  { %4146 = vmatprep.subr.bf16.mxu1 %v7067_v43 }
 0x173   :  { %3983 = vmatpush1.bf16.msra.mxu0 %v7064_v30  ;;  %v1272_v30 = vld [vmem:[#allocation8 + $0x480] sm:$0xff] }
 0x174   :  { %3984 = vmatprep.subr.bf16.mxu0 %v7073_v33  ;;  %v1277_v33 = vld [vmem:[#allocation8 + $0x4a8] sm:$0xff]  ;;  %v7113_v36 = vcombine.high %v1272_v30, %v1276_v31  ;;  %v7112_v56 = vcombine.low %v1272_v30, %v1276_v31  ;;  %v1324_v30 = vld [vmem:[#allocation8 + $0x620] sm:$0xff] }
 0x175   :  { %4147 = vmatpush1.bf16.msra.mxu1 %v7066_v48  ;;  %v7114_v57 = vcombine.low %v1273_v32, %v1277_v33  ;;  %v1293_v48 = vld [vmem:[#allocation8 + $0x528] sm:$0xff] }
 0x176   :  { %4148 = vmatprep.subr.bf16.mxu1 %v7075_v49  ;;  %v1321_v31 = vld [vmem:[#allocation8 + $0x608] sm:$0xff] }
 0x177   :  { %3985 = vmatpush1.bf16.msra.mxu0 %v7072_v37  ;;  %v7115_v37 = vcombine.high %v1273_v32, %v1277_v33  ;;  %v1325_v32 = vld [vmem:[#allocation8 + $0x628] sm:$0xff] }
 0x178   :  { %3986 = vmatprep.subr.bf16.mxu0 %v7081_v40  ;;  %v1284_v40 = vld [vmem:[#allocation8 + $0x4e0] sm:$0xff] }
 0x179   :  { %4149 = vmatpush1.bf16.msra.mxu1 %v7074_v54  ;;  %v1296_v54 = vld [vmem:[#allocation8 + $0x540] sm:$0xff] }
 0x17a   :  { %4150 = vmatprep.subr.bf16.mxu1 %v7083_v59  ;;  %v1300_v59 = vld [vmem:[#allocation8 + $0x560] sm:$0xff] }
 0x17b   :  { %3987 = vmatpush1.bf16.msra.mxu0 %v7080_v44  ;;  %v1288_v44 = vld [vmem:[#allocation8 + $0x500] sm:$0xff] }
 0x17c   :  { %3988 = vmatprep.subr.bf16.mxu0 %v7089_v47  ;;  %v1289_v47 = vld [vmem:[#allocation8 + $0x508] sm:$0xff]  ;;  %v7129_v52 = vcombine.high %v1288_v44, %v1292_v46 }
 0x17d   :  { %4151 = vmatpush1.bf16.msra.mxu1 %v7082_v62  ;;  %v7128_v62 = vcombine.low %v1288_v44, %v1292_v46  ;;  %v1344_v46 = vld [vmem:[#allocation8 + $0x6c0] sm:$0xff] }
 0x17e   :  { %4152 = vmatprep.subr.bf16.mxu1 %v7091_v0  ;;  %v7130_v0 = vcombine.low %v1289_v47, %v1293_v48 }
 0x17f   :  { %3989 = vmatpush1.bf16.msra.mxu0 %v7088_v50  ;;  %v7120_v50 = vcombine.low %v1280_v38, %v1284_v40 }
 0x180   :  { %3999 = vmatprep.subr.bf16.mxu0 %v7097_v53  ;;  %v7131_v53 = vcombine.high %v1289_v47, %v1293_v48  ;;  %v1348_v47 = vld [vmem:[#allocation8 + $0x6e0] sm:$0xff]  ;;  %v1345_v48 = vld [vmem:[#allocation8 + $0x6c8] sm:$0xff] }
 0x181   :  { %4153 = vmatpush1.bf16.msra.mxu1 %v7090_v3  ;;  %v7137_v3 = vcombine.high %v1296_v54, %v1300_v59 }
 0x182   :  { %4163 = vmatprep.subr.bf16.mxu1 %v7099_v4  ;;  %v7139_v4 = vcombine.high %v1297_v60, %v1301_v61 }
 0x1d9   :  { %v982_v12 = vpop.f32.mrb[0].mxu0 }
 0x1da   :  { %v983_v13 = vadd.f32 %v982_v12, %v302_v10  ;;  %v984_v14 = vpop.f32.mrb[1].mxu0  ;;  %v1308_v10 = vld [vmem:[#allocation8 + $0x5a0] sm:$0xff]  ;;  %v1309_v12 = vld [vmem:[#allocation8 + $0x5a8] sm:$0xff] }
 0x1db   :  { %v985_v15 = vadd.f32 %v984_v14, %v306_v11  ;;  %v986_v16 = vpop.f32.mrb[2].mxu0  ;;  %v8825_v39 = vpop.f32.mrb[0].mxu1  ;;  %v1305_v11 = vld [vmem:[#allocation8 + $0x588] sm:$0xff]  ;;  %v7138_v14 = vcombine.low %v1297_v60, %v1301_v61  ;;  %v7144_v22 = vcombine.low %v1304_v5, %v1308_v10  ;;  %v1356_v60 = vld [vmem:[#allocation8 + $0x720] sm:$0xff] }
 0x1dc   :  { %v1112_v17 = vmax.f32 %v983_v13, 0.0  ;;  %v987_v18 = vpop.f32.mrb[3].mxu0  ;;  %v1025_v20 = vpop.f32.mrb[1].mxu1  ;;  %v7136_v13 = vcombine.low %v1296_v54, %v1300_v59  ;;  %v7147_v16 = vcombine.high %v1305_v11, %v1309_v12  ;;  %v7146_v23 = vcombine.low %v1305_v11, %v1309_v12  ;;  %v1352_v59 = vld [vmem:[#allocation8 + $0x700] sm:$0xff]  ;;  %v1353_v61 = vld [vmem:[#allocation8 + $0x708] sm:$0xff] }
 0x1dd   :  { %v1113_v21 = vmax.f32 %v985_v15, 0.0  ;;  %v1026_v43 = vadd.f32 %v1025_v20, %v314_v58  ;;  %v1027_v55 = vpop.f32.mrb[2].mxu1  ;;  %v7145_v15 = vcombine.high %v1304_v5, %v1308_v10  ;;  %v1316_v18 = vld [vmem:[#allocation8 + $0x5e0] sm:$0xff]  ;;  %v1361_v12 = vld [vmem:[#allocation8 + $0x748] sm:$0xff] }
 0x1de   :  { %v8811_v27 = vpack.c.bf16 %v1112_v17, %v1112_v17  ;;  %v1028_v63 = vpop.f32.mrb[3].mxu1  ;;  %v1312_v17 = vld [vmem:[#allocation8 + $0x5c0] sm:$0xff] }
 0x1df   :  { %v8809_v26 = vpack.c.bf16 %v1113_v21, %v1113_v21  ;;  %v1115_v45 = vmax.f32 %v1026_v43, 0.0  ;;  %v1317_v21 = vld [vmem:[#allocation8 + $0x5e8] sm:$0xff]  ;;  %v7153_v24 = vcombine.high %v1312_v17, %v1316_v18  ;;  %v7152_v33 = vcombine.low %v1312_v17, %v1316_v18  ;;  %v1336_v55 = vld [vmem:[#allocation8 + $0x680] sm:$0xff] }
 0x1e0   :  { %v7154_v58 = vcombine.low %v1313_v19, %v1317_v21  ;;  %v1341_v63 = vld [vmem:[#allocation8 + $0x6a8] sm:$0xff]  ;;  %v1360_v10 = vld [vmem:[#allocation8 + $0x740] sm:$0xff] }
 0x1e1   :  { %3990 = vmatprep.mubr.bf16.mxu0 %v8809_v26  ;;  %4154 = vmatprep.mubr.bf16.mxu1 %v8809_v26  ;;  %v8827_v49 = vpack.c.bf16 %v1115_v45, %v1115_v45  ;;  %v1364_v11 = vld [vmem:[#allocation8 + $0x760] sm:$0xff] }
 0x1e2   :  { %3991 = vmatmul.mubr.bf16.vlgmr.msra.gmra.mrb[8].mxu0 %v8811_v27  ;;  %4155 = vmatmul.mubr.bf16.vlgmr.msra.gmra.mrb[8].mxu1 %v8811_v27  ;;  %v7201_v17 = vcombine.high %v1360_v10, %v1364_v11 }
 0x1e3   :  { %4000 = vmatpush1.bf16.msra.mxu0 %v7096_v1  ;;  %4164 = vmatpush1.bf16.msra.mxu1 %v7098_v2  ;;  %v7121_v1 = vcombine.high %v1280_v38, %v1284_v40  ;;  %v7123_v2 = vcombine.high %v1281_v41, %v1285_v42  ;;  %v1329_v38 = vld [vmem:[#allocation8 + $0x648] sm:$0xff]  ;;  %v7162_v42 = vcombine.low %v1321_v31, %v1325_v32 }
 0x1e4   :  { %4001 = vmatprep.subr.bf16.mxu0 %v7105_v28  ;;  %4165 = vmatprep.subr.bf16.mxu1 %v7107_v29  ;;  %v7155_v28 = vcombine.high %v1313_v19, %v1317_v21  ;;  %v1320_v29 = vld [vmem:[#allocation8 + $0x600] sm:$0xff]  ;;  %v1333_v40 = vld [vmem:[#allocation8 + $0x668] sm:$0xff] }
 0x1e5   :  { %4031 = vmatprep.mubr.bf16.mxu0 %v8827_v49  ;;  %4195 = vmatprep.mubr.bf16.mxu1 %v8827_v49  ;;  %v7160_v41 = vcombine.low %v1320_v29, %v1324_v30  ;;  %v7171_v43 = vcombine.high %v1329_v38, %v1333_v40  ;;  %v1368_v19 = vld [vmem:[#allocation8 + $0x780] sm:$0xff] }
 0x1e6   :  { %v1372_v21 = vld [vmem:[#allocation8 + $0x7a0] sm:$0xff] }
 0x1e7   :  { %4002 = vmatpush1.bf16.msra.mxu0 %v7104_v34  ;;  %4166 = vmatpush1.bf16.msra.mxu1 %v7106_v35  ;;  %v7161_v34 = vcombine.high %v1320_v29, %v1324_v30  ;;  %v7163_v35 = vcombine.high %v1321_v31, %v1325_v32  ;;  %v7200_v29 = vcombine.low %v1360_v10, %v1364_v11  ;;  %v1401_v10 = vld [vmem:[#allocation8 + $0x888] sm:$0xff] }
 0x1e8   :  { %4003 = vmatprep.subr.bf16.mxu0 %v7113_v36  ;;  %4167 = vmatprep.subr.bf16.mxu1 %v7115_v37  ;;  %v1328_v36 = vld [vmem:[#allocation8 + $0x640] sm:$0xff]  ;;  %v7209_v31 = vcombine.high %v1368_v19, %v1372_v21  ;;  %v1405_v11 = vld [vmem:[#allocation8 + $0x8a8] sm:$0xff] }
 0x1e9   :  { %v1332_v37 = vld [vmem:[#allocation8 + $0x660] sm:$0xff] }
 0x1ea   :  { %v7169_v20 = vcombine.high %v1328_v36, %v1332_v37 }
 0x1eb   :  { %4004 = vmatpush1.bf16.msra.mxu0 %v7112_v56  ;;  %4168 = vmatpush1.bf16.msra.mxu1 %v7114_v57  ;;  %v1340_v56 = vld [vmem:[#allocation8 + $0x6a0] sm:$0xff]  ;;  %v1337_v57 = vld [vmem:[#allocation8 + $0x688] sm:$0xff] }
 0x1ec   :  { %4005 = vmatprep.subr.bf16.mxu0 %v7121_v1  ;;  %4169 = vmatprep.subr.bf16.mxu1 %v7123_v2  ;;  %v7168_v1 = vcombine.low %v1328_v36, %v1332_v37  ;;  %v7170_v2 = vcombine.low %v1329_v38, %v1333_v40  ;;  %v7177_v44 = vcombine.high %v1336_v55, %v1340_v56 }
 0x1ed   :  { %v7179_v45 = vcombine.high %v1337_v57, %v1341_v63 }
 0x1ef   :  { %4006 = vmatpush1.bf16.msra.mxu0 %v7120_v50  ;;  %4170 = vmatpush1.bf16.msra.mxu1 %v7122_v51  ;;  %v1349_v50 = vld [vmem:[#allocation8 + $0x6e8] sm:$0xff]  ;;  %v7176_v51 = vcombine.low %v1336_v55, %v1340_v56  ;;  %v1384_v56 = vld [vmem:[#allocation8 + $0x800] sm:$0xff] }
 0x1f0   :  { %4007 = vmatprep.subr.bf16.mxu0 %v7129_v52  ;;  %4171 = vmatprep.subr.bf16.mxu1 %v7131_v53  ;;  %v7178_v52 = vcombine.low %v1337_v57, %v1341_v63  ;;  %v7185_v53 = vcombine.high %v1344_v46, %v1348_v47  ;;  %v7187_v54 = vcombine.high %v1345_v48, %v1349_v50  ;;  %v1388_v63 = vld [vmem:[#allocation8 + $0x820] sm:$0xff] }
 0x1f3   :  { %4008 = vmatpush1.bf16.msra.mxu0 %v7128_v62  ;;  %4172 = vmatpush1.bf16.msra.mxu1 %v7130_v0  ;;  %v1357_v62 = vld [vmem:[#allocation8 + $0x728] sm:$0xff]  ;;  %v7184_v0 = vcombine.low %v1344_v46, %v1348_v47  ;;  %v7225_v47 = vcombine.high %v1384_v56, %v1388_v63 }
 0x1f4   :  { %4009 = vmatprep.subr.bf16.mxu0 %v7137_v3  ;;  %4173 = vmatprep.subr.bf16.mxu1 %v7139_v4  ;;  %v7186_v3 = vcombine.low %v1345_v48, %v1349_v50  ;;  %v7193_v4 = vcombine.high %v1352_v59, %v1356_v60  ;;  %v7195_v5 = vcombine.high %v1353_v61, %v1357_v62  ;;  %v1392_v50 = vld [vmem:[#allocation8 + $0x840] sm:$0xff] }
 0x1f7   :  { %4010 = vmatpush1.bf16.msra.mxu0 %v7136_v13  ;;  %4174 = vmatpush1.bf16.msra.mxu1 %v7138_v14  ;;  %v1365_v13 = vld [vmem:[#allocation8 + $0x768] sm:$0xff]  ;;  %v8832_v14 = vsub.s32 2, %v8792_v6 }
 0x1f8   :  { %4011 = vmatprep.subr.bf16.mxu0 %v7145_v15  ;;  %4175 = vmatprep.subr.bf16.mxu1 %v7147_v16  ;;  %v7192_v15 = vcombine.low %v1352_v59, %v1356_v60  ;;  %v7194_v16 = vcombine.low %v1353_v61, %v1357_v62  ;;  %v7203_v18 = vcombine.high %v1361_v12, %v1365_v13 }
 0x1f9   :  { %v7202_v30 = vcombine.low %v1361_v12, %v1365_v13  ;;  %v7224_v60 = vcombine.low %v1384_v56, %v1388_v63  ;;  %v1429_v56 = vld [vmem:[#allocation8 + $0x968] sm:$0xff] }
 0x1fb   :  { %4012 = vmatpush1.bf16.msra.mxu0 %v7144_v22  ;;  %4176 = vmatpush1.bf16.msra.mxu1 %v7146_v23  ;;  %v1369_v22 = vld [vmem:[#allocation8 + $0x788] sm:$0xff] }
 0x1fc   :  { %4013 = vmatprep.subr.bf16.mxu0 %v7153_v24  ;;  %4177 = vmatprep.subr.bf16.mxu1 %v7155_v28  ;;  %v1373_v23 = vld [vmem:[#allocation8 + $0x7a8] sm:$0xff]  ;;  %v321_v24 = vsub.s32 5, %v8792_v6  ;;  %v310_v28 = vrot.slane %v8797_v8, %v8832_v14 }
 0x1fd   :  { %v7211_v32 = vcombine.high %v1369_v22, %v1373_v23 }
 0x1fe   :  { %v322_v37 = vrot.slane %v8797_v8, %v321_v24  ;;  %v1024_v38 = vadd.f32 %v8825_v39, %v310_v28  ;;  %v1409_v28 = vld [vmem:[#allocation8 + $0x8c8] sm:$0xff] }
 0x1ff   :  { %4014 = vmatpush1.bf16.msra.mxu0 %v7152_v33  ;;  %4178 = vmatpush1.bf16.msra.mxu1 %v7154_v58  ;;  %v1376_v33 = vld [vmem:[#allocation8 + $0x7c0] sm:$0xff] }
 0x200   :  { %4015 = vmatprep.subr.bf16.mxu0 %v7161_v34  ;;  %4179 = vmatprep.subr.bf16.mxu1 %v7163_v35  ;;  %v1380_v58 = vld [vmem:[#allocation8 + $0x7e0] sm:$0xff]  ;;  %v1377_v34 = vld [vmem:[#allocation8 + $0x7c8] sm:$0xff] }
 0x201   :  { %v1381_v35 = vld [vmem:[#allocation8 + $0x7e8] sm:$0xff]  ;;  %v7216_v39 = vcombine.low %v1376_v33, %v1380_v58 }
 0x202   :  { %v7219_v55 = vcombine.high %v1377_v34, %v1381_v35  ;;  %v7218_v46 = vcombine.low %v1377_v34, %v1381_v35  ;;  %v1420_v34 = vld [vmem:[#allocation8 + $0x920] sm:$0xff]  ;;  %v1417_v35 = vld [vmem:[#allocation8 + $0x908] sm:$0xff] }
 0x203   :  { %4016 = vmatpush1.bf16.msra.mxu0 %v7160_v41  ;;  %4180 = vmatpush1.bf16.msra.mxu1 %v7162_v42  ;;  %v7208_v41 = vcombine.low %v1368_v19, %v1372_v21  ;;  %v7210_v42 = vcombine.low %v1369_v22, %v1373_v23  ;;  %v7243_v21 = vcombine.high %v1401_v10, %v1405_v11  ;;  %v1408_v22 = vld [vmem:[#allocation8 + $0x8c0] sm:$0xff] }
 0x204   :  { %4017 = vmatprep.subr.bf16.mxu0 %v7169_v20  ;;  %4181 = vmatprep.subr.bf16.mxu1 %v7171_v43  ;;  %v7217_v43 = vcombine.high %v1376_v33, %v1380_v58  ;;  %v1412_v23 = vld [vmem:[#allocation8 + $0x8e0] sm:$0xff] }
 0x205   :  { %v1416_v58 = vld [vmem:[#allocation8 + $0x900] sm:$0xff] }
 0x207   :  { %4018 = vmatpush1.bf16.msra.mxu0 %v7168_v1  ;;  %4182 = vmatpush1.bf16.msra.mxu1 %v7170_v2  ;;  %v1385_v1 = vld [vmem:[#allocation8 + $0x808] sm:$0xff] }
 0x208   :  { %4019 = vmatprep.subr.bf16.mxu0 %v7177_v44  ;;  %4183 = vmatprep.subr.bf16.mxu1 %v7179_v45  ;;  %v1389_v2 = vld [vmem:[#allocation8 + $0x828] sm:$0xff]  ;;  %v1114_v45 = vmax.f32 %v1024_v38, 0.0  ;;  %v7248_v38 = vcombine.low %v1408_v22, %v1412_v23 }
 0x209   :  { %v7227_v48 = vcombine.high %v1385_v1, %v1389_v2  ;;  %v7226_v61 = vcombine.low %v1385_v1, %v1389_v2 }
 0x20a   :  { %v8843_v59 = vpack.c.bf16 %v1114_v45, %v1114_v45  ;;  %v1436_v45 = vld [vmem:[#allocation8 + $0x9a0] sm:$0xff] }
 0x20b   :  { %4020 = vmatpush1.bf16.msra.mxu0 %v7176_v51  ;;  %4184 = vmatpush1.bf16.msra.mxu1 %v7178_v52  ;;  %v1396_v51 = vld [vmem:[#allocation8 + $0x860] sm:$0xff]  ;;  %v1393_v52 = vld [vmem:[#allocation8 + $0x848] sm:$0xff] }
 0x20c   :  { %4021 = vmatprep.subr.bf16.mxu0 %v7185_v53  ;;  %4185 = vmatprep.subr.bf16.mxu1 %v7187_v54  ;;  %v1397_v53 = vld [vmem:[#allocation8 + $0x868] sm:$0xff]  ;;  %v7233_v62 = vcombine.high %v1392_v50, %v1396_v51 }
 0x20f   :  { %4022 = vmatpush1.bf16.msra.mxu0 %v7184_v0  ;;  %4186 = vmatpush1.bf16.msra.mxu1 %v7186_v3  ;;  %v7235_v0 = vcombine.high %v1393_v52, %v1397_v53  ;;  %v1400_v3 = vld [vmem:[#allocation8 + $0x880] sm:$0xff] }
 0x210   :  { %4023 = vmatprep.subr.bf16.mxu0 %v7193_v4  ;;  %4187 = vmatprep.subr.bf16.mxu1 %v7195_v5  ;;  %v1404_v5 = vld [vmem:[#allocation8 + $0x8a0] sm:$0xff] }
 0x211   :  { %v7241_v19 = vcombine.high %v1400_v3, %v1404_v5 }
 0x213   :  { %4024 = vmatpush1.bf16.msra.mxu0 %v7192_v15  ;;  %4188 = vmatpush1.bf16.msra.mxu1 %v7194_v16  ;;  %v7232_v16 = vcombine.low %v1392_v50, %v1396_v51 }
 0x214   :  { %4025 = vmatprep.subr.bf16.mxu0 %v7201_v17  ;;  %4189 = vmatprep.subr.bf16.mxu1 %v7203_v18  ;;  %v7234_v17 = vcombine.low %v1393_v52, %v1397_v53  ;;  %v1440_v52 = vld [vmem:[#allocation8 + $0x9c0] sm:$0xff] }
 0x215   :  { %v8837_v36 = vpop.f32.mrb[4].mxu0  ;;  %v1444_v53 = vld [vmem:[#allocation8 + $0x9e0] sm:$0xff] }
 0x216   :  { %v1066_v40 = vpop.f32.mrb[5].mxu0 }
 0x217   :  { %4026 = vmatpush1.bf16.msra.mxu0 %v7200_v29  ;;  %4190 = vmatpush1.bf16.msra.mxu1 %v7202_v30  ;;  %v1068_v20 = vpop.f32.mrb[6].mxu0  ;;  %v1067_v44 = vadd.f32 %v1066_v40, %v322_v37  ;;  %v8845_v4 = vpop.f32.mrb[4].mxu1  ;;  %v1413_v29 = vld [vmem:[#allocation8 + $0x8e8] sm:$0xff]  ;;  %v7240_v30 = vcombine.low %v1400_v3, %v1404_v5  ;;  %v1448_v5 = vld [vmem:[#allocation8 + $0xa00] sm:$0xff] }
 0x218   :  { %4027 = vmatprep.subr.bf16.mxu0 %v7209_v31  ;;  %4191 = vmatprep.subr.bf16.mxu1 %v7211_v32  ;;  %v1069_v57 = vpop.f32.mrb[7].mxu0  ;;  %v8849_v13 = vpop.f32.mrb[5].mxu1  ;;  %v7242_v31 = vcombine.low %v1401_v10, %v1405_v11  ;;  %v7249_v32 = vcombine.high %v1408_v22, %v1412_v23  ;;  %v7251_v33 = vcombine.high %v1409_v28, %v1413_v29  ;;  %v1421_v37 = vld [vmem:[#allocation8 + $0x928] sm:$0xff]  ;;  %v1424_v20 = vld [vmem:[#allocation8 + $0x940] sm:$0xff] }
 0x219   :  { %v1117_v54 = vmax.f32 %v1067_v44, 0.0  ;;  %v1109_v15 = vpop.f32.mrb[6].mxu1  ;;  %v7250_v40 = vcombine.low %v1409_v28, %v1413_v29  ;;  %v7256_v57 = vcombine.low %v1416_v58, %v1420_v34  ;;  %v7258_v63 = vcombine.low %v1417_v35, %v1421_v37  ;;  %v1432_v44 = vld [vmem:[#allocation8 + $0x980] sm:$0xff]  ;;  %v1449_v11 = vld [vmem:[#allocation8 + $0xa08] sm:$0xff] }
 0x21a   :  { %v1110_v18 = vpop.f32.mrb[7].mxu1  ;;  %v7273_v50 = vcombine.high %v1432_v44, %v1436_v45  ;;  %v1452_v10 = vld [vmem:[#allocation8 + $0xa20] sm:$0xff]  ;;  %v1453_v15 = vld [vmem:[#allocation8 + $0xa28] sm:$0xff] }
 0x21b   :  { %4028 = vmatpush1.bf16.msra.mxu0 %v7208_v41  ;;  %4192 = vmatpush1.bf16.msra.mxu1 %v7210_v42  ;;  %v8847_v12 = vpack.c.bf16 %v1117_v54, %v1117_v54  ;;  %v7257_v41 = vcombine.high %v1416_v58, %v1420_v34  ;;  %v7259_v42 = vcombine.high %v1417_v35, %v1421_v37  ;;  %v1441_v54 = vld [vmem:[#allocation8 + $0x9c8] sm:$0xff]  ;;  %v1460_v22 = vld [vmem:[#allocation8 + $0xa60] sm:$0xff] }
 0x21c   :  { %4029 = vmatprep.subr.bf16.mxu0 %v7217_v43  ;;  %4193 = vmatprep.subr.bf16.mxu1 %v7219_v55  ;;  %v1428_v43 = vld [vmem:[#allocation8 + $0x960] sm:$0xff]  ;;  %v1425_v55 = vld [vmem:[#allocation8 + $0x948] sm:$0xff]  ;;  %v7289_v18 = vcombine.high %v1448_v5, %v1452_v10  ;;  %v7288_v29 = vcombine.low %v1448_v5, %v1452_v10 }
 0x21d   :  { %v7265_v1 = vcombine.high %v1424_v20, %v1428_v43  ;;  %v7267_v2 = vcombine.high %v1425_v55, %v1429_v56  ;;  %v1457_v23 = vld [vmem:[#allocation8 + $0xa48] sm:$0xff]  ;;  %v1468_v58 = vld [vmem:[#allocation8 + $0xaa0] sm:$0xff] }
 0x21e   :  { %v1461_v28 = vld [vmem:[#allocation8 + $0xa68] sm:$0xff]  ;;  %v1496_v5 = vld [vmem:[#allocation8 + $0xb80] sm:$0xff] }
 0x21f   :  { %4030 = vmatpush1.bf16.msra.mxu0 %v7216_v39  ;;  %4194 = vmatpush1.bf16.msra.mxu1 %v7218_v46  ;;  %v1433_v39 = vld [vmem:[#allocation8 + $0x988] sm:$0xff]  ;;  %v1500_v10 = vld [vmem:[#allocation8 + $0xba0] sm:$0xff] }
 0x220   :  { %4040 = vmatprep.subr.bf16.mxu0 %v7225_v47  ;;  %4204 = vmatprep.subr.bf16.mxu1 %v7227_v48  ;;  %v1437_v46 = vld [vmem:[#allocation8 + $0x9a8] sm:$0xff]  ;;  %v7264_v47 = vcombine.low %v1424_v20, %v1428_v43  ;;  %v7266_v48 = vcombine.low %v1425_v55, %v1429_v56  ;;  %v1476_v20 = vld [vmem:[#allocation8 + $0xae0] sm:$0xff] }
 0x221   :  { %v7275_v51 = vcombine.high %v1433_v39, %v1437_v46  ;;  %v1465_v34 = vld [vmem:[#allocation8 + $0xa88] sm:$0xff] }
 0x222   :  { %4032 = vmatmul.mubr.bf16.vlgmr.msra.gmra.mrb[8].mxu0 %v8843_v59  ;;  %4196 = vmatmul.mubr.bf16.vlgmr.msra.gmra.mrb[8].mxu1 %v8843_v59  ;;  %v1469_v35 = vld [vmem:[#allocation8 + $0xaa8] sm:$0xff] }
 0x223   :  { %4041 = vmatpush1.bf16.msra.mxu0 %v7224_v60  ;;  %4205 = vmatpush1.bf16.msra.mxu1 %v7226_v61  ;;  %v1445_v60 = vld [vmem:[#allocation8 + $0x9e8] sm:$0xff]  ;;  %v7272_v61 = vcombine.low %v1432_v44, %v1436_v45  ;;  %v1484_v44 = vld [vmem:[#allocation8 + $0xb20] sm:$0xff] }
 0x224   :  { %4042 = vmatprep.subr.bf16.mxu0 %v7233_v62  ;;  %4206 = vmatprep.subr.bf16.mxu1 %v7235_v0  ;;  %v7274_v62 = vcombine.low %v1433_v39, %v1437_v46  ;;  %v7281_v0 = vcombine.high %v1440_v52, %v1444_v53  ;;  %v7283_v3 = vcombine.high %v1441_v54, %v1445_v60  ;;  %v1473_v43 = vld [vmem:[#allocation8 + $0xac8] sm:$0xff] }
 0x225   :  { %4072 = vmatprep.mubr.bf16.mxu0 %v8847_v12  ;;  %4236 = vmatprep.mubr.bf16.mxu1 %v8847_v12  ;;  %v1477_v55 = vld [vmem:[#allocation8 + $0xae8] sm:$0xff] }
 0x226   :  { %v1481_v45 = vld [vmem:[#allocation8 + $0xb08] sm:$0xff] }
 0x227   :  { %4043 = vmatpush1.bf16.msra.mxu0 %v7232_v16  ;;  %4207 = vmatpush1.bf16.msra.mxu1 %v7234_v17  ;;  %v7280_v16 = vcombine.low %v1440_v52, %v1444_v53  ;;  %v7282_v17 = vcombine.low %v1441_v54, %v1445_v60  ;;  %v1485_v39 = vld [vmem:[#allocation8 + $0xb28] sm:$0xff]  ;;  %v1492_v52 = vld [vmem:[#allocation8 + $0xb60] sm:$0xff]  ;;  %v317_v60 = vsub.s32 4, %v8792_v6 }
 0x228   :  { %4044 = vmatprep.subr.bf16.mxu0 %v7241_v19  ;;  %4208 = vmatprep.subr.bf16.mxu1 %v7243_v21  ;;  %v7291_v19 = vcombine.high %v1449_v11, %v1453_v15  ;;  %v1456_v21 = vld [vmem:[#allocation8 + $0xa40] sm:$0xff]  ;;  %v1489_v53 = vld [vmem:[#allocation8 + $0xb48] sm:$0xff] }
 0x229   :  { %v7296_v37 = vcombine.low %v1456_v21, %v1460_v22  ;;  %v1493_v54 = vld [vmem:[#allocation8 + $0xb68] sm:$0xff] }
 0x22b   :  { %4045 = vmatpush1.bf16.msra.mxu0 %v7240_v30  ;;  %4209 = vmatpush1.bf16.msra.mxu1 %v7242_v31  ;;  %v7290_v30 = vcombine.low %v1449_v11, %v1453_v15  ;;  %v7297_v31 = vcombine.high %v1456_v21, %v1460_v22  ;;  %v1497_v11 = vld [vmem:[#allocation8 + $0xb88] sm:$0xff]  ;;  %v7337_v21 = vcombine.high %v1496_v5, %v1500_v10 }
 0x22c   :  { %4046 = vmatprep.subr.bf16.mxu0 %v7249_v32  ;;  %4210 = vmatprep.subr.bf16.mxu1 %v7251_v33  ;;  %v7299_v32 = vcombine.high %v1457_v23, %v1461_v28  ;;  %v1464_v33 = vld [vmem:[#allocation8 + $0xa80] sm:$0xff]  ;;  %v1501_v15 = vld [vmem:[#allocation8 + $0xba8] sm:$0xff] }
 0x22d   :  { %v7304_v56 = vcombine.low %v1464_v33, %v1468_v58  ;;  %v7339_v22 = vcombine.high %v1497_v11, %v1501_v15 }
 0x22f   :  { %4047 = vmatpush1.bf16.msra.mxu0 %v7248_v38  ;;  %4211 = vmatpush1.bf16.msra.mxu1 %v7250_v40  ;;  %v7298_v38 = vcombine.low %v1457_v23, %v1461_v28  ;;  %v7305_v40 = vcombine.high %v1464_v33, %v1468_v58  ;;  %v1504_v23 = vld [vmem:[#allocation8 + $0xbc0] sm:$0xff]  ;;  %v7336_v33 = vcombine.low %v1496_v5, %v1500_v10  ;;  %v1537_v5 = vld [vmem:[#allocation8 + $0xcc8] sm:$0xff] }
 0x230   :  { %4048 = vmatprep.subr.bf16.mxu0 %v7257_v41  ;;  %4212 = vmatprep.subr.bf16.mxu1 %v7259_v42  ;;  %v7307_v41 = vcombine.high %v1465_v34, %v1469_v35  ;;  %v1472_v42 = vld [vmem:[#allocation8 + $0xac0] sm:$0xff]  ;;  %v7338_v58 = vcombine.low %v1497_v11, %v1501_v15  ;;  %v1541_v10 = vld [vmem:[#allocation8 + $0xce8] sm:$0xff] }
 0x231   :  { %v7312_v46 = vcombine.low %v1472_v42, %v1476_v20  ;;  %v1508_v28 = vld [vmem:[#allocation8 + $0xbe0] sm:$0xff] }
 0x233   :  { %4049 = vmatpush1.bf16.msra.mxu0 %v7256_v57  ;;  %4213 = vmatpush1.bf16.msra.mxu1 %v7258_v63  ;;  %v7306_v57 = vcombine.low %v1465_v34, %v1469_v35  ;;  %v7313_v63 = vcombine.high %v1472_v42, %v1476_v20  ;;  %v7345_v34 = vcombine.high %v1504_v23, %v1508_v28 }
 0x234   :  { %4050 = vmatprep.subr.bf16.mxu0 %v7265_v1  ;;  %4214 = vmatprep.subr.bf16.mxu1 %v7267_v2  ;;  %v7315_v1 = vcombine.high %v1473_v43, %v1477_v55  ;;  %v1480_v2 = vld [vmem:[#allocation8 + $0xb00] sm:$0xff] }
 0x237   :  { %4051 = vmatpush1.bf16.msra.mxu0 %v7264_v47  ;;  %4215 = vmatpush1.bf16.msra.mxu1 %v7266_v48  ;;  %v7314_v47 = vcombine.low %v1473_v43, %v1477_v55  ;;  %v7321_v48 = vcombine.high %v1480_v2, %v1484_v44 }
 0x238   :  { %4052 = vmatprep.subr.bf16.mxu0 %v7273_v50  ;;  %4216 = vmatprep.subr.bf16.mxu1 %v7275_v51  ;;  %v7323_v50 = vcombine.high %v1481_v45, %v1485_v39  ;;  %v1488_v51 = vld [vmem:[#allocation8 + $0xb40] sm:$0xff] }
 0x23b   :  { %4053 = vmatpush1.bf16.msra.mxu0 %v7272_v61  ;;  %4217 = vmatpush1.bf16.msra.mxu1 %v7274_v62  ;;  %v7320_v61 = vcombine.low %v1480_v2, %v1484_v44  ;;  %v7322_v62 = vcombine.low %v1481_v45, %v1485_v39 }
 0x23c   :  { %4054 = vmatprep.subr.bf16.mxu0 %v7281_v0  ;;  %4218 = vmatprep.subr.bf16.mxu1 %v7283_v3  ;;  %v7329_v0 = vcombine.high %v1488_v51, %v1492_v52  ;;  %v7331_v3 = vcombine.high %v1489_v53, %v1493_v54 }
 0x23f   :  { %4055 = vmatpush1.bf16.msra.mxu0 %v7280_v16  ;;  %4219 = vmatpush1.bf16.msra.mxu1 %v7282_v17  ;;  %v329_v16 = vsub.s32 7, %v8792_v6  ;;  %v318_v17 = vrot.slane %v8797_v8, %v317_v60 }
 0x240   :  { %4056 = vmatprep.subr.bf16.mxu0 %v7289_v18  ;;  %4220 = vmatprep.subr.bf16.mxu1 %v7291_v19  ;;  %v7328_v18 = vcombine.low %v1488_v51, %v1492_v52  ;;  %v7330_v19 = vcombine.low %v1489_v53, %v1493_v54  ;;  %v1533_v51 = vld [vmem:[#allocation8 + $0xca8] sm:$0xff] }
 0x243   :  { %4057 = vmatpush1.bf16.msra.mxu0 %v7288_v29  ;;  %4221 = vmatpush1.bf16.msra.mxu1 %v7290_v30  ;;  %v1505_v29 = vld [vmem:[#allocation8 + $0xbc8] sm:$0xff] }
 0x244   :  { %4058 = vmatprep.subr.bf16.mxu0 %v7297_v31  ;;  %4222 = vmatprep.subr.bf16.mxu1 %v7299_v32  ;;  %v1509_v30 = vld [vmem:[#allocation8 + $0xbe8] sm:$0xff]  ;;  %v330_v31 = vrot.slane %v8797_v8, %v329_v16  ;;  %v1065_v32 = vadd.f32 %v8837_v36, %v318_v17  ;;  %v7344_v8 = vcombine.low %v1504_v23, %v1508_v28 }
 0x245   :  { %v7347_v35 = vcombine.high %v1505_v29, %v1509_v30  ;;  %v7346_v43 = vcombine.low %v1505_v29, %v1509_v30  ;;  %v1549_v23 = vld [vmem:[#allocation8 + $0xd28] sm:$0xff]  ;;  %v7378_v29 = vcombine.low %v1537_v5, %v1541_v10 }
 0x246   :  { %v1108_v42 = vadd.f32 %v8849_v13, %v330_v31  ;;  %v1116_v20 = vmax.f32 %v1065_v32, 0.0  ;;  %v1552_v32 = vld [vmem:[#allocation8 + $0xd40] sm:$0xff] }
 0x247   :  { %4059 = vmatpush1.bf16.msra.mxu0 %v7296_v37  ;;  %4223 = vmatpush1.bf16.msra.mxu1 %v7298_v38  ;;  %v1512_v37 = vld [vmem:[#allocation8 + $0xc00] sm:$0xff] }
 0x248   :  { %4060 = vmatprep.subr.bf16.mxu0 %v7305_v40  ;;  %4224 = vmatprep.subr.bf16.mxu1 %v7307_v41  ;;  %v1516_v38 = vld [vmem:[#allocation8 + $0xc20] sm:$0xff]  ;;  %v1513_v40 = vld [vmem:[#allocation8 + $0xc08] sm:$0xff]  ;;  %v1119_v2 = vmax.f32 %v1108_v42, 0.0  ;;  %v8865_v44 = vpack.c.bf16 %v1116_v20, %v1116_v20 }
 0x249   :  { %v1517_v41 = vld [vmem:[#allocation8 + $0xc28] sm:$0xff]  ;;  %v7353_v36 = vcombine.high %v1512_v37, %v1516_v38  ;;  %v7352_v45 = vcombine.low %v1512_v37, %v1516_v38  ;;  %v1564_v42 = vld [vmem:[#allocation8 + $0xda0] sm:$0xff] }
 0x24a   :  { %v7355_v55 = vcombine.high %v1513_v40, %v1517_v41  ;;  %v7354_v13 = vcombine.low %v1513_v40, %v1517_v41  ;;  %v8867_v52 = vpack.c.bf16 %v1119_v2, %v1119_v2  ;;  %v1560_v41 = vld [vmem:[#allocation8 + $0xd80] sm:$0xff]  ;;  %v1561_v20 = vld [vmem:[#allocation8 + $0xd88] sm:$0xff] }
 0x24b   :  { %4061 = vmatpush1.bf16.msra.mxu0 %v7304_v56  ;;  %4225 = vmatpush1.bf16.msra.mxu1 %v7306_v57  ;;  %v1520_v56 = vld [vmem:[#allocation8 + $0xc40] sm:$0xff]  ;;  %v1573_v2 = vld [vmem:[#allocation8 + $0xde8] sm:$0xff] }
 0x24c   :  { %4062 = vmatprep.subr.bf16.mxu0 %v7313_v63  ;;  %4226 = vmatprep.subr.bf16.mxu1 %v7315_v1  ;;  %v1524_v57 = vld [vmem:[#allocation8 + $0xc60] sm:$0xff]  ;;  %v1521_v63 = vld [vmem:[#allocation8 + $0xc48] sm:$0xff] }
 0x24d   :  { %v1525_v1 = vld [vmem:[#allocation8 + $0xc68] sm:$0xff]  ;;  %v7361_v39 = vcombine.high %v1520_v56, %v1524_v57  ;;  %v7360_v53 = vcombine.low %v1520_v56, %v1524_v57  ;;  %v1568_v57 = vld [vmem:[#allocation8 + $0xdc0] sm:$0xff] }
 0x24e   :  { %v7362_v54 = vcombine.low %v1521_v63, %v1525_v1 }
 0x24f   :  { %4063 = vmatpush1.bf16.msra.mxu0 %v7312_v46  ;;  %4227 = vmatpush1.bf16.msra.mxu1 %v7314_v47  ;;  %v7363_v46 = vcombine.high %v1521_v63, %v1525_v1  ;;  %v1528_v47 = vld [vmem:[#allocation8 + $0xc80] sm:$0xff]  ;;  %v1569_v1 = vld [vmem:[#allocation8 + $0xdc8] sm:$0xff] }
 0x250   :  { %4064 = vmatprep.subr.bf16.mxu0 %v7321_v48  ;;  %4228 = vmatprep.subr.bf16.mxu1 %v7323_v50  ;;  %v1532_v48 = vld [vmem:[#allocation8 + $0xca0] sm:$0xff]  ;;  %v1529_v50 = vld [vmem:[#allocation8 + $0xc88] sm:$0xff] }
 0x251   :  { %v7368_v11 = vcombine.low %v1528_v47, %v1532_v48  ;;  %v7370_v15 = vcombine.low %v1529_v50, %v1533_v51  ;;  %v1572_v63 = vld [vmem:[#allocation8 + $0xde0] sm:$0xff] }
 0x253   :  { %4065 = vmatpush1.bf16.msra.mxu0 %v7320_v61  ;;  %4229 = vmatpush1.bf16.msra.mxu1 %v7322_v62  ;;  %v7369_v61 = vcombine.high %v1528_v47, %v1532_v48  ;;  %v7371_v62 = vcombine.high %v1529_v50, %v1533_v51  ;;  %v7411_v47 = vcombine.high %v1569_v1, %v1573_v2  ;;  %v1576_v48 = vld [vmem:[#allocation8 + $0xe00] sm:$0xff]  ;;  %v1577_v51 = vld [vmem:[#allocation8 + $0xe08] sm:$0xff] }
 0x254   :  { %4066 = vmatprep.subr.bf16.mxu0 %v7329_v0  ;;  %4230 = vmatprep.subr.bf16.mxu1 %v7331_v3  ;;  %v1536_v0 = vld [vmem:[#allocation8 + $0xcc0] sm:$0xff] }
 0x255   :  { %v1540_v3 = vld [vmem:[#allocation8 + $0xce0] sm:$0xff] }
 0x256   :  { %v7377_v17 = vcombine.high %v1536_v0, %v1540_v3  ;;  %v7376_v28 = vcombine.low %v1536_v0, %v1540_v3  ;;  %v1580_v50 = vld [vmem:[#allocation8 + $0xe20] sm:$0xff]  ;;  %v7410_v0 = vcombine.low %v1569_v1, %v1573_v2 }
 0x257   :  { %4067 = vmatpush1.bf16.msra.mxu0 %v7328_v18  ;;  %4231 = vmatpush1.bf16.msra.mxu1 %v7330_v19  ;;  %v7379_v18 = vcombine.high %v1537_v5, %v1541_v10  ;;  %v1544_v19 = vld [vmem:[#allocation8 + $0xd00] sm:$0xff]  ;;  %v7417_v3 = vcombine.high %v1576_v48, %v1580_v50 }
 0x258   :  { %4068 = vmatprep.subr.bf16.mxu0 %v7337_v21  ;;  %4232 = vmatprep.subr.bf16.mxu1 %v7339_v22  ;;  %v1548_v21 = vld [vmem:[#allocation8 + $0xd20] sm:$0xff]  ;;  %v1545_v22 = vld [vmem:[#allocation8 + $0xd08] sm:$0xff] }
 0x259   :  { %v7385_v30 = vcombine.high %v1544_v19, %v1548_v21  ;;  %v7387_v31 = vcombine.high %v1545_v22, %v1549_v23  ;;  %v7386_v37 = vcombine.low %v1545_v22, %v1549_v23  ;;  %v1584_v10 = vld [vmem:[#allocation8 + $0xe40] sm:$0xff] }
 0x25b   :  { %4069 = vmatpush1.bf16.msra.mxu0 %v7336_v33  ;;  %4233 = vmatpush1.bf16.msra.mxu1 %v7338_v58  ;;  %v1556_v33 = vld [vmem:[#allocation8 + $0xd60] sm:$0xff]  ;;  %v1553_v58 = vld [vmem:[#allocation8 + $0xd48] sm:$0xff] }
 0x25c   :  { %4070 = vmatprep.subr.bf16.mxu0 %v7345_v34  ;;  %4234 = vmatprep.subr.bf16.mxu1 %v7347_v35  ;;  %v1557_v34 = vld [vmem:[#allocation8 + $0xd68] sm:$0xff]  ;;  %v7384_v35 = vcombine.low %v1544_v19, %v1548_v21  ;;  %v7393_v38 = vcombine.high %v1552_v32, %v1556_v33  ;;  %v7416_v19 = vcombine.low %v1576_v48, %v1580_v50  ;;  %v1159_v48 = vld [vmem:[#allocation8 + $0xf8] sm:$0xff] }
 0x25d   :  { %v7395_v40 = vcombine.high %v1553_v58, %v1557_v34 }
 0x25f   :  { %4071 = vmatpush1.bf16.msra.mxu0 %v7344_v8  ;;  %4235 = vmatpush1.bf16.msra.mxu1 %v7346_v43  ;;  %v1565_v8 = vld [vmem:[#allocation8 + $0xda8] sm:$0xff]  ;;  %v7392_v43 = vcombine.low %v1552_v32, %v1556_v33 }
 0x260   :  { %4081 = vmatprep.subr.bf16.mxu0 %v7353_v36  ;;  %4245 = vmatprep.subr.bf16.mxu1 %v7355_v55  ;;  %v7394_v36 = vcombine.low %v1553_v58, %v1557_v34  ;;  %v7401_v55 = vcombine.high %v1560_v41, %v1564_v42  ;;  %v7403_v56 = vcombine.high %v1561_v20, %v1565_v8 }
 0x262   :  { %4073 = vmatmul.mubr.bf16.vlgmr.msra.gmra.mrb[8].mxu0 %v8865_v44  ;;  %4237 = vmatmul.mubr.bf16.vlgmr.msra.gmra.mrb[8].mxu1 %v8865_v44 }
 0x263   :  { %4082 = vmatpush1.bf16.msra.mxu0 %v7352_v45  ;;  %4246 = vmatpush1.bf16.msra.mxu1 %v7354_v13  ;;  %v325_v45 = vsub.s32 6, %v8792_v6  ;;  %v7400_v13 = vcombine.low %v1560_v41, %v1564_v42  ;;  %v1143_v41 = vld [vmem:[#allocation8 + $0x78] sm:$0xff] }
 0x264   :  { %4083 = vmatprep.subr.bf16.mxu0 %v7361_v39  ;;  %4247 = vmatprep.subr.bf16.mxu1 %v7363_v46  ;;  %v7402_v39 = vcombine.low %v1561_v20, %v1565_v8  ;;  %v7409_v46 = vcombine.high %v1568_v57, %v1572_v63 }
 0x265   :  { %7432 = vmatprep.mubr.msk.bf16.mxu0 %vm3954_vm2, %v8867_v52  ;;  %7433 = vmatprep.mubr.msk.bf16.mxu1 %vm3954_vm2, %v8867_v52 }
 0x267   :  { %4084 = vmatpush1.bf16.msra.mxu0 %v7360_v53  ;;  %4248 = vmatpush1.bf16.msra.mxu1 %v7362_v54  ;;  %v1581_v53 = vld [vmem:[#allocation8 + $0xe28] sm:$0xff]  ;;  %v8259_v54 = vld [vmem:[#allocation7] sm:$0xff] }
 0x268   :  { %4085 = vmatprep.subr.bf16.mxu0 %v7369_v61  ;;  %4249 = vmatprep.subr.bf16.mxu1 %v7371_v62  ;;  %v326_v61 = vrot.slane %v8259_v54, %v325_v45  ;;  %v7408_v62 = vcombine.low %v1568_v57, %v1572_v63  ;;  %v7419_v5 = vcombine.high %v1577_v51, %v1581_v53  ;;  %v1151_v57 = vld [vmem:[#allocation8 + $0xb8] sm:$0xff] }
 0x269   :  { %v7418_v21 = vcombine.low %v1577_v51, %v1581_v53 }
 0x26b   :  { %4086 = vmatpush1.bf16.msra.mxu0 %v7368_v11  ;;  %4250 = vmatpush1.bf16.msra.mxu1 %v7370_v15  ;;  %v1588_v11 = vld [vmem:[#allocation8 + $0xe60] sm:$0xff]  ;;  %v1585_v15 = vld [vmem:[#allocation8 + $0xe48] sm:$0xff] }
 0x26c   :  { %4087 = vmatprep.subr.bf16.mxu0 %v7377_v17  ;;  %4251 = vmatprep.subr.bf16.mxu1 %v7379_v18  ;;  %v1589_v17 = vld [vmem:[#allocation8 + $0xe68] sm:$0xff]  ;;  %v1106_v18 = vadd.f32 %v8845_v4, %v326_v61  ;;  %v7425_v22 = vcombine.high %v1584_v10, %v1588_v11  ;;  %v7424_v33 = vcombine.low %v1584_v10, %v1588_v11  ;;  %v1162_v61 = vld [vmem:[#allocation8 + $0x110] sm:$0xff] }
 0x26d   :  { %v7427_v23 = vcombine.high %v1585_v15, %v1589_v17  ;;  %v7426_v58 = vcombine.low %v1585_v15, %v1589_v17  ;;  %v1170_v15 = vld [vmem:[#allocation8 + $0x150] sm:$0xff] }
 0x26e   :  { %v1118_v32 = vmax.f32 %v1106_v18, 0.0  ;;  %v1174_v17 = vld [vmem:[#allocation8 + $0x170] sm:$0xff]  ;;  %v1171_v18 = vld [vmem:[#allocation8 + $0x158] sm:$0xff] }
 0x26f   :  { %4088 = vmatpush1.bf16.msra.mxu0 %v7376_v28  ;;  %4252 = vmatpush1.bf16.msra.mxu1 %v7378_v29  ;;  %v1130_v28 = vld [vmem:[#allocation8 + $0x10] sm:$0xff] }
 0x270   :  { %4089 = vmatprep.subr.bf16.mxu0 %v7385_v30  ;;  %4253 = vmatprep.subr.bf16.mxu1 %v7387_v31  ;;  %v1134_v29 = vld [vmem:[#allocation8 + $0x30] sm:$0xff]  ;;  %v1131_v30 = vld [vmem:[#allocation8 + $0x18] sm:$0xff] }
 0x271   :  { %v1135_v31 = vld [vmem:[#allocation8 + $0x38] sm:$0xff]  ;;  %v6973_v4 = vcombine.high %v1130_v28, %v1134_v29  ;;  %v6972_v42 = vcombine.low %v1130_v28, %v1134_v29  ;;  %v1178_v29 = vld [vmem:[#allocation8 + $0x190] sm:$0xff] }
 0x272   :  { %v6975_v34 = vcombine.high %v1131_v30, %v1135_v31  ;;  %v6974_v20 = vcombine.low %v1131_v30, %v1135_v31  ;;  %v1182_v30 = vld [vmem:[#allocation8 + $0x1b0] sm:$0xff]  ;;  %v1179_v31 = vld [vmem:[#allocation8 + $0x198] sm:$0xff] }
 0x273   :  { %4090 = vmatpush1.bf16.msra.mxu0 %v7384_v35  ;;  %4254 = vmatpush1.bf16.msra.mxu1 %v7386_v37  ;;  %v1138_v35 = vld [vmem:[#allocation8 + $0x50] sm:$0xff]  ;;  %v8879_v37 = vpack.c.bf16 %v1118_v32, %v1118_v32  ;;  %v1183_v32 = vld [vmem:[#allocation8 + $0x1b8] sm:$0xff] }
 0x274   :  { %4091 = vmatprep.subr.bf16.mxu0 %v7393_v38  ;;  %4255 = vmatprep.subr.bf16.mxu1 %v7395_v40  ;;  %v1142_v38 = vld [vmem:[#allocation8 + $0x70] sm:$0xff]  ;;  %v1139_v40 = vld [vmem:[#allocation8 + $0x58] sm:$0xff] }
 0x275   :  { %v6981_v8 = vcombine.high %v1138_v35, %v1142_v38  ;;  %v6980_v63 = vcombine.low %v1138_v35, %v1142_v38  ;;  %v6982_v1 = vcombine.low %v1139_v40, %v1143_v41  ;;  %v1186_v35 = vld [vmem:[#allocation8 + $0x1d0] sm:$0xff] }
 0x276   :  { %v1190_v38 = vld [vmem:[#allocation8 + $0x1f0] sm:$0xff] }
 0x277   :  { %4092 = vmatpush1.bf16.msra.mxu0 %v7392_v43  ;;  %4256 = vmatpush1.bf16.msra.mxu1 %v7394_v36  ;;  %v6983_v43 = vcombine.high %v1139_v40, %v1143_v41  ;;  %v1146_v36 = vld [vmem:[#allocation8 + $0x90] sm:$0xff]  ;;  %v1187_v40 = vld [vmem:[#allocation8 + $0x1d8] sm:$0xff] }
 0x278   :  { %4093 = vmatprep.subr.bf16.mxu0 %v7401_v55  ;;  %4257 = vmatprep.subr.bf16.mxu1 %v7403_v56  ;;  %v1150_v55 = vld [vmem:[#allocation8 + $0xb0] sm:$0xff]  ;;  %v1147_v56 = vld [vmem:[#allocation8 + $0x98] sm:$0xff] }
 0x279   :  { %v6989_v2 = vcombine.high %v1146_v36, %v1150_v55  ;;  %v6988_v50 = vcombine.low %v1146_v36, %v1150_v55  ;;  %v6990_v51 = vcombine.low %v1147_v56, %v1151_v57  ;;  %v1191_v41 = vld [vmem:[#allocation8 + $0x1f8] sm:$0xff]  ;;  %v1194_v36 = vld [vmem:[#allocation8 + $0x210] sm:$0xff] }
 0x27a   :  { %v1198_v55 = vld [vmem:[#allocation8 + $0x230] sm:$0xff] }
 0x27b   :  { %4094 = vmatpush1.bf16.msra.mxu0 %v7400_v13  ;;  %4258 = vmatpush1.bf16.msra.mxu1 %v7402_v39  ;;  %v6991_v13 = vcombine.high %v1147_v56, %v1151_v57  ;;  %v1154_v39 = vld [vmem:[#allocation8 + $0xd0] sm:$0xff]  ;;  %v1195_v56 = vld [vmem:[#allocation8 + $0x218] sm:$0xff] }
 0x27c   :  { %4095 = vmatprep.subr.bf16.mxu0 %v7409_v46  ;;  %4259 = vmatprep.subr.bf16.mxu1 %v7411_v47  ;;  %v1158_v46 = vld [vmem:[#allocation8 + $0xf0] sm:$0xff]  ;;  %v1155_v47 = vld [vmem:[#allocation8 + $0xd8] sm:$0xff] }
 0x27d   :  { %v6997_v53 = vcombine.high %v1154_v39, %v1158_v46  ;;  %v6999_v54 = vcombine.high %v1155_v47, %v1159_v48  ;;  %v1199_v57 = vld [vmem:[#allocation8 + $0x238] sm:$0xff] }
 0x27f   :  { %4096 = vmatpush1.bf16.msra.mxu0 %v7408_v62  ;;  %4260 = vmatpush1.bf16.msra.mxu1 %v7410_v0  ;;  %v1166_v62 = vld [vmem:[#allocation8 + $0x130] sm:$0xff]  ;;  %v1167_v0 = vld [vmem:[#allocation8 + $0x138] sm:$0xff] }
 0x280   :  { %4097 = vmatprep.subr.bf16.mxu0 %v7417_v3  ;;  %4261 = vmatprep.subr.bf16.mxu1 %v7419_v5  ;;  %v6996_v3 = vcombine.low %v1154_v39, %v1158_v46  ;;  %v6998_v5 = vcombine.low %v1155_v47, %v1159_v48  ;;  %v7005_v10 = vcombine.high %v1162_v61, %v1166_v62  ;;  %v1202_v39 = vld [vmem:[#allocation8 + $0x250] sm:$0xff]  ;;  %v1203_v47 = vld [vmem:[#allocation8 + $0x258] sm:$0xff] }
 0x281   :  { %v1206_v46 = vld [vmem:[#allocation8 + $0x270] sm:$0xff]  ;;  %v1207_v48 = vld [vmem:[#allocation8 + $0x278] sm:$0xff] }
 0x283   :  { %4098 = vmatpush1.bf16.msra.mxu0 %v7416_v19  ;;  %4262 = vmatpush1.bf16.msra.mxu1 %v7418_v21  ;;  %v1175_v19 = vld [vmem:[#allocation8 + $0x178] sm:$0xff]  ;;  %v7004_v21 = vcombine.low %v1162_v61, %v1166_v62  ;;  %v1210_v61 = vld [vmem:[#allocation8 + $0x290] sm:$0xff] }
 0x284   :  { %4099 = vmatprep.subr.bf16.mxu0 %v7425_v22  ;;  %4263 = vmatprep.subr.bf16.mxu1 %v7427_v23  ;;  %v7013_v23 = vcombine.high %v1170_v15, %v1174_v17  ;;  %v7015_v28 = vcombine.high %v1171_v18, %v1175_v19  ;;  %v1214_v62 = vld [vmem:[#allocation8 + $0x2b0] sm:$0xff] }
 0x287   :  { %4100 = vmatpush1.bf16.msra.mxu0 %v7424_v33  ;;  %4264 = vmatpush1.bf16.msra.mxu1 %v7426_v58  ;;  %v7012_v33 = vcombine.low %v1170_v15, %v1174_v17  ;;  %v7014_v58 = vcombine.low %v1171_v18, %v1175_v19  ;;  %v1218_v15 = vld [vmem:[#allocation8 + $0x2d0] sm:$0xff]  ;;  %v1219_v18 = vld [vmem:[#allocation8 + $0x2d8] sm:$0xff] }
 0x288   :  { %4286 = vmatprep.subr.bf16.mxu0 %v6973_v4  ;;  %4450 = vmatprep.subr.bf16.mxu1 %v6975_v34  ;;  %v7021_v4 = vcombine.high %v1178_v29, %v1182_v30  ;;  %v7023_v34 = vcombine.high %v1179_v31, %v1183_v32  ;;  %v1222_v17 = vld [vmem:[#allocation8 + $0x2f0] sm:$0xff]  ;;  %v1223_v19 = vld [vmem:[#allocation8 + $0x2f8] sm:$0xff] }
 0x28a   :  { %4114 = vmatmul.mubr.bf16.vlgmr.msra.gmra.mrb[8].mxu0 %v8879_v37  ;;  %4278 = vmatmul.mubr.bf16.vlgmr.msra.gmra.mrb[8].mxu1 %v8879_v37 }
 0x28b   :  { %4287 = vmatpush1.bf16.msra.mxu0 %v6972_v42  ;;  %4318 = vmatprep.mubr.bf16.mxu0 %v8809_v26  ;;  %v7020_v42 = vcombine.low %v1178_v29, %v1182_v30  ;;  %v1226_v29 = vld [vmem:[#allocation8 + $0x310] sm:$0xff] }
 0x28c   :  { %4451 = vmatpush1.bf16.msra.mxu1 %v6974_v20  ;;  %4482 = vmatprep.mubr.bf16.mxu1 %v8809_v26  ;;  %v1163_v26 = vld [vmem:[#allocation8 + $0x118] sm:$0xff]  ;;  %v7022_v20 = vcombine.low %v1179_v31, %v1183_v32  ;;  %v1230_v30 = vld [vmem:[#allocation8 + $0x330] sm:$0xff] }
 0x28d   :  { %4288 = vmatprep.subr.bf16.mxu0 %v6981_v8  ;;  %4452 = vmatprep.subr.bf16.mxu1 %v6983_v43  ;;  %v7007_v11 = vcombine.high %v1163_v26, %v1167_v0  ;;  %v7006_v22 = vcombine.low %v1163_v26, %v1167_v0  ;;  %v7029_v8 = vcombine.high %v1186_v35, %v1190_v38  ;;  %v1211_v26 = vld [vmem:[#allocation8 + $0x298] sm:$0xff] }
 0x28e   :  { %v7031_v43 = vcombine.high %v1187_v40, %v1191_v41  ;;  %v1215_v0 = vld [vmem:[#allocation8 + $0x2b8] sm:$0xff] }
 0x28f   :  { %4289 = vmatpush1.bf16.msra.mxu0 %v6980_v63  ;;  %v7028_v63 = vcombine.low %v1186_v35, %v1190_v38  ;;  %v1227_v31 = vld [vmem:[#allocation8 + $0x318] sm:$0xff]  ;;  %v1234_v35 = vld [vmem:[#allocation8 + $0x350] sm:$0xff] }
 0x290   :  { %4453 = vmatpush1.bf16.msra.mxu1 %v6982_v1  ;;  %4290 = vmatprep.subr.bf16.mxu0 %v6989_v2  ;;  %v7030_v1 = vcombine.low %v1187_v40, %v1191_v41  ;;  %v7037_v2 = vcombine.high %v1194_v36, %v1198_v55  ;;  %v1231_v32 = vld [vmem:[#allocation8 + $0x338] sm:$0xff]  ;;  %v1238_v38 = vld [vmem:[#allocation8 + $0x370] sm:$0xff] }
 0x291   :  { %4454 = vmatprep.subr.bf16.mxu1 %v6991_v13  ;;  %v7039_v13 = vcombine.high %v1195_v56, %v1199_v57  ;;  %v1235_v40 = vld [vmem:[#allocation8 + $0x358] sm:$0xff] }
 0x292   :  { %v1239_v41 = vld [vmem:[#allocation8 + $0x378] sm:$0xff] }
 0x293   :  { %4291 = vmatpush1.bf16.msra.mxu0 %v6988_v50  ;;  %v7036_v50 = vcombine.low %v1194_v36, %v1198_v55  ;;  %v1242_v36 = vld [vmem:[#allocation8 + $0x390] sm:$0xff] }
 0x294   :  { %4455 = vmatpush1.bf16.msra.mxu1 %v6990_v51  ;;  %4292 = vmatprep.subr.bf16.mxu0 %v6997_v53  ;;  %v7038_v51 = vcombine.low %v1195_v56, %v1199_v57  ;;  %v7045_v53 = vcombine.high %v1202_v39, %v1206_v46  ;;  %v1246_v55 = vld [vmem:[#allocation8 + $0x3b0] sm:$0xff]  ;;  %v1243_v56 = vld [vmem:[#allocation8 + $0x398] sm:$0xff] }
 0x295   :  { %4456 = vmatprep.subr.bf16.mxu1 %v6999_v54  ;;  %v7047_v54 = vcombine.high %v1203_v47, %v1207_v48  ;;  %v1247_v57 = vld [vmem:[#allocation8 + $0x3b8] sm:$0xff] }
 0x297   :  { %4293 = vmatpush1.bf16.msra.mxu0 %v6996_v3  ;;  %v7044_v3 = vcombine.low %v1202_v39, %v1206_v46  ;;  %v1250_v39 = vld [vmem:[#allocation8 + $0x3d0] sm:$0xff] }
 0x298   :  { %4457 = vmatpush1.bf16.msra.mxu1 %v6998_v5  ;;  %4294 = vmatprep.subr.bf16.mxu0 %v7005_v10  ;;  %v7046_v5 = vcombine.low %v1203_v47, %v1207_v48  ;;  %v7053_v10 = vcombine.high %v1210_v61, %v1214_v62  ;;  %v1254_v46 = vld [vmem:[#allocation8 + $0x3f0] sm:$0xff]  ;;  %v1251_v47 = vld [vmem:[#allocation8 + $0x3d8] sm:$0xff] }
 0x299   :  { %4458 = vmatprep.subr.bf16.mxu1 %v7007_v11  ;;  %v7055_v11 = vcombine.high %v1211_v26, %v1215_v0  ;;  %v1255_v48 = vld [vmem:[#allocation8 + $0x3f8] sm:$0xff] }
 0x29b   :  { %4295 = vmatpush1.bf16.msra.mxu0 %v7004_v21  ;;  %v7052_v21 = vcombine.low %v1210_v61, %v1214_v62  ;;  %v1258_v61 = vld [vmem:[#allocation8 + $0x410] sm:$0xff] }
 0x29c   :  { %4459 = vmatpush1.bf16.msra.mxu1 %v7006_v22  ;;  %4296 = vmatprep.subr.bf16.mxu0 %v7013_v23  ;;  %v7054_v22 = vcombine.low %v1211_v26, %v1215_v0  ;;  %v7061_v23 = vcombine.high %v1218_v15, %v1222_v17  ;;  %v1262_v62 = vld [vmem:[#allocation8 + $0x430] sm:$0xff]  ;;  %v1259_v26 = vld [vmem:[#allocation8 + $0x418] sm:$0xff] }
 0x29d   :  { %4460 = vmatprep.subr.bf16.mxu1 %v7015_v28  ;;  %v7063_v28 = vcombine.high %v1219_v18, %v1223_v19  ;;  %v1263_v0 = vld [vmem:[#allocation8 + $0x438] sm:$0xff] }
 0x29f   :  { %4297 = vmatpush1.bf16.msra.mxu0 %v7012_v33  ;;  %v7060_v33 = vcombine.low %v1218_v15, %v1222_v17  ;;  %v1266_v15 = vld [vmem:[#allocation8 + $0x450] sm:$0xff] }
 0x2a0   :  { %4461 = vmatpush1.bf16.msra.mxu1 %v7014_v58  ;;  %4298 = vmatprep.subr.bf16.mxu0 %v7021_v4  ;;  %v7062_v58 = vcombine.low %v1219_v18, %v1223_v19  ;;  %v7069_v4 = vcombine.high %v1226_v29, %v1230_v30  ;;  %v1270_v17 = vld [vmem:[#allocation8 + $0x470] sm:$0xff]  ;;  %v7100_v18 = vcombine.low %v1258_v61, %v1262_v62  ;;  %v1267_v19 = vld [vmem:[#allocation8 + $0x458] sm:$0xff] }
 0x2a1   :  { %4462 = vmatprep.subr.bf16.mxu1 %v7023_v34  ;;  %v7071_v34 = vcombine.high %v1227_v31, %v1231_v32 }
 0x2a3   :  { %4299 = vmatpush1.bf16.msra.mxu0 %v7020_v42  ;;  %v7068_v42 = vcombine.low %v1226_v29, %v1230_v30  ;;  %v1278_v29 = vld [vmem:[#allocation8 + $0x4b0] sm:$0xff] }
 0x2a4   :  { %4463 = vmatpush1.bf16.msra.mxu1 %v7022_v20  ;;  %4300 = vmatprep.subr.bf16.mxu0 %v7029_v8  ;;  %v7070_v20 = vcombine.low %v1227_v31, %v1231_v32  ;;  %v7077_v8 = vcombine.high %v1234_v35, %v1238_v38  ;;  %v1275_v31 = vld [vmem:[#allocation8 + $0x498] sm:$0xff] }
 0x2a5   :  { %4464 = vmatprep.subr.bf16.mxu1 %v7031_v43  ;;  %v7079_v43 = vcombine.high %v1235_v40, %v1239_v41  ;;  %v1279_v32 = vld [vmem:[#allocation8 + $0x4b8] sm:$0xff] }
 0x2a7   :  { %4301 = vmatpush1.bf16.msra.mxu0 %v7028_v63  ;;  %v7076_v63 = vcombine.low %v1234_v35, %v1238_v38  ;;  %v1282_v35 = vld [vmem:[#allocation8 + $0x4d0] sm:$0xff] }
 0x2a8   :  { %4465 = vmatpush1.bf16.msra.mxu1 %v7030_v1  ;;  %4302 = vmatprep.subr.bf16.mxu0 %v7037_v2  ;;  %v7078_v1 = vcombine.low %v1235_v40, %v1239_v41  ;;  %v7085_v2 = vcombine.high %v1242_v36, %v1246_v55  ;;  %v1286_v38 = vld [vmem:[#allocation8 + $0x4f0] sm:$0xff]  ;;  %v1283_v40 = vld [vmem:[#allocation8 + $0x4d8] sm:$0xff] }
 0x2a9   :  { %4466 = vmatprep.subr.bf16.mxu1 %v7039_v13  ;;  %v7087_v13 = vcombine.high %v1243_v56, %v1247_v57  ;;  %v1287_v41 = vld [vmem:[#allocation8 + $0x4f8] sm:$0xff] }
 0x2ab   :  { %4303 = vmatpush1.bf16.msra.mxu0 %v7036_v50  ;;  %v7084_v50 = vcombine.low %v1242_v36, %v1246_v55  ;;  %v1294_v36 = vld [vmem:[#allocation8 + $0x530] sm:$0xff]  ;;  %v1291_v55 = vld [vmem:[#allocation8 + $0x518] sm:$0xff] }
 0x2ac   :  { %4467 = vmatpush1.bf16.msra.mxu1 %v7038_v51  ;;  %4304 = vmatprep.subr.bf16.mxu0 %v7045_v53  ;;  %v7086_v51 = vcombine.low %v1243_v56, %v1247_v57  ;;  %v7093_v53 = vcombine.high %v1250_v39, %v1254_v46  ;;  %v1295_v56 = vld [vmem:[#allocation8 + $0x538] sm:$0xff]  ;;  %v7126_v57 = vcombine.low %v1283_v40, %v1287_v41 }
 0x2ad   :  { %4468 = vmatprep.subr.bf16.mxu1 %v7047_v54  ;;  %v7095_v54 = vcombine.high %v1251_v47, %v1255_v48 }
 0x2af   :  { %4305 = vmatpush1.bf16.msra.mxu0 %v7044_v3  ;;  %v7092_v3 = vcombine.low %v1250_v39, %v1254_v46  ;;  %v1299_v39 = vld [vmem:[#allocation8 + $0x558] sm:$0xff] }
 0x2b0   :  { %4469 = vmatpush1.bf16.msra.mxu1 %v7046_v5  ;;  %4306 = vmatprep.subr.bf16.mxu0 %v7053_v10  ;;  %v7094_v5 = vcombine.low %v1251_v47, %v1255_v48  ;;  %v7101_v10 = vcombine.high %v1258_v61, %v1262_v62  ;;  %v1303_v46 = vld [vmem:[#allocation8 + $0x578] sm:$0xff]  ;;  %v7134_v48 = vcombine.low %v1291_v55, %v1295_v56 }
 0x2b1   :  { %4470 = vmatprep.subr.bf16.mxu1 %v7055_v11  ;;  %v7103_v11 = vcombine.high %v1259_v26, %v1263_v0  ;;  %v1307_v61 = vld [vmem:[#allocation8 + $0x598] sm:$0xff] }
 0x2b2   :  { %v1311_v62 = vld [vmem:[#allocation8 + $0x5b8] sm:$0xff] }
 0x2b3   :  { %4307 = vmatpush1.bf16.msra.mxu0 %v7052_v21  ;;  %v1271_v21 = vld [vmem:[#allocation8 + $0x478] sm:$0xff] }
 0x2b4   :  { %4471 = vmatpush1.bf16.msra.mxu1 %v7054_v22  ;;  %4308 = vmatprep.subr.bf16.mxu0 %v7061_v23  ;;  %v7102_v22 = vcombine.low %v1259_v26, %v1263_v0  ;;  %v7109_v23 = vcombine.high %v1266_v15, %v1270_v17  ;;  %v7111_v30 = vcombine.high %v1267_v19, %v1271_v21 }
 0x2b5   :  { %4472 = vmatprep.subr.bf16.mxu1 %v7063_v28  ;;  %v1274_v28 = vld [vmem:[#allocation8 + $0x490] sm:$0xff]  ;;  %v7142_v0 = vcombine.low %v1299_v39, %v1303_v46 }
 0x2b7   :  { %4309 = vmatpush1.bf16.msra.mxu0 %v7060_v33  ;;  %v7108_v33 = vcombine.low %v1266_v15, %v1270_v17  ;;  %v1315_v15 = vld [vmem:[#allocation8 + $0x5d8] sm:$0xff] }
 0x2b8   :  { %4473 = vmatpush1.bf16.msra.mxu1 %v7062_v58  ;;  %4310 = vmatprep.subr.bf16.mxu0 %v7069_v4  ;;  %v7110_v58 = vcombine.low %v1267_v19, %v1271_v21  ;;  %v7117_v4 = vcombine.high %v1274_v28, %v1278_v29  ;;  %v1319_v17 = vld [vmem:[#allocation8 + $0x5f8] sm:$0xff]  ;;  %v7150_v19 = vcombine.low %v1307_v61, %v1311_v62 }
 0x2b9   :  { %4474 = vmatprep.subr.bf16.mxu1 %v7071_v34  ;;  %v7119_v34 = vcombine.high %v1275_v31, %v1279_v32 }
 0x2bb   :  { %4311 = vmatpush1.bf16.msra.mxu0 %v7068_v42  ;;  %v7116_v42 = vcombine.low %v1274_v28, %v1278_v29  ;;  %v1326_v28 = vld [vmem:[#allocation8 + $0x630] sm:$0xff]  ;;  %v1323_v29 = vld [vmem:[#allocation8 + $0x618] sm:$0xff] }
 0x2bc   :  { %4475 = vmatpush1.bf16.msra.mxu1 %v7070_v20  ;;  %4312 = vmatprep.subr.bf16.mxu0 %v7077_v8  ;;  %v7125_v20 = vcombine.high %v1282_v35, %v1286_v38  ;;  %v7127_v8 = vcombine.high %v1283_v40, %v1287_v41 }
 0x2bd   :  { %4476 = vmatprep.subr.bf16.mxu1 %v7079_v43  ;;  %v1290_v43 = vld [vmem:[#allocation8 + $0x510] sm:$0xff] }
 0x2be   :  { %v7132_v47 = vcombine.low %v1290_v43, %v1294_v36 }
 0x2bf   :  { %4313 = vmatpush1.bf16.msra.mxu0 %v7076_v63  ;;  %v7133_v63 = vcombine.high %v1290_v43, %v1294_v36  ;;  %v1339_v43 = vld [vmem:[#allocation8 + $0x698] sm:$0xff] }
 0x2c0   :  { %4477 = vmatpush1.bf16.msra.mxu1 %v7078_v1  ;;  %4314 = vmatprep.subr.bf16.mxu0 %v7085_v2  ;;  %v7135_v1 = vcombine.high %v1291_v55, %v1295_v56  ;;  %v1298_v2 = vld [vmem:[#allocation8 + $0x550] sm:$0xff]  ;;  %v1343_v36 = vld [vmem:[#allocation8 + $0x6b8] sm:$0xff] }
 0x2c1   :  { %4478 = vmatprep.subr.bf16.mxu1 %v7087_v13  ;;  %v1302_v13 = vld [vmem:[#allocation8 + $0x570] sm:$0xff] }
 0x2c2   :  { %v7140_v26 = vcombine.low %v1298_v2, %v1302_v13 }
 0x2c3   :  { %4315 = vmatpush1.bf16.msra.mxu0 %v7084_v50  ;;  %v7141_v50 = vcombine.high %v1298_v2, %v1302_v13  ;;  %v1347_v2 = vld [vmem:[#allocation8 + $0x6d8] sm:$0xff] }
 0x2c4   :  { %4479 = vmatpush1.bf16.msra.mxu1 %v7086_v51  ;;  %4316 = vmatprep.subr.bf16.mxu0 %v7093_v53  ;;  %v7143_v51 = vcombine.high %v1299_v39, %v1303_v46  ;;  %v1306_v53 = vld [vmem:[#allocation8 + $0x590] sm:$0xff]  ;;  %v1351_v13 = vld [vmem:[#allocation8 + $0x6f8] sm:$0xff]  ;;  %v7182_v46 = vcombine.low %v1339_v43, %v1343_v36 }
 0x2c5   :  { %4480 = vmatprep.subr.bf16.mxu1 %v7095_v54  ;;  %v1310_v54 = vld [vmem:[#allocation8 + $0x5b0] sm:$0xff] }
 0x2c7   :  { %4317 = vmatpush1.bf16.msra.mxu0 %v7092_v3  ;;  %v7149_v3 = vcombine.high %v1306_v53, %v1310_v54 }
 0x2c8   :  { %4481 = vmatpush1.bf16.msra.mxu1 %v7094_v5  ;;  %4327 = vmatprep.subr.bf16.mxu0 %v7101_v10  ;;  %v7151_v5 = vcombine.high %v1307_v61, %v1311_v62  ;;  %v1314_v10 = vld [vmem:[#allocation8 + $0x5d0] sm:$0xff]  ;;  %v7190_v62 = vcombine.low %v1347_v2, %v1351_v13 }
 0x2c9   :  { %4491 = vmatprep.subr.bf16.mxu1 %v7103_v11  ;;  %v1318_v11 = vld [vmem:[#allocation8 + $0x5f0] sm:$0xff] }
 0x2ca   :  { %4319 = vmatmul.mubr.bf16.vlgmr.msra.gmra.mrb[12].mxu0 %v8811_v27  ;;  %v7157_v21 = vcombine.high %v1314_v10, %v1318_v11 }
 0x2cb   :  { %4483 = vmatmul.mubr.bf16.vlgmr.msra.gmra.mrb[12].mxu1 %v8811_v27  ;;  %4328 = vmatpush1.bf16.msra.mxu0 %v7100_v18  ;;  %v7118_v27 = vcombine.low %v1275_v31, %v1279_v32  ;;  %v7148_v18 = vcombine.low %v1306_v53, %v1310_v54  ;;  %v7156_v31 = vcombine.low %v1314_v10, %v1318_v11  ;;  %v1355_v53 = vld [vmem:[#allocation8 + $0x718] sm:$0xff] }
 0x2cc   :  { %4359 = vmatprep.mubr.bf16.mxu0 %v8827_v49  ;;  %4492 = vmatpush1.bf16.msra.mxu1 %v7102_v22  ;;  %v7159_v22 = vcombine.high %v1315_v15, %v1319_v17  ;;  %v7158_v32 = vcombine.low %v1315_v15, %v1319_v17  ;;  %v1359_v54 = vld [vmem:[#allocation8 + $0x738] sm:$0xff] }
 0x2cd   :  { %4523 = vmatprep.mubr.bf16.mxu1 %v8827_v49  ;;  %4329 = vmatprep.subr.bf16.mxu0 %v7109_v23  ;;  %v7124_v49 = vcombine.low %v1282_v35, %v1286_v38  ;;  %v1322_v23 = vld [vmem:[#allocation8 + $0x610] sm:$0xff]  ;;  %v1331_v35 = vld [vmem:[#allocation8 + $0x658] sm:$0xff]  ;;  %v7198_v17 = vcombine.low %v1355_v53, %v1359_v54 }
 0x2ce   :  { %4493 = vmatprep.subr.bf16.mxu1 %v7111_v30  ;;  %v1327_v30 = vld [vmem:[#allocation8 + $0x638] sm:$0xff]  ;;  %v7164_v40 = vcombine.low %v1322_v23, %v1326_v28 }
 0x2cf   :  { %4330 = vmatpush1.bf16.msra.mxu0 %v7108_v33  ;;  %v7165_v33 = vcombine.high %v1322_v23, %v1326_v28  ;;  %v1335_v38 = vld [vmem:[#allocation8 + $0x678] sm:$0xff]  ;;  %v7166_v41 = vcombine.low %v1323_v29, %v1327_v30 }
 0x2d0   :  { %4494 = vmatpush1.bf16.msra.mxu1 %v7110_v58  ;;  %4331 = vmatprep.subr.bf16.mxu0 %v7117_v4  ;;  %v7167_v58 = vcombine.high %v1323_v29, %v1327_v30  ;;  %v1330_v4 = vld [vmem:[#allocation8 + $0x650] sm:$0xff]  ;;  %v7174_v56 = vcombine.low %v1331_v35, %v1335_v38  ;;  %v1363_v10 = vld [vmem:[#allocation8 + $0x758] sm:$0xff] }
 0x2d1   :  { %4495 = vmatprep.subr.bf16.mxu1 %v7119_v34  ;;  %v1334_v34 = vld [vmem:[#allocation8 + $0x670] sm:$0xff]  ;;  %v1367_v11 = vld [vmem:[#allocation8 + $0x778] sm:$0xff] }
 0x2d2   :  { %v7172_v55 = vcombine.low %v1330_v4, %v1334_v34  ;;  %v1371_v23 = vld [vmem:[#allocation8 + $0x798] sm:$0xff]  ;;  %v7206_v30 = vcombine.low %v1363_v10, %v1367_v11 }
 0x2d3   :  { %4332 = vmatpush1.bf16.msra.mxu0 %v7116_v42  ;;  %v7173_v42 = vcombine.high %v1330_v4, %v1334_v34  ;;  %v1375_v28 = vld [vmem:[#allocation8 + $0x7b8] sm:$0xff] }
 0x2d4   :  { %4496 = vmatpush1.bf16.msra.mxu1 %v7118_v27  ;;  %4333 = vmatprep.subr.bf16.mxu0 %v7125_v20  ;;  %v7175_v27 = vcombine.high %v1331_v35, %v1335_v38  ;;  %v1338_v20 = vld [vmem:[#allocation8 + $0x690] sm:$0xff]  ;;  %v1379_v4 = vld [vmem:[#allocation8 + $0x7d8] sm:$0xff]  ;;  %v7214_v38 = vcombine.low %v1371_v23, %v1375_v28 }
 0x2d5   :  { %4497 = vmatprep.subr.bf16.mxu1 %v7127_v8  ;;  %v1342_v8 = vld [vmem:[#allocation8 + $0x6b0] sm:$0xff]  ;;  %v1383_v34 = vld [vmem:[#allocation8 + $0x7f8] sm:$0xff] }
 0x2d6   :  { %v7180_v39 = vcombine.low %v1338_v20, %v1342_v8 }
 0x2d7   :  { %4334 = vmatpush1.bf16.msra.mxu0 %v7124_v49  ;;  %v7181_v49 = vcombine.high %v1338_v20, %v1342_v8  ;;  %v1387_v20 = vld [vmem:[#allocation8 + $0x818] sm:$0xff] }
 0x2d8   :  { %4498 = vmatpush1.bf16.msra.mxu1 %v7126_v57  ;;  %4335 = vmatprep.subr.bf16.mxu0 %v7133_v63  ;;  %v7183_v57 = vcombine.high %v1339_v43, %v1343_v36  ;;  %v1346_v63 = vld [vmem:[#allocation8 + $0x6d0] sm:$0xff]  ;;  %v1391_v8 = vld [vmem:[#allocation8 + $0x838] sm:$0xff]  ;;  %v7222_v36 = vcombine.low %v1379_v4, %v1383_v34 }
 0x2d9   :  { %4499 = vmatprep.subr.bf16.mxu1 %v7135_v1  ;;  %v1350_v1 = vld [vmem:[#allocation8 + $0x6f0] sm:$0xff] }
 0x2da   :  { %v7188_v61 = vcombine.low %v1346_v63, %v1350_v1 }
 0x2db   :  { %4336 = vmatpush1.bf16.msra.mxu0 %v7132_v47  ;;  %v7189_v47 = vcombine.high %v1346_v63, %v1350_v1  ;;  %v1395_v1 = vld [vmem:[#allocation8 + $0x858] sm:$0xff] }
 0x2dc   :  { %4500 = vmatpush1.bf16.msra.mxu1 %v7134_v48  ;;  %4337 = vmatprep.subr.bf16.mxu0 %v7141_v50  ;;  %v7191_v48 = vcombine.high %v1347_v2, %v1351_v13  ;;  %v1354_v50 = vld [vmem:[#allocation8 + $0x710] sm:$0xff]  ;;  %v1399_v2 = vld [vmem:[#allocation8 + $0x878] sm:$0xff]  ;;  %v7230_v13 = vcombine.low %v1387_v20, %v1391_v8 }
 0x2dd   :  { %4501 = vmatprep.subr.bf16.mxu1 %v7143_v51  ;;  %v1358_v51 = vld [vmem:[#allocation8 + $0x730] sm:$0xff] }
 0x2de   :  { %v7196_v15 = vcombine.low %v1354_v50, %v1358_v51 }
 0x2df   :  { %4338 = vmatpush1.bf16.msra.mxu0 %v7140_v26  ;;  %v7197_v26 = vcombine.high %v1354_v50, %v1358_v51  ;;  %v1403_v50 = vld [vmem:[#allocation8 + $0x898] sm:$0xff] }
 0x2e0   :  { %4502 = vmatpush1.bf16.msra.mxu1 %v7142_v0  ;;  %4339 = vmatprep.subr.bf16.mxu0 %v7149_v3  ;;  %v7199_v0 = vcombine.high %v1355_v53, %v1359_v54  ;;  %v1362_v3 = vld [vmem:[#allocation8 + $0x750] sm:$0xff]  ;;  %v1407_v51 = vld [vmem:[#allocation8 + $0x8b8] sm:$0xff]  ;;  %v7238_v54 = vcombine.low %v1395_v1, %v1399_v2 }
 0x2e1   :  { %4503 = vmatprep.subr.bf16.mxu1 %v7151_v5  ;;  %v1366_v5 = vld [vmem:[#allocation8 + $0x770] sm:$0xff] }
 0x2e2   :  { %v7204_v29 = vcombine.low %v1362_v3, %v1366_v5 }
 0x2e3   :  { %4340 = vmatpush1.bf16.msra.mxu0 %v7148_v18  ;;  %v7205_v18 = vcombine.high %v1362_v3, %v1366_v5  ;;  %v1411_v3 = vld [vmem:[#allocation8 + $0x8d8] sm:$0xff] }
 0x2e4   :  { %4504 = vmatpush1.bf16.msra.mxu1 %v7150_v19  ;;  %4341 = vmatprep.subr.bf16.mxu0 %v7157_v21  ;;  %v7207_v19 = vcombine.high %v1363_v10, %v1367_v11  ;;  %v1370_v21 = vld [vmem:[#allocation8 + $0x790] sm:$0xff]  ;;  %v1415_v5 = vld [vmem:[#allocation8 + $0x8f8] sm:$0xff] }
 0x2e5   :  { %4505 = vmatprep.subr.bf16.mxu1 %v7159_v22  ;;  %v1374_v22 = vld [vmem:[#allocation8 + $0x7b0] sm:$0xff] }
 0x2e6   :  { %v7212_v35 = vcombine.low %v1370_v21, %v1374_v22 }
 0x2e7   :  { %4342 = vmatpush1.bf16.msra.mxu0 %v7156_v31  ;;  %v7213_v31 = vcombine.high %v1370_v21, %v1374_v22  ;;  %v1423_v21 = vld [vmem:[#allocation8 + $0x938] sm:$0xff]  ;;  %v7254_v22 = vcombine.low %v1411_v3, %v1415_v5 }
 0x2e8   :  { %4506 = vmatpush1.bf16.msra.mxu1 %v7158_v32  ;;  %4343 = vmatprep.subr.bf16.mxu0 %v7165_v33  ;;  %v7215_v32 = vcombine.high %v1371_v23, %v1375_v28  ;;  %v1378_v33 = vld [vmem:[#allocation8 + $0x7d0] sm:$0xff] }
 0x2e9   :  { %4507 = vmatprep.subr.bf16.mxu1 %v7167_v58  ;;  %v1382_v58 = vld [vmem:[#allocation8 + $0x7f0] sm:$0xff] }
 0x2ea   :  { %v7220_v43 = vcombine.low %v1378_v33, %v1382_v58 }
 0x2eb   :  { %4344 = vmatpush1.bf16.msra.mxu0 %v7164_v40  ;;  %v7221_v40 = vcombine.high %v1378_v33, %v1382_v58 }
 0x2ec   :  { %4508 = vmatpush1.bf16.msra.mxu1 %v7166_v41  ;;  %4345 = vmatprep.subr.bf16.mxu0 %v7173_v42  ;;  %v7223_v41 = vcombine.high %v1379_v4, %v1383_v34  ;;  %v1386_v42 = vld [vmem:[#allocation8 + $0x810] sm:$0xff] }
 0x2ed   :  { %4509 = vmatprep.subr.bf16.mxu1 %v7175_v27  ;;  %v1390_v27 = vld [vmem:[#allocation8 + $0x830] sm:$0xff] }
 0x2ee   :  { %v7228_v63 = vcombine.low %v1386_v42, %v1390_v27 }
 0x2ef   :  { %4346 = vmatpush1.bf16.msra.mxu0 %v7172_v55  ;;  %v7229_v55 = vcombine.high %v1386_v42, %v1390_v27 }
 0x2f0   :  { %4510 = vmatpush1.bf16.msra.mxu1 %v7174_v56  ;;  %4347 = vmatprep.subr.bf16.mxu0 %v7181_v49  ;;  %v7231_v56 = vcombine.high %v1387_v20, %v1391_v8  ;;  %v1394_v49 = vld [vmem:[#allocation8 + $0x850] sm:$0xff] }
 0x2f1   :  { %4511 = vmatprep.subr.bf16.mxu1 %v7183_v57  ;;  %v1398_v57 = vld [vmem:[#allocation8 + $0x870] sm:$0xff] }
 0x2f2   :  { %v7236_v53 = vcombine.low %v1394_v49, %v1398_v57 }
 0x2f3   :  { %4348 = vmatpush1.bf16.msra.mxu0 %v7180_v39  ;;  %v7237_v39 = vcombine.high %v1394_v49, %v1398_v57 }
 0x2f4   :  { %4512 = vmatpush1.bf16.msra.mxu1 %v7182_v46  ;;  %4349 = vmatprep.subr.bf16.mxu0 %v7189_v47  ;;  %v1402_v46 = vld [vmem:[#allocation8 + $0x890] sm:$0xff] }
 0x2f5   :  { %4513 = vmatprep.subr.bf16.mxu1 %v7191_v48  ;;  %v1406_v47 = vld [vmem:[#allocation8 + $0x8b0] sm:$0xff]  ;;  %v7239_v48 = vcombine.high %v1395_v1, %v1399_v2 }
 0x2f6   :  { %v7244_v10 = vcombine.low %v1402_v46, %v1406_v47  ;;  %v1450_v2 = vld [vmem:[#allocation8 + $0xa10] sm:$0xff] }
 0x2f7   :  { %4350 = vmatpush1.bf16.msra.mxu0 %v7188_v61  ;;  %v7245_v61 = vcombine.high %v1402_v46, %v1406_v47  ;;  %v1455_v46 = vld [vmem:[#allocation8 + $0xa38] sm:$0xff] }
 0x2f8   :  { %4514 = vmatpush1.bf16.msra.mxu1 %v7190_v62  ;;  %4351 = vmatprep.subr.bf16.mxu0 %v7197_v26  ;;  %v7247_v62 = vcombine.high %v1403_v50, %v1407_v51  ;;  %v1410_v26 = vld [vmem:[#allocation8 + $0x8d0] sm:$0xff] }
 0x2f9   :  { %4515 = vmatprep.subr.bf16.mxu1 %v7199_v0  ;;  %v1414_v0 = vld [vmem:[#allocation8 + $0x8f0] sm:$0xff] }
 0x2fa   :  { %v7253_v11 = vcombine.high %v1410_v26, %v1414_v0 }
 0x2fb   :  { %4352 = vmatpush1.bf16.msra.mxu0 %v7196_v15  ;;  %v7255_v15 = vcombine.high %v1411_v3, %v1415_v5 }
 0x2fc   :  { %4516 = vmatpush1.bf16.msra.mxu1 %v7198_v17  ;;  %4353 = vmatprep.subr.bf16.mxu0 %v7205_v18  ;;  %v1418_v17 = vld [vmem:[#allocation8 + $0x910] sm:$0xff] }
 0x2fd   :  { %4517 = vmatprep.subr.bf16.mxu1 %v7207_v19  ;;  %v1422_v18 = vld [vmem:[#allocation8 + $0x930] sm:$0xff]  ;;  %v1419_v19 = vld [vmem:[#allocation8 + $0x918] sm:$0xff] }
 0x2fe   :  { %v7261_v23 = vcombine.high %v1418_v17, %v1422_v18  ;;  %v7263_v28 = vcombine.high %v1419_v19, %v1423_v21  ;;  %v7260_v33 = vcombine.low %v1418_v17, %v1422_v18  ;;  %v7262_v58 = vcombine.low %v1419_v19, %v1423_v21 }
 0x2ff   :  { %4354 = vmatpush1.bf16.msra.mxu0 %v7204_v29  ;;  %v1426_v29 = vld [vmem:[#allocation8 + $0x950] sm:$0xff] }
 0x300   :  { %4518 = vmatpush1.bf16.msra.mxu1 %v7206_v30  ;;  %4355 = vmatprep.subr.bf16.mxu0 %v7213_v31  ;;  %v1430_v30 = vld [vmem:[#allocation8 + $0x970] sm:$0xff]  ;;  %v1427_v31 = vld [vmem:[#allocation8 + $0x958] sm:$0xff] }
 0x301   :  { %4519 = vmatprep.subr.bf16.mxu1 %v7215_v32  ;;  %v1431_v32 = vld [vmem:[#allocation8 + $0x978] sm:$0xff]  ;;  %v7269_v4 = vcombine.high %v1426_v29, %v1430_v30  ;;  %v7268_v42 = vcombine.low %v1426_v29, %v1430_v30 }
 0x302   :  { %v7271_v34 = vcombine.high %v1427_v31, %v1431_v32  ;;  %v7270_v27 = vcombine.low %v1427_v31, %v1431_v32 }
 0x303   :  { %4356 = vmatpush1.bf16.msra.mxu0 %v7212_v35  ;;  %v1434_v35 = vld [vmem:[#allocation8 + $0x990] sm:$0xff] }
 0x304   :  { %4520 = vmatpush1.bf16.msra.mxu1 %v7214_v38  ;;  %4357 = vmatprep.subr.bf16.mxu0 %v7221_v40  ;;  %v1438_v38 = vld [vmem:[#allocation8 + $0x9b0] sm:$0xff]  ;;  %v1435_v40 = vld [vmem:[#allocation8 + $0x998] sm:$0xff] }
 0x305   :  { %4521 = vmatprep.subr.bf16.mxu1 %v7223_v41  ;;  %v1439_v41 = vld [vmem:[#allocation8 + $0x9b8] sm:$0xff]  ;;  %v7277_v20 = vcombine.high %v1434_v35, %v1438_v38  ;;  %v7276_v49 = vcombine.low %v1434_v35, %v1438_v38 }
 0x306   :  { %v7279_v8 = vcombine.high %v1435_v40, %v1439_v41  ;;  %v7278_v57 = vcombine.low %v1435_v40, %v1439_v41 }
 0x307   :  { %4358 = vmatpush1.bf16.msra.mxu0 %v7220_v43  ;;  %v1442_v43 = vld [vmem:[#allocation8 + $0x9d0] sm:$0xff] }
 0x308   :  { %4522 = vmatpush1.bf16.msra.mxu1 %v7222_v36  ;;  %4368 = vmatprep.subr.bf16.mxu0 %v7229_v55  ;;  %v1446_v36 = vld [vmem:[#allocation8 + $0x9f0] sm:$0xff]  ;;  %v1443_v55 = vld [vmem:[#allocation8 + $0x9d8] sm:$0xff] }
 0x309   :  { %4532 = vmatprep.subr.bf16.mxu1 %v7231_v56  ;;  %v1447_v56 = vld [vmem:[#allocation8 + $0x9f8] sm:$0xff]  ;;  %v7284_v47 = vcombine.low %v1442_v43, %v1446_v36 }
 0x30a   :  { %4360 = vmatmul.mubr.bf16.vlgmr.msra.gmra.mrb[12].mxu0 %v8843_v59  ;;  %v7287_v1 = vcombine.high %v1443_v55, %v1447_v56 }
 0x30b   :  { %4524 = vmatmul.mubr.bf16.vlgmr.msra.gmra.mrb[12].mxu1 %v8843_v59  ;;  %4369 = vmatpush1.bf16.msra.mxu0 %v7228_v63  ;;  %v7246_v59 = vcombine.low %v1403_v50, %v1407_v51  ;;  %v7285_v63 = vcombine.high %v1442_v43, %v1446_v36 }
 0x30c   :  { %4400 = vmatprep.mubr.bf16.mxu0 %v8847_v12  ;;  %4533 = vmatpush1.bf16.msra.mxu1 %v7230_v13  ;;  %v1454_v13 = vld [vmem:[#allocation8 + $0xa30] sm:$0xff] }
 0x30d   :  { %4564 = vmatprep.mubr.bf16.mxu1 %v8847_v12  ;;  %4370 = vmatprep.subr.bf16.mxu0 %v7237_v39  ;;  %v7252_v12 = vcombine.low %v1410_v26, %v1414_v0  ;;  %v1451_v39 = vld [vmem:[#allocation8 + $0xa18] sm:$0xff]  ;;  %v7293_v50 = vcombine.high %v1450_v2, %v1454_v13  ;;  %v7292_v26 = vcombine.low %v1450_v2, %v1454_v13 }
 0x30e   :  { %4534 = vmatprep.subr.bf16.mxu1 %v7239_v48  ;;  %v7286_v48 = vcombine.low %v1443_v55, %v1447_v56  ;;  %v7295_v51 = vcombine.high %v1451_v39, %v1455_v46  ;;  %v7294_v0 = vcombine.low %v1451_v39, %v1455_v46 }
 0x30f   :  { %4371 = vmatpush1.bf16.msra.mxu0 %v7236_v53  ;;  %v1458_v53 = vld [vmem:[#allocation8 + $0xa50] sm:$0xff] }
 0x310   :  { %4535 = vmatpush1.bf16.msra.mxu1 %v7238_v54  ;;  %4372 = vmatprep.subr.bf16.mxu0 %v7245_v61  ;;  %v1462_v54 = vld [vmem:[#allocation8 + $0xa70] sm:$0xff]  ;;  %v1459_v61 = vld [vmem:[#allocation8 + $0xa58] sm:$0xff] }
 0x311   :  { %4536 = vmatprep.subr.bf16.mxu1 %v7247_v62  ;;  %v1463_v62 = vld [vmem:[#allocation8 + $0xa78] sm:$0xff]  ;;  %v7301_v3 = vcombine.high %v1458_v53, %v1462_v54  ;;  %v7300_v17 = vcombine.low %v1458_v53, %v1462_v54 }
 0x312   :  { %v7303_v5 = vcombine.high %v1459_v61, %v1463_v62  ;;  %v7302_v18 = vcombine.low %v1459_v61, %v1463_v62 }
 0x313   :  { %4373 = vmatpush1.bf16.msra.mxu0 %v7244_v10  ;;  %v1466_v10 = vld [vmem:[#allocation8 + $0xa90] sm:$0xff] }
 0x314   :  { %4537 = vmatpush1.bf16.msra.mxu1 %v7246_v59  ;;  %4374 = vmatprep.subr.bf16.mxu0 %v7253_v11  ;;  %v1470_v59 = vld [vmem:[#allocation8 + $0xab0] sm:$0xff]  ;;  %v1467_v11 = vld [vmem:[#allocation8 + $0xa98] sm:$0xff] }
 0x315   :  { %4538 = vmatprep.subr.bf16.mxu1 %v7255_v15  ;;  %v1471_v15 = vld [vmem:[#allocation8 + $0xab8] sm:$0xff]  ;;  %v7309_v19 = vcombine.high %v1466_v10, %v1470_v59  ;;  %v7308_v29 = vcombine.low %v1466_v10, %v1470_v59 }
 0x316   :  { %v7311_v21 = vcombine.high %v1467_v11, %v1471_v15  ;;  %v7310_v30 = vcombine.low %v1467_v11, %v1471_v15 }
 0x317   :  { %4375 = vmatpush1.bf16.msra.mxu0 %v7252_v12  ;;  %v1474_v12 = vld [vmem:[#allocation8 + $0xad0] sm:$0xff] }
 0x318   :  { %4539 = vmatpush1.bf16.msra.mxu1 %v7254_v22  ;;  %4376 = vmatprep.subr.bf16.mxu0 %v7261_v23  ;;  %v1478_v22 = vld [vmem:[#allocation8 + $0xaf0] sm:$0xff]  ;;  %v1475_v23 = vld [vmem:[#allocation8 + $0xad8] sm:$0xff] }
 0x319   :  { %4540 = vmatprep.subr.bf16.mxu1 %v7263_v28  ;;  %v1479_v28 = vld [vmem:[#allocation8 + $0xaf8] sm:$0xff]  ;;  %v7317_v31 = vcombine.high %v1474_v12, %v1478_v22  ;;  %v7316_v35 = vcombine.low %v1474_v12, %v1478_v22 }
 0x31a   :  { %v7319_v32 = vcombine.high %v1475_v23, %v1479_v28  ;;  %v7318_v38 = vcombine.low %v1475_v23, %v1479_v28  ;;  %v1527_v12 = vld [vmem:[#allocation8 + $0xc78] sm:$0xff]  ;;  %v1530_v28 = vld [vmem:[#allocation8 + $0xc90] sm:$0xff] }
 0x31b   :  { %4377 = vmatpush1.bf16.msra.mxu0 %v7260_v33  ;;  %v1482_v33 = vld [vmem:[#allocation8 + $0xb10] sm:$0xff] }
 0x31c   :  { %4541 = vmatpush1.bf16.msra.mxu1 %v7262_v58  ;;  %4378 = vmatprep.subr.bf16.mxu0 %v7269_v4  ;;  %v1486_v58 = vld [vmem:[#allocation8 + $0xb30] sm:$0xff]  ;;  %v1483_v4 = vld [vmem:[#allocation8 + $0xb18] sm:$0xff] }
 0x31d   :  { %4542 = vmatprep.subr.bf16.mxu1 %v7271_v34  ;;  %v1487_v34 = vld [vmem:[#allocation8 + $0xb38] sm:$0xff]  ;;  %v7325_v40 = vcombine.high %v1482_v33, %v1486_v58  ;;  %v7324_v43 = vcombine.low %v1482_v33, %v1486_v58 }
 0x31e   :  { %v7327_v41 = vcombine.high %v1483_v4, %v1487_v34  ;;  %v7326_v36 = vcombine.low %v1483_v4, %v1487_v34 }
 0x31f   :  { %4379 = vmatpush1.bf16.msra.mxu0 %v7268_v42  ;;  %v1490_v42 = vld [vmem:[#allocation8 + $0xb50] sm:$0xff] }
 0x320   :  { %4543 = vmatpush1.bf16.msra.mxu1 %v7270_v27  ;;  %4380 = vmatprep.subr.bf16.mxu0 %v7277_v20  ;;  %v1494_v27 = vld [vmem:[#allocation8 + $0xb70] sm:$0xff]  ;;  %v1491_v20 = vld [vmem:[#allocation8 + $0xb58] sm:$0xff] }
 0x321   :  { %4544 = vmatprep.subr.bf16.mxu1 %v7279_v8  ;;  %v1495_v8 = vld [vmem:[#allocation8 + $0xb78] sm:$0xff]  ;;  %v7333_v55 = vcombine.high %v1490_v42, %v1494_v27  ;;  %v7332_v2 = vcombine.low %v1490_v42, %v1494_v27 }
 0x322   :  { %v7335_v56 = vcombine.high %v1491_v20, %v1495_v8  ;;  %v7334_v13 = vcombine.low %v1491_v20, %v1495_v8  ;;  %v1546_v8 = vld [vmem:[#allocation8 + $0xd10] sm:$0xff] }
 0x323   :  { %4381 = vmatpush1.bf16.msra.mxu0 %v7276_v49  ;;  %v1498_v49 = vld [vmem:[#allocation8 + $0xb90] sm:$0xff] }
 0x324   :  { %4545 = vmatpush1.bf16.msra.mxu1 %v7278_v57  ;;  %4382 = vmatprep.subr.bf16.mxu0 %v7285_v63  ;;  %v1502_v57 = vld [vmem:[#allocation8 + $0xbb0] sm:$0xff]  ;;  %v1499_v63 = vld [vmem:[#allocation8 + $0xb98] sm:$0xff] }
 0x325   :  { %4546 = vmatprep.subr.bf16.mxu1 %v7287_v1  ;;  %v1503_v1 = vld [vmem:[#allocation8 + $0xbb8] sm:$0xff]  ;;  %v7341_v39 = vcombine.high %v1498_v49, %v1502_v57  ;;  %v7340_v53 = vcombine.low %v1498_v49, %v1502_v57 }
 0x326   :  { %v7343_v46 = vcombine.high %v1499_v63, %v1503_v1  ;;  %v7342_v54 = vcombine.low %v1499_v63, %v1503_v1  ;;  %v1554_v63 = vld [vmem:[#allocation8 + $0xd50] sm:$0xff] }
 0x327   :  { %4383 = vmatpush1.bf16.msra.mxu0 %v7284_v47  ;;  %v1506_v47 = vld [vmem:[#allocation8 + $0xbd0] sm:$0xff] }
 0x328   :  { %4547 = vmatpush1.bf16.msra.mxu1 %v7286_v48  ;;  %4384 = vmatprep.subr.bf16.mxu0 %v7293_v50  ;;  %v1510_v48 = vld [vmem:[#allocation8 + $0xbf0] sm:$0xff]  ;;  %v1507_v50 = vld [vmem:[#allocation8 + $0xbd8] sm:$0xff] }
 0x329   :  { %4548 = vmatprep.subr.bf16.mxu1 %v7295_v51  ;;  %v1511_v51 = vld [vmem:[#allocation8 + $0xbf8] sm:$0xff]  ;;  %v7349_v61 = vcombine.high %v1506_v47, %v1510_v48  ;;  %v7348_v10 = vcombine.low %v1506_v47, %v1510_v48  ;;  %v1558_v1 = vld [vmem:[#allocation8 + $0xd70] sm:$0xff] }
 0x32a   :  { %v7351_v62 = vcombine.high %v1507_v50, %v1511_v51  ;;  %v7350_v59 = vcombine.low %v1507_v50, %v1511_v51  ;;  %v7397_v47 = vcombine.high %v1554_v63, %v1558_v1  ;;  %v1562_v50 = vld [vmem:[#allocation8 + $0xd90] sm:$0xff] }
 0x32b   :  { %4385 = vmatpush1.bf16.msra.mxu0 %v7292_v26  ;;  %v1514_v26 = vld [vmem:[#allocation8 + $0xc10] sm:$0xff] }
 0x32c   :  { %4549 = vmatpush1.bf16.msra.mxu1 %v7294_v0  ;;  %4386 = vmatprep.subr.bf16.mxu0 %v7301_v3  ;;  %v1518_v0 = vld [vmem:[#allocation8 + $0xc30] sm:$0xff]  ;;  %v1515_v3 = vld [vmem:[#allocation8 + $0xc18] sm:$0xff] }
 0x32d   :  { %4550 = vmatprep.subr.bf16.mxu1 %v7303_v5  ;;  %v1519_v5 = vld [vmem:[#allocation8 + $0xc38] sm:$0xff]  ;;  %v7357_v11 = vcombine.high %v1514_v26, %v1518_v0  ;;  %v1566_v51 = vld [vmem:[#allocation8 + $0xdb0] sm:$0xff] }
 0x32e   :  { %v7359_v15 = vcombine.high %v1515_v3, %v1519_v5  ;;  %v7358_v22 = vcombine.low %v1515_v3, %v1519_v5 }
 0x32f   :  { %4387 = vmatpush1.bf16.msra.mxu0 %v7300_v17  ;;  %v1522_v17 = vld [vmem:[#allocation8 + $0xc50] sm:$0xff] }
 0x330   :  { %4551 = vmatpush1.bf16.msra.mxu1 %v7302_v18  ;;  %4388 = vmatprep.subr.bf16.mxu0 %v7309_v19  ;;  %v1526_v18 = vld [vmem:[#allocation8 + $0xc70] sm:$0xff]  ;;  %v7356_v19 = vcombine.low %v1514_v26, %v1518_v0  ;;  %v7405_v26 = vcombine.high %v1562_v50, %v1566_v51 }
 0x331   :  { %4552 = vmatprep.subr.bf16.mxu1 %v7311_v21  ;;  %v1523_v21 = vld [vmem:[#allocation8 + $0xc58] sm:$0xff]  ;;  %v7365_v23 = vcombine.high %v1522_v17, %v1526_v18  ;;  %v7364_v33 = vcombine.low %v1522_v17, %v1526_v18 }
 0x332   :  { %v7366_v58 = vcombine.low %v1523_v21, %v1527_v12  ;;  %v1571_v17 = vld [vmem:[#allocation8 + $0xdd8] sm:$0xff] }
 0x333   :  { %4389 = vmatpush1.bf16.msra.mxu0 %v7308_v29  ;;  %v1534_v29 = vld [vmem:[#allocation8 + $0xcb0] sm:$0xff]  ;;  %v1575_v18 = vld [vmem:[#allocation8 + $0xdf8] sm:$0xff] }
 0x334   :  { %4553 = vmatpush1.bf16.msra.mxu1 %v7310_v30  ;;  %4390 = vmatprep.subr.bf16.mxu0 %v7317_v31  ;;  %v7367_v30 = vcombine.high %v1523_v21, %v1527_v12  ;;  %v1531_v31 = vld [vmem:[#allocation8 + $0xc98] sm:$0xff]  ;;  %v7373_v4 = vcombine.high %v1530_v28, %v1534_v29  ;;  %v7404_v12 = vcombine.low %v1562_v50, %v1566_v51  ;;  %v7883_v50 = vld [vmem:[#allocation11 + $0x28] ss:$16 sps:$4 sm:$0xff]  }
 0x335   :  { %4554 = vmatprep.subr.bf16.mxu1 %v7319_v32  ;;  %v1535_v32 = vld [vmem:[#allocation8 + $0xcb8] sm:$0xff] }
 0x336   :  { %v7375_v34 = vcombine.high %v1531_v31, %v1535_v32  ;;  %v7374_v42 = vcombine.low %v1531_v31, %v1535_v32  ;;  %v1578_v31 = vld [vmem:[#allocation8 + $0xe10] sm:$0xff]  ;;  %v7888_v51 = vld [vmem:[#allocation11 + $0x44] ss:$16 sps:$4 sm:$0xff]  }
 0x337   :  { %4391 = vmatpush1.bf16.msra.mxu0 %v7316_v35  ;;  %v1538_v35 = vld [vmem:[#allocation8 + $0xcd0] sm:$0xff] }
 0x338   :  { %4555 = vmatpush1.bf16.msra.mxu1 %v7318_v38  ;;  %4392 = vmatprep.subr.bf16.mxu0 %v7325_v40  ;;  %v1542_v38 = vld [vmem:[#allocation8 + $0xcf0] sm:$0xff]  ;;  %v1539_v40 = vld [vmem:[#allocation8 + $0xcd8] sm:$0xff] }
 0x339   :  { %4556 = vmatprep.subr.bf16.mxu1 %v7327_v41  ;;  %v1543_v41 = vld [vmem:[#allocation8 + $0xcf8] sm:$0xff]  ;;  %v7381_v27 = vcombine.high %v1538_v35, %v1542_v38  ;;  %v1582_v32 = vld [vmem:[#allocation8 + $0xe30] sm:$0xff] }
 0x33a   :  { %v7383_v20 = vcombine.high %v1539_v40, %v1543_v41 }
 0x33b   :  { %4393 = vmatpush1.bf16.msra.mxu0 %v7324_v43  ;;  %v1550_v43 = vld [vmem:[#allocation8 + $0xd30] sm:$0xff] }
 0x33c   :  { %4557 = vmatpush1.bf16.msra.mxu1 %v7326_v36  ;;  %4394 = vmatprep.subr.bf16.mxu0 %v7333_v55  ;;  %v1547_v36 = vld [vmem:[#allocation8 + $0xd18] sm:$0xff]  ;;  %v7389_v49 = vcombine.high %v1546_v8, %v1550_v43 }
 0x33d   :  { %4558 = vmatprep.subr.bf16.mxu1 %v7335_v56  ;;  %v1551_v55 = vld [vmem:[#allocation8 + $0xd38] sm:$0xff]  ;;  %v7382_v56 = vcombine.low %v1539_v40, %v1543_v41  ;;  %v1586_v41 = vld [vmem:[#allocation8 + $0xe50] sm:$0xff] }
 0x33e   :  { %v7391_v57 = vcombine.high %v1547_v36, %v1551_v55 }
 0x33f   :  { %4395 = vmatpush1.bf16.msra.mxu0 %v7332_v2  ;;  %v1555_v2 = vld [vmem:[#allocation8 + $0xd58] sm:$0xff] }
 0x340   :  { %4559 = vmatpush1.bf16.msra.mxu1 %v7334_v13  ;;  %4396 = vmatprep.subr.bf16.mxu0 %v7341_v39  ;;  %v1559_v13 = vld [vmem:[#allocation8 + $0xd78] sm:$0xff]  ;;  %v7388_v39 = vcombine.low %v1546_v8, %v1550_v43  ;;  %v7420_v8 = vcombine.low %v1578_v31, %v1582_v32 }
 0x341   :  { %4560 = vmatprep.subr.bf16.mxu1 %v7343_v46  ;;  %v7390_v46 = vcombine.low %v1547_v36, %v1551_v55  ;;  %v7399_v48 = vcombine.high %v1555_v2, %v1559_v13 }
 0x343   :  { %4397 = vmatpush1.bf16.msra.mxu0 %v7340_v53  ;;  %v1563_v53 = vld [vmem:[#allocation8 + $0xd98] sm:$0xff] }
 0x344   :  { %4561 = vmatpush1.bf16.msra.mxu1 %v7342_v54  ;;  %4398 = vmatprep.subr.bf16.mxu0 %v7349_v61  ;;  %v1567_v54 = vld [vmem:[#allocation8 + $0xdb8] sm:$0xff]  ;;  %v7396_v61 = vcombine.low %v1554_v63, %v1558_v1  ;;  %v7879_v63 = vld [vmem:[#allocation11 + $0xc] ss:$16 sps:$4 sm:$0xff]  }
 0x345   :  { %4562 = vmatprep.subr.bf16.mxu1 %v7351_v62  ;;  %v7398_v62 = vcombine.low %v1555_v2, %v1559_v13  ;;  %v7407_v5 = vcombine.high %v1563_v53, %v1567_v54  ;;  %v7874_v2 = vld [vmem:[#allocation11] ss:$16 sps:$4 sm:$0xff]   ;;  %v7877_v13 = vld [vmem:[#allocation11 + $0x8] ss:$16 sps:$4 sm:$0xff]  }
 0x347   :  { %4399 = vmatpush1.bf16.msra.mxu0 %v7348_v10  ;;  %v1570_v10 = vld [vmem:[#allocation8 + $0xdd0] sm:$0xff] }
 0x348   :  { %4563 = vmatpush1.bf16.msra.mxu1 %v7350_v59  ;;  %4409 = vmatprep.subr.bf16.mxu0 %v7357_v11  ;;  %v1574_v59 = vld [vmem:[#allocation8 + $0xdf0] sm:$0xff] }
 0x349   :  { %4573 = vmatprep.subr.bf16.mxu1 %v7359_v15 }
 0x34a   :  { %4401 = vmatmul.mubr.bf16.vlgmr.msra.gmra.mrb[12].mxu0 %v8865_v44 }
 0x34b   :  { %4565 = vmatmul.mubr.bf16.vlgmr.msra.gmra.mrb[12].mxu1 %v8865_v44  ;;  %4410 = vmatpush1.bf16.msra.mxu0 %v7356_v19  ;;  %v7372_v44 = vcombine.low %v1530_v28, %v1534_v29  ;;  %v7406_v28 = vcombine.low %v1563_v53, %v1567_v54  ;;  %v7413_v29 = vcombine.high %v1570_v10, %v1574_v59  ;;  %v7891_v53 = vld [vmem:[#allocation11 + $0x4c] ss:$16 sps:$4 sm:$0xff]   ;;  %v7886_v54 = vld [vmem:[#allocation11 + $0x40] ss:$16 sps:$4 sm:$0xff]  }
 0x34c   :  { %7434 = vmatprep.mubr.msk.bf16.mxu0 %vm3954_vm2, %v8867_v52  ;;  %4574 = vmatpush1.bf16.msra.mxu1 %v7358_v22 }
 0x34d   :  { %7435 = vmatprep.mubr.msk.bf16.mxu1 %vm3954_vm2, %v8867_v52  ;;  %4411 = vmatprep.subr.bf16.mxu0 %v7365_v23  ;;  %v7380_v52 = vcombine.low %v1538_v35, %v1542_v38  ;;  %v7414_v35 = vcombine.low %v1571_v17, %v1575_v18  ;;  %v7421_v38 = vcombine.high %v1578_v31, %v1582_v32  ;;  %v7921_v31 = vld [vmem:[#allocation11 + $0xec] ss:$16 sps:$4 sm:$0xff]   ;;  %v7916_v32 = vld [vmem:[#allocation11 + $0xe0] ss:$16 sps:$4 sm:$0xff]  }
 0x34e   :  { %4575 = vmatprep.subr.bf16.mxu1 %v7367_v30  ;;  %v7415_v30 = vcombine.high %v1571_v17, %v1575_v18  ;;  %v7901_v17 = vld [vmem:[#allocation11 + $0x88] ss:$16 sps:$4 sm:$0xff]   ;;  %v7906_v18 = vld [vmem:[#allocation11 + $0xa4] ss:$16 sps:$4 sm:$0xff]  }
 0x34f   :  { %4412 = vmatpush1.bf16.msra.mxu0 %v7364_v33  ;;  %v1579_v33 = vld [vmem:[#allocation8 + $0xe18] sm:$0xff] }
 0x350   :  { %4576 = vmatpush1.bf16.msra.mxu1 %v7366_v58  ;;  %4413 = vmatprep.subr.bf16.mxu0 %v7373_v4  ;;  %v1583_v58 = vld [vmem:[#allocation8 + $0xe38] sm:$0xff]  ;;  %v8905_v4 = vld [vmem:[#allocation10] sm:$0xff] }
 0x351   :  { %4577 = vmatprep.subr.bf16.mxu1 %v7375_v34  ;;  %v7412_v34 = vcombine.low %v1570_v10, %v1574_v59  ;;  %v7423_v40 = vcombine.high %v1579_v33, %v1583_v58  ;;  %v7422_v43 = vcombine.low %v1579_v33, %v1583_v58  ;;  %v7900_v10 = vld [vmem:[#allocation11 + $0x84] ss:$16 sps:$4 sm:$0xff]   ;;  %v7903_v59 = vld [vmem:[#allocation11 + $0x8c] ss:$16 sps:$4 sm:$0xff]   ;;  %v7919_v33 = vld [vmem:[#allocation11 + $0xe8] ss:$16 sps:$4 sm:$0xff]  }
 0x352   :  { %v7924_v58 = vld [vmem:[#allocation11 + $0x104] ss:$16 sps:$4 sm:$0xff]  }
 0x353   :  { %4414 = vmatpush1.bf16.msra.mxu0 %v7372_v44  ;;  %v1590_v44 = vld [vmem:[#allocation8 + $0xe70] sm:$0xff] }
 0x354   :  { %4578 = vmatpush1.bf16.msra.mxu1 %v7374_v42  ;;  %4415 = vmatprep.subr.bf16.mxu0 %v7381_v27  ;;  %v1601_v42 = vrot.slane %v8905_v4, %v8800_v9  ;;  %v1587_v27 = vld [vmem:[#allocation8 + $0xe58] sm:$0xff]  ;;  %v7429_v36 = vcombine.high %v1586_v41, %v1590_v44 }
 0x355   :  { %4579 = vmatprep.subr.bf16.mxu1 %v7383_v20  ;;  %v1591_v20 = vld [vmem:[#allocation8 + $0xe78] sm:$0xff] }
 0x356   :  { %v7431_v55 = vcombine.high %v1587_v27, %v1591_v20 }
 0x357   :  { %4416 = vmatpush1.bf16.msra.mxu0 %v7380_v52 }
 0x358   :  { %4580 = vmatpush1.bf16.msra.mxu1 %v7382_v56  ;;  %4417 = vmatprep.subr.bf16.mxu0 %v7389_v49  ;;  %v7428_v56 = vcombine.low %v1586_v41, %v1590_v44  ;;  %v7430_v49 = vcombine.low %v1587_v27, %v1591_v20  ;;  %v7933_v41 = vld [vmem:[#allocation11 + $0x12c] ss:$16 sps:$4 sm:$0xff]   ;;  %v7928_v44 = vld [vmem:[#allocation11 + $0x120] ss:$16 sps:$4 sm:$0xff]   ;;  %v7936_v27 = vld [vmem:[#allocation11 + $0x144] ss:$16 sps:$4 sm:$0xff]  }
 0x359   :  { %4581 = vmatprep.subr.bf16.mxu1 %v7391_v57  ;;  %v7876_v57 = vld [vmem:[#allocation11 + $0x4] ss:$16 sps:$4 sm:$0xff]   ;;  %v7939_v20 = vld [vmem:[#allocation11 + $0x14c] ss:$16 sps:$4 sm:$0xff]  }
 0x35b   :  { %4418 = vmatpush1.bf16.msra.mxu0 %v7388_v39  ;;  %v7882_v39 = vld [vmem:[#allocation11 + $0x24] ss:$16 sps:$4 sm:$0xff]  }
 0x35c   :  { %4582 = vmatpush1.bf16.msra.mxu1 %v7390_v46  ;;  %4419 = vmatprep.subr.bf16.mxu0 %v7397_v47  ;;  %v7885_v47 = vld [vmem:[#allocation11 + $0x2c] ss:$16 sps:$4 sm:$0xff]  }
 0x35d   :  { %v8899_v0 = vpop.f32.mrb[8].mxu0  ;;  %v8901_v3 = vpop.f32.mrb[8].mxu1  ;;  %4583 = vmatprep.subr.bf16.mxu1 %v7399_v48  ;;  %v7880_v48 = vld [vmem:[#allocation11 + $0x20] ss:$16 sps:$4 sm:$0xff]  }
 0x35e   :  { %v4117_v11 = vpop.f32.mrb[9].mxu0  ;;  %v8903_v15 = vpop.f32.mrb[9].mxu1 }
 0x35f   :  { %v4119_v19 = vpop.f32.mrb[10].mxu0  ;;  %v4283_v21 = vpop.f32.mrb[10].mxu1  ;;  %4420 = vmatpush1.bf16.msra.mxu0 %v7396_v61  ;;  %v7762_v52 = vadd.f32 %v4117_v11, %v1601_v42  ;;  %v7889_v61 = vld [vmem:[#allocation11 + $0x48] ss:$16 sps:$4 sm:$0xff]   ;;  %v7898_v11 = vld [vmem:[#allocation11 + $0x80] ss:$16 sps:$4 sm:$0xff]  }
 0x360   :  { %4584 = vmatpush1.bf16.msra.mxu1 %v7398_v62  ;;  %v4120_v22 = vpop.f32.mrb[11].mxu0  ;;  %v4284_v23 = vpop.f32.mrb[11].mxu1  ;;  %4421 = vmatprep.subr.bf16.mxu0 %v7405_v26  ;;  %v7894_v62 = vld [vmem:[#allocation11 + $0x64] ss:$16 sps:$4 sm:$0xff]   ;;  %v7897_v26 = vld [vmem:[#allocation11 + $0x6c] ss:$16 sps:$4 sm:$0xff]  }
 0x361   :  { %4585 = vmatprep.subr.bf16.mxu1 %v7407_v5  ;;  %v4615_v1 = vmax.f32 %v7762_v52, 0.0  ;;  %v7895_v5 = vld [vmem:[#allocation11 + $0x68] ss:$16 sps:$4 sm:$0xff]   ;;  %v7909_v19 = vld [vmem:[#allocation11 + $0xac] ss:$16 sps:$4 sm:$0xff]  }
 0x362   :  { %v7904_v21 = vld [vmem:[#allocation11 + $0xa0] ss:$16 sps:$4 sm:$0xff]   ;;  %v7912_v22 = vld [vmem:[#allocation11 + $0xc4] ss:$16 sps:$4 sm:$0xff]   ;;  %v7915_v23 = vld [vmem:[#allocation11 + $0xcc] ss:$16 sps:$4 sm:$0xff]  }
 0x363   :  { %4422 = vmatpush1.bf16.msra.mxu0 %v7404_v12  ;;  %v4623_v46 = vpack.c.bf16 %v4615_v1, %v4615_v1  ;;  %v7907_v12 = vld [vmem:[#allocation11 + $0xa8] ss:$16 sps:$4 sm:$0xff]   ;;  %v7940_v52 = vld [vmem:[#allocation11 + $0x160] ss:$16 sps:$4 sm:$0xff]  }
 0x364   :  { %4586 = vmatpush1.bf16.msra.mxu1 %v7406_v28  ;;  %4423 = vmatprep.subr.bf16.mxu0 %v7413_v29  ;;  %v7910_v28 = vld [vmem:[#allocation11 + $0xc0] ss:$16 sps:$4 sm:$0xff]   ;;  %v7913_v29 = vld [vmem:[#allocation11 + $0xc8] ss:$16 sps:$4 sm:$0xff]  }
 0x365   :  { %4587 = vmatprep.subr.bf16.mxu1 %v7415_v30  ;;  %v7918_v30 = vld [vmem:[#allocation11 + $0xe4] ss:$16 sps:$4 sm:$0xff]   ;;  %v7931_v42 = vld [vmem:[#allocation11 + $0x128] ss:$16 sps:$4 sm:$0xff]  }
 0x366   :  { %v7949_v1 = vld [vmem:[#allocation11 + $0x188] ss:$16 sps:$4 sm:$0xff]  }
 0x367   :  { %4424 = vmatpush1.bf16.msra.mxu0 %v7412_v34  ;;  %v7927_v34 = vld [vmem:[#allocation11 + $0x10c] ss:$16 sps:$4 sm:$0xff]  }
 0x368   :  { %4588 = vmatpush1.bf16.msra.mxu1 %v7414_v35  ;;  %4425 = vmatprep.subr.bf16.mxu0 %v7421_v38  ;;  %v7922_v35 = vld [vmem:[#allocation11 + $0x100] ss:$16 sps:$4 sm:$0xff]   ;;  %v7925_v38 = vld [vmem:[#allocation11 + $0x108] ss:$16 sps:$4 sm:$0xff]  }
 0x369   :  { %4589 = vmatprep.subr.bf16.mxu1 %v7423_v40  ;;  %v7930_v40 = vld [vmem:[#allocation11 + $0x124] ss:$16 sps:$4 sm:$0xff]  }
 0x36b   :  { %4426 = vmatpush1.bf16.msra.mxu0 %v7420_v8  ;;  %v7934_v8 = vld [vmem:[#allocation11 + $0x140] ss:$16 sps:$4 sm:$0xff]  }
 0x36c   :  { %4590 = vmatpush1.bf16.msra.mxu1 %v7422_v43  ;;  %4427 = vmatprep.subr.bf16.mxu0 %v7429_v36  ;;  %v7937_v43 = vld [vmem:[#allocation11 + $0x148] ss:$16 sps:$4 sm:$0xff]   ;;  %v7942_v36 = vld [vmem:[#allocation11 + $0x164] ss:$16 sps:$4 sm:$0xff]  }
 0x36d   :  { %4591 = vmatprep.subr.bf16.mxu1 %v7431_v55  ;;  %v7945_v55 = vld [vmem:[#allocation11 + $0x16c] ss:$16 sps:$4 sm:$0xff]  }
 0x36f   :  { %4428 = vmatpush1.bf16.msra.mxu0 %v7428_v56  ;;  %v7943_v56 = vld [vmem:[#allocation11 + $0x168] ss:$16 sps:$4 sm:$0xff]  }
 0x370   :  { %4592 = vmatpush1.bf16.msra.mxu1 %v7430_v49  ;;  %6047 = vmatprep.subr.bf16.mxu0 %v7876_v57  ;;  %v7948_v49 = vld [vmem:[#allocation11 + $0x184] ss:$16 sps:$4 sm:$0xff]   ;;  %v7951_v57 = vld [vmem:[#allocation11 + $0x18c] ss:$16 sps:$4 sm:$0xff]  }
 0x371   :  { %6211 = vmatprep.subr.bf16.mxu1 %v7879_v63  ;;  %v7946_v63 = vld [vmem:[#allocation11 + $0x180] ss:$16 sps:$4 sm:$0xff]  }
 0x372   :  { %4442 = vmatmul.mubr.bf16.vlgmr.msra.gmra.mrb[12].mxu0 %v8879_v37 }
 0x373   :  { %4606 = vmatmul.mubr.bf16.vlgmr.msra.gmra.mrb[12].mxu1 %v8879_v37  ;;  %6048 = vmatpush1.bf16.msra.mxu0 %v7874_v2  ;;  %v7892_v37 = vld [vmem:[#allocation11 + $0x60] ss:$16 sps:$4 sm:$0xff]   ;;  %v7954_v2 = vld [vmem:[#allocation11 + $0x1a4] ss:$16 sps:$4 sm:$0xff]  }
 0x374   :  { %6079 = vmatprep.mubr.bf16.mxu0 %v4623_v46  ;;  %6212 = vmatpush1.bf16.msra.mxu1 %v7877_v13  ;;  %v7957_v13 = vld [vmem:[#allocation11 + $0x1ac] ss:$16 sps:$4 sm:$0xff]  }
 0x375   :  { %6243 = vmatprep.mubr.bf16.mxu1 %v4623_v46  ;;  %6049 = vmatprep.subr.bf16.mxu0 %v7882_v39  ;;  %v7952_v39 = vld [vmem:[#allocation11 + $0x1a0] ss:$16 sps:$4 sm:$0xff]   ;;  %v1597_v46 = vrot.slane %v8905_v4, %v8795_v7 }
 0x376   :  { %6213 = vmatprep.subr.bf16.mxu1 %v7885_v47  ;;  %v7955_v47 = vld [vmem:[#allocation11 + $0x1a8] ss:$16 sps:$4 sm:$0xff]  }
 0x377   :  { %6050 = vmatpush1.bf16.msra.mxu0 %v7880_v48  ;;  %v7960_v48 = vld [vmem:[#allocation11 + $0x1c4] ss:$16 sps:$4 sm:$0xff]  }
 0x378   :  { %6214 = vmatpush1.bf16.msra.mxu1 %v7883_v50  ;;  %6051 = vmatprep.subr.bf16.mxu0 %v7888_v51  ;;  %v7963_v50 = vld [vmem:[#allocation11 + $0x1cc] ss:$16 sps:$4 sm:$0xff]   ;;  %v1609_v51 = vrot.slane %v8905_v4, %v8807_v25 }
 0x379   :  { %6215 = vmatprep.subr.bf16.mxu1 %v7891_v53  ;;  %v7958_v53 = vld [vmem:[#allocation11 + $0x1c0] ss:$16 sps:$4 sm:$0xff]  }
 0x37b   :  { %6052 = vmatpush1.bf16.msra.mxu0 %v7886_v54  ;;  %v7761_v54 = vadd.f32 %v8899_v0, %v1597_v46  ;;  %v7970_v0 = vld [vmem:[#allocation11 + $0x200] ss:$16 sps:$4 sm:$0xff]   ;;  %v8026_v46 = vld [vmem:[#allocation11 + $0x324] ss:$16 sps:$4 sm:$0xff]  }
 0x37c   :  { %6216 = vmatpush1.bf16.msra.mxu1 %v7889_v61  ;;  %6053 = vmatprep.subr.bf16.mxu0 %v7894_v62  ;;  %v7961_v61 = vld [vmem:[#allocation11 + $0x1c8] ss:$16 sps:$4 sm:$0xff]   ;;  %v7966_v62 = vld [vmem:[#allocation11 + $0x1e4] ss:$16 sps:$4 sm:$0xff]  }
 0x37d   :  { %6217 = vmatprep.subr.bf16.mxu1 %v7897_v26  ;;  %v7969_v26 = vld [vmem:[#allocation11 + $0x1ec] ss:$16 sps:$4 sm:$0xff]  }
 0x37f   :  { %6054 = vmatpush1.bf16.msra.mxu0 %v7892_v37  ;;  %v7764_v37 = vadd.f32 %v8903_v15, %v1609_v51  ;;  %v7981_v15 = vld [vmem:[#allocation11 + $0x22c] ss:$16 sps:$4 sm:$0xff]   ;;  %v8032_v51 = vld [vmem:[#allocation11 + $0x344] ss:$16 sps:$4 sm:$0xff]  }
 0x380   :  { %6218 = vmatpush1.bf16.msra.mxu1 %v7895_v5  ;;  %6055 = vmatprep.subr.bf16.mxu0 %v7900_v10  ;;  %v7964_v5 = vld [vmem:[#allocation11 + $0x1e0] ss:$16 sps:$4 sm:$0xff]   ;;  %v4614_v10 = vmax.f32 %v7761_v54, 0.0 }
 0x381   :  { %6219 = vmatprep.subr.bf16.mxu1 %v7903_v59  ;;  %v7967_v59 = vld [vmem:[#allocation11 + $0x1e8] ss:$16 sps:$4 sm:$0xff]   ;;  %v8030_v54 = vld [vmem:[#allocation11 + $0x340] ss:$16 sps:$4 sm:$0xff]  }
 0x383   :  { %6056 = vmatpush1.bf16.msra.mxu0 %v7898_v11  ;;  %v7972_v11 = vld [vmem:[#allocation11 + $0x204] ss:$16 sps:$4 sm:$0xff]  }
 0x384   :  { %6220 = vmatpush1.bf16.msra.mxu1 %v7901_v17  ;;  %6057 = vmatprep.subr.bf16.mxu0 %v7906_v18  ;;  %v7975_v17 = vld [vmem:[#allocation11 + $0x20c] ss:$16 sps:$4 sm:$0xff]   ;;  %v4617_v18 = vmax.f32 %v7764_v37, 0.0  ;;  %v8036_v37 = vld [vmem:[#allocation11 + $0x360] ss:$16 sps:$4 sm:$0xff]  }
 0x385   :  { %6221 = vmatprep.subr.bf16.mxu1 %v7909_v19  ;;  %v4622_v19 = vpack.c.bf16 %v4614_v10, %v4614_v10  ;;  %v8044_v10 = vld [vmem:[#allocation11 + $0x384] ss:$16 sps:$4 sm:$0xff]  }
 0x387   :  { %6058 = vmatpush1.bf16.msra.mxu0 %v7904_v21  ;;  %v7973_v21 = vld [vmem:[#allocation11 + $0x208] ss:$16 sps:$4 sm:$0xff]  }
 0x388   :  { %6222 = vmatpush1.bf16.msra.mxu1 %v7907_v12  ;;  %6059 = vmatprep.subr.bf16.mxu0 %v7912_v22  ;;  %v7978_v12 = vld [vmem:[#allocation11 + $0x224] ss:$16 sps:$4 sm:$0xff]   ;;  %v4625_v22 = vpack.c.bf16 %v4617_v18, %v4617_v18 }
 0x389   :  { %6223 = vmatprep.subr.bf16.mxu1 %v7915_v23  ;;  %v7976_v23 = vld [vmem:[#allocation11 + $0x220] ss:$16 sps:$4 sm:$0xff]   ;;  %v8050_v18 = vld [vmem:[#allocation11 + $0x3a4] ss:$16 sps:$4 sm:$0xff]  }
 0x38b   :  { %6060 = vmatpush1.bf16.msra.mxu0 %v7910_v28  ;;  %v7979_v28 = vld [vmem:[#allocation11 + $0x228] ss:$16 sps:$4 sm:$0xff]  }
 0x38c   :  { %6224 = vmatpush1.bf16.msra.mxu1 %v7913_v29  ;;  %6061 = vmatprep.subr.bf16.mxu0 %v7918_v30  ;;  %v7984_v29 = vld [vmem:[#allocation11 + $0x244] ss:$16 sps:$4 sm:$0xff]   ;;  %v7987_v30 = vld [vmem:[#allocation11 + $0x24c] ss:$16 sps:$4 sm:$0xff]  }
 0x38d   :  { %6225 = vmatprep.subr.bf16.mxu1 %v7921_v31  ;;  %v7982_v31 = vld [vmem:[#allocation11 + $0x240] ss:$16 sps:$4 sm:$0xff]  }
 0x38f   :  { %6062 = vmatpush1.bf16.msra.mxu0 %v7916_v32  ;;  %v7985_v32 = vld [vmem:[#allocation11 + $0x248] ss:$16 sps:$4 sm:$0xff]  }
 0x390   :  { %6226 = vmatpush1.bf16.msra.mxu1 %v7919_v33  ;;  %6063 = vmatprep.subr.bf16.mxu0 %v7924_v58  ;;  %v7990_v33 = vld [vmem:[#allocation11 + $0x264] ss:$16 sps:$4 sm:$0xff]   ;;  %v7993_v58 = vld [vmem:[#allocation11 + $0x26c] ss:$16 sps:$4 sm:$0xff]  }
 0x391   :  { %6227 = vmatprep.subr.bf16.mxu1 %v7927_v34  ;;  %v7988_v34 = vld [vmem:[#allocation11 + $0x260] ss:$16 sps:$4 sm:$0xff]  }
 0x393   :  { %6064 = vmatpush1.bf16.msra.mxu0 %v7922_v35  ;;  %v7991_v35 = vld [vmem:[#allocation11 + $0x268] ss:$16 sps:$4 sm:$0xff]  }
 0x394   :  { %6228 = vmatpush1.bf16.msra.mxu1 %v7925_v38  ;;  %6065 = vmatprep.subr.bf16.mxu0 %v7930_v40  ;;  %v7996_v38 = vld [vmem:[#allocation11 + $0x284] ss:$16 sps:$4 sm:$0xff]   ;;  %v7999_v40 = vld [vmem:[#allocation11 + $0x28c] ss:$16 sps:$4 sm:$0xff]  }
 0x395   :  { %6229 = vmatprep.subr.bf16.mxu1 %v7933_v41  ;;  %v7994_v41 = vld [vmem:[#allocation11 + $0x280] ss:$16 sps:$4 sm:$0xff]  }
 0x397   :  { %6066 = vmatpush1.bf16.msra.mxu0 %v7928_v44  ;;  %v7997_v44 = vld [vmem:[#allocation11 + $0x288] ss:$16 sps:$4 sm:$0xff]  }
 0x398   :  { %6230 = vmatpush1.bf16.msra.mxu1 %v7931_v42  ;;  %6067 = vmatprep.subr.bf16.mxu0 %v7936_v27  ;;  %v8002_v42 = vld [vmem:[#allocation11 + $0x2a4] ss:$16 sps:$4 sm:$0xff]   ;;  %v8005_v27 = vld [vmem:[#allocation11 + $0x2ac] ss:$16 sps:$4 sm:$0xff]  }
 0x399   :  { %6231 = vmatprep.subr.bf16.mxu1 %v7939_v20  ;;  %v8000_v20 = vld [vmem:[#allocation11 + $0x2a0] ss:$16 sps:$4 sm:$0xff]  }
 0x39b   :  { %6068 = vmatpush1.bf16.msra.mxu0 %v7934_v8  ;;  %v8003_v8 = vld [vmem:[#allocation11 + $0x2a8] ss:$16 sps:$4 sm:$0xff]  }
 0x39c   :  { %6232 = vmatpush1.bf16.msra.mxu1 %v7937_v43  ;;  %6069 = vmatprep.subr.bf16.mxu0 %v7942_v36  ;;  %v8008_v43 = vld [vmem:[#allocation11 + $0x2c4] ss:$16 sps:$4 sm:$0xff]   ;;  %v8011_v36 = vld [vmem:[#allocation11 + $0x2cc] ss:$16 sps:$4 sm:$0xff]  }
 0x39d   :  { %6233 = vmatprep.subr.bf16.mxu1 %v7945_v55  ;;  %v8006_v55 = vld [vmem:[#allocation11 + $0x2c0] ss:$16 sps:$4 sm:$0xff]  }
 0x39f   :  { %6070 = vmatpush1.bf16.msra.mxu0 %v7940_v52  ;;  %v8009_v52 = vld [vmem:[#allocation11 + $0x2c8] ss:$16 sps:$4 sm:$0xff]  }
 0x3a0   :  { %6234 = vmatpush1.bf16.msra.mxu1 %v7943_v56  ;;  %6071 = vmatprep.subr.bf16.mxu0 %v7948_v49  ;;  %v8014_v56 = vld [vmem:[#allocation11 + $0x2e4] ss:$16 sps:$4 sm:$0xff]   ;;  %v8017_v49 = vld [vmem:[#allocation11 + $0x2ec] ss:$16 sps:$4 sm:$0xff]  }
 0x3a1   :  { %6235 = vmatprep.subr.bf16.mxu1 %v7951_v57  ;;  %v8012_v57 = vld [vmem:[#allocation11 + $0x2e0] ss:$16 sps:$4 sm:$0xff]  }
 0x3a3   :  { %6072 = vmatpush1.bf16.msra.mxu0 %v7946_v63  ;;  %v8015_v63 = vld [vmem:[#allocation11 + $0x2e8] ss:$16 sps:$4 sm:$0xff]  }
 0x3a4   :  { %6236 = vmatpush1.bf16.msra.mxu1 %v7949_v1  ;;  %6073 = vmatprep.subr.bf16.mxu0 %v7954_v2  ;;  %v8020_v1 = vld [vmem:[#allocation11 + $0x304] ss:$16 sps:$4 sm:$0xff]   ;;  %v8023_v2 = vld [vmem:[#allocation11 + $0x30c] ss:$16 sps:$4 sm:$0xff]  }
 0x3a5   :  { %6237 = vmatprep.subr.bf16.mxu1 %v7957_v13  ;;  %v8018_v13 = vld [vmem:[#allocation11 + $0x300] ss:$16 sps:$4 sm:$0xff]  }
 0x3a7   :  { %6074 = vmatpush1.bf16.msra.mxu0 %v7952_v39  ;;  %v8021_v39 = vld [vmem:[#allocation11 + $0x308] ss:$16 sps:$4 sm:$0xff]  }
 0x3a8   :  { %6238 = vmatpush1.bf16.msra.mxu1 %v7955_v47  ;;  %6075 = vmatprep.subr.bf16.mxu0 %v7960_v48  ;;  %v8029_v47 = vld [vmem:[#allocation11 + $0x32c] ss:$16 sps:$4 sm:$0xff]   ;;  %v8024_v48 = vld [vmem:[#allocation11 + $0x320] ss:$16 sps:$4 sm:$0xff]  }
 0x3a9   :  { %6239 = vmatprep.subr.bf16.mxu1 %v7963_v50  ;;  %v8027_v50 = vld [vmem:[#allocation11 + $0x328] ss:$16 sps:$4 sm:$0xff]  }
 0x3ab   :  { %6076 = vmatpush1.bf16.msra.mxu0 %v7958_v53  ;;  %v8035_v53 = vld [vmem:[#allocation11 + $0x34c] ss:$16 sps:$4 sm:$0xff]  }
 0x3ac   :  { %6240 = vmatpush1.bf16.msra.mxu1 %v7961_v61  ;;  %6077 = vmatprep.subr.bf16.mxu0 %v7966_v62  ;;  %v8033_v61 = vld [vmem:[#allocation11 + $0x348] ss:$16 sps:$4 sm:$0xff]   ;;  %v8038_v62 = vld [vmem:[#allocation11 + $0x364] ss:$16 sps:$4 sm:$0xff]  }
 0x3ad   :  { %6241 = vmatprep.subr.bf16.mxu1 %v7969_v26  ;;  %v8041_v26 = vld [vmem:[#allocation11 + $0x36c] ss:$16 sps:$4 sm:$0xff]  }
 0x3af   :  { %6078 = vmatpush1.bf16.msra.mxu0 %v7964_v5  ;;  %v8039_v5 = vld [vmem:[#allocation11 + $0x368] ss:$16 sps:$4 sm:$0xff]  }
 0x3b0   :  { %6242 = vmatpush1.bf16.msra.mxu1 %v7967_v59  ;;  %6088 = vmatprep.subr.bf16.mxu0 %v7972_v11  ;;  %v8047_v59 = vld [vmem:[#allocation11 + $0x38c] ss:$16 sps:$4 sm:$0xff]   ;;  %v8042_v11 = vld [vmem:[#allocation11 + $0x380] ss:$16 sps:$4 sm:$0xff]  }
 0x3b1   :  { %6252 = vmatprep.subr.bf16.mxu1 %v7975_v17  ;;  %v8045_v17 = vld [vmem:[#allocation11 + $0x388] ss:$16 sps:$4 sm:$0xff]  }
 0x3b2   :  { %6080 = vmatmul.mubr.bf16.vlgmr.msra.gmra.mrb[16].mxu0 %v4622_v19 }
 0x3b3   :  { %6244 = vmatmul.mubr.bf16.vlgmr.msra.gmra.mrb[16].mxu1 %v4622_v19  ;;  %6089 = vmatpush1.bf16.msra.mxu0 %v7970_v0  ;;  %v8053_v0 = vld [vmem:[#allocation11 + $0x3ac] ss:$16 sps:$4 sm:$0xff]   ;;  %v8048_v19 = vld [vmem:[#allocation11 + $0x3a0] ss:$16 sps:$4 sm:$0xff]  }
 0x3b4   :  { %6120 = vmatprep.mubr.bf16.mxu0 %v4625_v22  ;;  %6253 = vmatpush1.bf16.msra.mxu1 %v7973_v21  ;;  %v1605_v21 = vrot.slane %v8905_v4, %v8832_v14 }
 0x3b5   :  { %6284 = vmatprep.mubr.bf16.mxu1 %v4625_v22  ;;  %6090 = vmatprep.subr.bf16.mxu0 %v7978_v12  ;;  %v8051_v12 = vld [vmem:[#allocation11 + $0x3a8] ss:$16 sps:$4 sm:$0xff]   ;;  %v8056_v22 = vld [vmem:[#allocation11 + $0x3c4] ss:$16 sps:$4 sm:$0xff]  }
 0x3b6   :  { %6254 = vmatprep.subr.bf16.mxu1 %v7981_v15  ;;  %v8059_v15 = vld [vmem:[#allocation11 + $0x3cc] ss:$16 sps:$4 sm:$0xff]  }
 0x3b7   :  { %6091 = vmatpush1.bf16.msra.mxu0 %v7976_v23  ;;  %v8054_v23 = vld [vmem:[#allocation11 + $0x3c0] ss:$16 sps:$4 sm:$0xff]  }
 0x3b8   :  { %6255 = vmatpush1.bf16.msra.mxu1 %v7979_v28  ;;  %6092 = vmatprep.subr.bf16.mxu0 %v7984_v29  ;;  %v7763_v28 = vadd.f32 %v8901_v3, %v1605_v21  ;;  %v8057_v29 = vld [vmem:[#allocation11 + $0x3c8] ss:$16 sps:$4 sm:$0xff]   ;;  %v8131_v21 = vld [vmem:[#allocation11 + $0x54c] ss:$16 sps:$4 sm:$0xff]  }
 0x3b9   :  { %6256 = vmatprep.subr.bf16.mxu1 %v7987_v30  ;;  %v8062_v30 = vld [vmem:[#allocation11 + $0x3e4] ss:$16 sps:$4 sm:$0xff]   ;;  %v8069_v3 = vld [vmem:[#allocation11 + $0x408] ss:$16 sps:$4 sm:$0xff]  }
 0x3bb   :  { %6093 = vmatpush1.bf16.msra.mxu0 %v7982_v31  ;;  %v8065_v31 = vld [vmem:[#allocation11 + $0x3ec] ss:$16 sps:$4 sm:$0xff]  }
 0x3bc   :  { %6257 = vmatpush1.bf16.msra.mxu1 %v7985_v32  ;;  %6094 = vmatprep.subr.bf16.mxu0 %v7990_v33  ;;  %v8060_v32 = vld [vmem:[#allocation11 + $0x3e0] ss:$16 sps:$4 sm:$0xff]   ;;  %v4616_v33 = vmax.f32 %v7763_v28, 0.0 }
 0x3bd   :  { %6258 = vmatprep.subr.bf16.mxu1 %v7993_v58  ;;  %v8063_v58 = vld [vmem:[#allocation11 + $0x3e8] ss:$16 sps:$4 sm:$0xff]   ;;  %v8132_v28 = vld [vmem:[#allocation11 + $0x560] ss:$16 sps:$4 sm:$0xff]  }
 0x3bf   :  { %6095 = vmatpush1.bf16.msra.mxu0 %v7988_v34  ;;  %v8068_v34 = vld [vmem:[#allocation11 + $0x404] ss:$16 sps:$4 sm:$0xff]  }
 0x3c0   :  { %6259 = vmatpush1.bf16.msra.mxu1 %v7991_v35  ;;  %6096 = vmatprep.subr.bf16.mxu0 %v7996_v38  ;;  %v8071_v35 = vld [vmem:[#allocation11 + $0x40c] ss:$16 sps:$4 sm:$0xff]   ;;  %v8066_v38 = vld [vmem:[#allocation11 + $0x400] ss:$16 sps:$4 sm:$0xff]  }
 0x3c1   :  { %6260 = vmatprep.subr.bf16.mxu1 %v7999_v40  ;;  %v4624_v40 = vpack.c.bf16 %v4616_v33, %v4616_v33  ;;  %v8141_v33 = vld [vmem:[#allocation11 + $0x588] ss:$16 sps:$4 sm:$0xff]  }
 0x3c3   :  { %6097 = vmatpush1.bf16.msra.mxu0 %v7994_v41  ;;  %v8074_v41 = vld [vmem:[#allocation11 + $0x424] ss:$16 sps:$4 sm:$0xff]  }
 0x3c4   :  { %6261 = vmatpush1.bf16.msra.mxu1 %v7997_v44  ;;  %6098 = vmatprep.subr.bf16.mxu0 %v8002_v42  ;;  %v8077_v44 = vld [vmem:[#allocation11 + $0x42c] ss:$16 sps:$4 sm:$0xff]   ;;  %v8072_v42 = vld [vmem:[#allocation11 + $0x420] ss:$16 sps:$4 sm:$0xff]  }
 0x3c5   :  { %6262 = vmatprep.subr.bf16.mxu1 %v8005_v27  ;;  %v8075_v27 = vld [vmem:[#allocation11 + $0x428] ss:$16 sps:$4 sm:$0xff]  }
 0x3c7   :  { %6099 = vmatpush1.bf16.msra.mxu0 %v8000_v20  ;;  %v8080_v20 = vld [vmem:[#allocation11 + $0x444] ss:$16 sps:$4 sm:$0xff]  }
 0x3c8   :  { %6263 = vmatpush1.bf16.msra.mxu1 %v8003_v8  ;;  %6100 = vmatprep.subr.bf16.mxu0 %v8008_v43  ;;  %v8083_v8 = vld [vmem:[#allocation11 + $0x44c] ss:$16 sps:$4 sm:$0xff]   ;;  %v8078_v43 = vld [vmem:[#allocation11 + $0x440] ss:$16 sps:$4 sm:$0xff]  }
 0x3c9   :  { %6264 = vmatprep.subr.bf16.mxu1 %v8011_v36  ;;  %v8081_v36 = vld [vmem:[#allocation11 + $0x448] ss:$16 sps:$4 sm:$0xff]  }
 0x3cb   :  { %6101 = vmatpush1.bf16.msra.mxu0 %v8006_v55  ;;  %v8086_v55 = vld [vmem:[#allocation11 + $0x464] ss:$16 sps:$4 sm:$0xff]  }
 0x3cc   :  { %6265 = vmatpush1.bf16.msra.mxu1 %v8009_v52  ;;  %6102 = vmatprep.subr.bf16.mxu0 %v8014_v56  ;;  %v8089_v52 = vld [vmem:[#allocation11 + $0x46c] ss:$16 sps:$4 sm:$0xff]   ;;  %v8084_v56 = vld [vmem:[#allocation11 + $0x460] ss:$16 sps:$4 sm:$0xff]  }
 0x3cd   :  { %6266 = vmatprep.subr.bf16.mxu1 %v8017_v49  ;;  %v8087_v49 = vld [vmem:[#allocation11 + $0x468] ss:$16 sps:$4 sm:$0xff]  }
 0x3cf   :  { %6103 = vmatpush1.bf16.msra.mxu0 %v8012_v57  ;;  %v8092_v57 = vld [vmem:[#allocation11 + $0x484] ss:$16 sps:$4 sm:$0xff]  }
 0x3d0   :  { %6267 = vmatpush1.bf16.msra.mxu1 %v8015_v63  ;;  %6104 = vmatprep.subr.bf16.mxu0 %v8020_v1  ;;  %v8095_v63 = vld [vmem:[#allocation11 + $0x48c] ss:$16 sps:$4 sm:$0xff]   ;;  %v8090_v1 = vld [vmem:[#allocation11 + $0x480] ss:$16 sps:$4 sm:$0xff]  }
 0x3d1   :  { %6268 = vmatprep.subr.bf16.mxu1 %v8023_v2  ;;  %v8093_v2 = vld [vmem:[#allocation11 + $0x488] ss:$16 sps:$4 sm:$0xff]  }
 0x3d3   :  { %6105 = vmatpush1.bf16.msra.mxu0 %v8018_v13  ;;  %v8098_v13 = vld [vmem:[#allocation11 + $0x4a4] ss:$16 sps:$4 sm:$0xff]  }
 0x3d4   :  { %6269 = vmatpush1.bf16.msra.mxu1 %v8021_v39  ;;  %6106 = vmatprep.subr.bf16.mxu0 %v8026_v46  ;;  %v8101_v39 = vld [vmem:[#allocation11 + $0x4ac] ss:$16 sps:$4 sm:$0xff]   ;;  %v8096_v46 = vld [vmem:[#allocation11 + $0x4a0] ss:$16 sps:$4 sm:$0xff]  }
 0x3d5   :  { %6270 = vmatprep.subr.bf16.mxu1 %v8029_v47  ;;  %v8099_v47 = vld [vmem:[#allocation11 + $0x4a8] ss:$16 sps:$4 sm:$0xff]  }
 0x3d7   :  { %6107 = vmatpush1.bf16.msra.mxu0 %v8024_v48  ;;  %v8104_v48 = vld [vmem:[#allocation11 + $0x4c4] ss:$16 sps:$4 sm:$0xff]  }
 0x3d8   :  { %6271 = vmatpush1.bf16.msra.mxu1 %v8027_v50  ;;  %6108 = vmatprep.subr.bf16.mxu0 %v8032_v51  ;;  %v8107_v50 = vld [vmem:[#allocation11 + $0x4cc] ss:$16 sps:$4 sm:$0xff]   ;;  %v8102_v51 = vld [vmem:[#allocation11 + $0x4c0] ss:$16 sps:$4 sm:$0xff]  }
 0x3d9   :  { %6272 = vmatprep.subr.bf16.mxu1 %v8035_v53  ;;  %v8105_v53 = vld [vmem:[#allocation11 + $0x4c8] ss:$16 sps:$4 sm:$0xff]  }
 0x3db   :  { %6109 = vmatpush1.bf16.msra.mxu0 %v8030_v54  ;;  %v8110_v54 = vld [vmem:[#allocation11 + $0x4e4] ss:$16 sps:$4 sm:$0xff]  }
 0x3dc   :  { %6273 = vmatpush1.bf16.msra.mxu1 %v8033_v61  ;;  %6110 = vmatprep.subr.bf16.mxu0 %v8038_v62  ;;  %v8113_v61 = vld [vmem:[#allocation11 + $0x4ec] ss:$16 sps:$4 sm:$0xff]   ;;  %v8108_v62 = vld [vmem:[#allocation11 + $0x4e0] ss:$16 sps:$4 sm:$0xff]  }
 0x3dd   :  { %6274 = vmatprep.subr.bf16.mxu1 %v8041_v26  ;;  %v8111_v26 = vld [vmem:[#allocation11 + $0x4e8] ss:$16 sps:$4 sm:$0xff]  }
 0x3df   :  { %6111 = vmatpush1.bf16.msra.mxu0 %v8036_v37  ;;  %v8116_v37 = vld [vmem:[#allocation11 + $0x504] ss:$16 sps:$4 sm:$0xff]  }
 0x3e0   :  { %6275 = vmatpush1.bf16.msra.mxu1 %v8039_v5  ;;  %6112 = vmatprep.subr.bf16.mxu0 %v8044_v10  ;;  %v8119_v5 = vld [vmem:[#allocation11 + $0x50c] ss:$16 sps:$4 sm:$0xff]   ;;  %v8114_v10 = vld [vmem:[#allocation11 + $0x500] ss:$16 sps:$4 sm:$0xff]  }
 0x3e1   :  { %6276 = vmatprep.subr.bf16.mxu1 %v8047_v59  ;;  %v8117_v59 = vld [vmem:[#allocation11 + $0x508] ss:$16 sps:$4 sm:$0xff]  }
 0x3e3   :  { %6113 = vmatpush1.bf16.msra.mxu0 %v8042_v11  ;;  %v8122_v11 = vld [vmem:[#allocation11 + $0x524] ss:$16 sps:$4 sm:$0xff]  }
 0x3e4   :  { %6277 = vmatpush1.bf16.msra.mxu1 %v8045_v17  ;;  %6114 = vmatprep.subr.bf16.mxu0 %v8050_v18  ;;  %v8125_v17 = vld [vmem:[#allocation11 + $0x52c] ss:$16 sps:$4 sm:$0xff]   ;;  %v8120_v18 = vld [vmem:[#allocation11 + $0x520] ss:$16 sps:$4 sm:$0xff]  }
 0x3e5   :  { %6278 = vmatprep.subr.bf16.mxu1 %v8053_v0  ;;  %v8123_v0 = vld [vmem:[#allocation11 + $0x528] ss:$16 sps:$4 sm:$0xff]  }
 0x3e7   :  { %6115 = vmatpush1.bf16.msra.mxu0 %v8048_v19  ;;  %v8128_v19 = vld [vmem:[#allocation11 + $0x544] ss:$16 sps:$4 sm:$0xff]  }
 0x3e8   :  { %6279 = vmatpush1.bf16.msra.mxu1 %v8051_v12  ;;  %6116 = vmatprep.subr.bf16.mxu0 %v8056_v22  ;;  %v8126_v12 = vld [vmem:[#allocation11 + $0x540] ss:$16 sps:$4 sm:$0xff]   ;;  %v8129_v22 = vld [vmem:[#allocation11 + $0x548] ss:$16 sps:$4 sm:$0xff]  }
 0x3e9   :  { %6280 = vmatprep.subr.bf16.mxu1 %v8059_v15  ;;  %v8134_v15 = vld [vmem:[#allocation11 + $0x564] ss:$16 sps:$4 sm:$0xff]  }
 0x3eb   :  { %6117 = vmatpush1.bf16.msra.mxu0 %v8054_v23  ;;  %v8137_v23 = vld [vmem:[#allocation11 + $0x56c] ss:$16 sps:$4 sm:$0xff]  }
 0x3ec   :  { %6281 = vmatpush1.bf16.msra.mxu1 %v8057_v29  ;;  %6118 = vmatprep.subr.bf16.mxu0 %v8062_v30  ;;  %v8135_v29 = vld [vmem:[#allocation11 + $0x568] ss:$16 sps:$4 sm:$0xff]   ;;  %v8140_v30 = vld [vmem:[#allocation11 + $0x584] ss:$16 sps:$4 sm:$0xff]  }
 0x3ed   :  { %6282 = vmatprep.subr.bf16.mxu1 %v8065_v31  ;;  %v8143_v31 = vld [vmem:[#allocation11 + $0x58c] ss:$16 sps:$4 sm:$0xff]  }
 0x3ef   :  { %6119 = vmatpush1.bf16.msra.mxu0 %v8060_v32  ;;  %v8138_v32 = vld [vmem:[#allocation11 + $0x580] ss:$16 sps:$4 sm:$0xff]  }
 0x3f0   :  { %6283 = vmatpush1.bf16.msra.mxu1 %v8063_v58  ;;  %6129 = vmatprep.subr.bf16.mxu0 %v8068_v34  ;;  %v8146_v58 = vld [vmem:[#allocation11 + $0x5a4] ss:$16 sps:$4 sm:$0xff]   ;;  %v8149_v34 = vld [vmem:[#allocation11 + $0x5ac] ss:$16 sps:$4 sm:$0xff]  }
 0x3f1   :  { %6293 = vmatprep.subr.bf16.mxu1 %v8071_v35  ;;  %v8144_v35 = vld [vmem:[#allocation11 + $0x5a0] ss:$16 sps:$4 sm:$0xff]  }
 0x3f2   :  { %6121 = vmatmul.mubr.bf16.vlgmr.msra.gmra.mrb[16].mxu0 %v4624_v40 }
 0x3f3   :  { %6285 = vmatmul.mubr.bf16.vlgmr.msra.gmra.mrb[16].mxu1 %v4624_v40  ;;  %6130 = vmatpush1.bf16.msra.mxu0 %v8066_v38  ;;  %v8147_v38 = vld [vmem:[#allocation11 + $0x5a8] ss:$16 sps:$4 sm:$0xff]   ;;  %v8152_v40 = vld [vmem:[#allocation11 + $0x5c4] ss:$16 sps:$4 sm:$0xff]  }
 0x3f4   :  { %6294 = vmatpush1.bf16.msra.mxu1 %v8069_v3  ;;  %6131 = vmatprep.subr.bf16.mxu0 %v8074_v41  ;;  %v8155_v3 = vld [vmem:[#allocation11 + $0x5cc] ss:$16 sps:$4 sm:$0xff]   ;;  %v8150_v41 = vld [vmem:[#allocation11 + $0x5c0] ss:$16 sps:$4 sm:$0xff]  }
 0x3f5   :  { %6295 = vmatprep.subr.bf16.mxu1 %v8077_v44  ;;  %v8153_v44 = vld [vmem:[#allocation11 + $0x5c8] ss:$16 sps:$4 sm:$0xff]  }
 0x3f7   :  { %6132 = vmatpush1.bf16.msra.mxu0 %v8072_v42  ;;  %v8158_v42 = vld [vmem:[#allocation11 + $0x5e4] ss:$16 sps:$4 sm:$0xff]  }
 0x3f8   :  { %6296 = vmatpush1.bf16.msra.mxu1 %v8075_v27  ;;  %6133 = vmatprep.subr.bf16.mxu0 %v8080_v20  ;;  %v8161_v27 = vld [vmem:[#allocation11 + $0x5ec] ss:$16 sps:$4 sm:$0xff]   ;;  %v8156_v20 = vld [vmem:[#allocation11 + $0x5e0] ss:$16 sps:$4 sm:$0xff]  }
 0x3f9   :  { %6297 = vmatprep.subr.bf16.mxu1 %v8083_v8  ;;  %v8159_v8 = vld [vmem:[#allocation11 + $0x5e8] ss:$16 sps:$4 sm:$0xff]  }
 0x3fb   :  { %6134 = vmatpush1.bf16.msra.mxu0 %v8078_v43  ;;  %v8164_v43 = vld [vmem:[#allocation11 + $0x604] ss:$16 sps:$4 sm:$0xff]  }
 0x3fc   :  { %6298 = vmatpush1.bf16.msra.mxu1 %v8081_v36  ;;  %6135 = vmatprep.subr.bf16.mxu0 %v8086_v55  ;;  %v8167_v36 = vld [vmem:[#allocation11 + $0x60c] ss:$16 sps:$4 sm:$0xff]   ;;  %v1613_v55 = vrot.slane %v8905_v4, %v317_v60 }
 0x3fd   :  { %6299 = vmatprep.subr.bf16.mxu1 %v8089_v52  ;;  %v1617_v52 = vrot.slane %v8905_v4, %v321_v24 }
 0x3ff   :  { %6136 = vmatpush1.bf16.msra.mxu0 %v8084_v56  ;;  %v1625_v56 = vrot.slane %v8905_v4, %v329_v16  ;;  %v8170_v16 = vld [vmem:[#allocation11 + $0x624] ss:$16 sps:$4 sm:$0xff]   ;;  %v8173_v4 = vld [vmem:[#allocation11 + $0x62c] ss:$16 sps:$4 sm:$0xff]  }
 0x400   :  { %6300 = vmatpush1.bf16.msra.mxu1 %v8087_v49  ;;  %6137 = vmatprep.subr.bf16.mxu0 %v8092_v57 }
 0x401   :  { %6301 = vmatprep.subr.bf16.mxu1 %v8095_v63 }
 0x403   :  { %6138 = vmatpush1.bf16.msra.mxu0 %v8090_v1 }
 0x404   :  { %6302 = vmatpush1.bf16.msra.mxu1 %v8093_v2  ;;  %6139 = vmatprep.subr.bf16.mxu0 %v8098_v13 }
 0x405   :  { %6303 = vmatprep.subr.bf16.mxu1 %v8101_v39 }
 0x407   :  { %6140 = vmatpush1.bf16.msra.mxu0 %v8096_v46 }
 0x408   :  { %6304 = vmatpush1.bf16.msra.mxu1 %v8099_v47  ;;  %6141 = vmatprep.subr.bf16.mxu0 %v8104_v48 }
 0x409   :  { %6305 = vmatprep.subr.bf16.mxu1 %v8107_v50 }
 0x40b   :  { %6142 = vmatpush1.bf16.msra.mxu0 %v8102_v51 }
 0x40c   :  { %6306 = vmatpush1.bf16.msra.mxu1 %v8105_v53  ;;  %6143 = vmatprep.subr.bf16.mxu0 %v8110_v54  ;;  %v8162_v54 = vld [vmem:[#allocation11 + $0x600] ss:$16 sps:$4 sm:$0xff]  }
 0x40d   :  { %6307 = vmatprep.subr.bf16.mxu1 %v8113_v61  ;;  %v8165_v61 = vld [vmem:[#allocation11 + $0x608] ss:$16 sps:$4 sm:$0xff]  }
 0x40f   :  { %6144 = vmatpush1.bf16.msra.mxu0 %v8108_v62 }
 0x410   :  { %6308 = vmatpush1.bf16.msra.mxu1 %v8111_v26  ;;  %6145 = vmatprep.subr.bf16.mxu0 %v8116_v37  ;;  %v8168_v37 = vld [vmem:[#allocation11 + $0x620] ss:$16 sps:$4 sm:$0xff]  }
 0x411   :  { %6309 = vmatprep.subr.bf16.mxu1 %v8119_v5  ;;  %v8171_v5 = vld [vmem:[#allocation11 + $0x628] ss:$16 sps:$4 sm:$0xff]  }
 0x413   :  { %6146 = vmatpush1.bf16.msra.mxu0 %v8114_v10  ;;  %v8176_v10 = vld [vmem:[#allocation11 + $0x644] ss:$16 sps:$4 sm:$0xff]  }
 0x414   :  { %6310 = vmatpush1.bf16.msra.mxu1 %v8117_v59  ;;  %6147 = vmatprep.subr.bf16.mxu0 %v8122_v11  ;;  %v8179_v59 = vld [vmem:[#allocation11 + $0x64c] ss:$16 sps:$4 sm:$0xff]   ;;  %v8174_v11 = vld [vmem:[#allocation11 + $0x640] ss:$16 sps:$4 sm:$0xff]  }
 0x415   :  { %6311 = vmatprep.subr.bf16.mxu1 %v8125_v17  ;;  %v8177_v17 = vld [vmem:[#allocation11 + $0x648] ss:$16 sps:$4 sm:$0xff]  }
 0x417   :  { %6148 = vmatpush1.bf16.msra.mxu0 %v8120_v18  ;;  %v8182_v18 = vld [vmem:[#allocation11 + $0x664] ss:$16 sps:$4 sm:$0xff]  }
 0x418   :  { %6312 = vmatpush1.bf16.msra.mxu1 %v8123_v0  ;;  %6149 = vmatprep.subr.bf16.mxu0 %v8128_v19  ;;  %v8185_v0 = vld [vmem:[#allocation11 + $0x66c] ss:$16 sps:$4 sm:$0xff]   ;;  %v8180_v19 = vld [vmem:[#allocation11 + $0x660] ss:$16 sps:$4 sm:$0xff]  }
 0x419   :  { %6313 = vmatprep.subr.bf16.mxu1 %v8131_v21  ;;  %v8183_v21 = vld [vmem:[#allocation11 + $0x668] ss:$16 sps:$4 sm:$0xff]  }
 0x41b   :  { %6150 = vmatpush1.bf16.msra.mxu0 %v8126_v12  ;;  %v8188_v12 = vld [vmem:[#allocation11 + $0x684] ss:$16 sps:$4 sm:$0xff]  }
 0x41c   :  { %6314 = vmatpush1.bf16.msra.mxu1 %v8129_v22  ;;  %6151 = vmatprep.subr.bf16.mxu0 %v8134_v15  ;;  %v8191_v22 = vld [vmem:[#allocation11 + $0x68c] ss:$16 sps:$4 sm:$0xff]   ;;  %v8186_v15 = vld [vmem:[#allocation11 + $0x680] ss:$16 sps:$4 sm:$0xff]  }
 0x41d   :  { %6315 = vmatprep.subr.bf16.mxu1 %v8137_v23  ;;  %v8189_v23 = vld [vmem:[#allocation11 + $0x688] ss:$16 sps:$4 sm:$0xff]  }
 0x41f   :  { %6152 = vmatpush1.bf16.msra.mxu0 %v8132_v28  ;;  %v8194_v28 = vld [vmem:[#allocation11 + $0x6a4] ss:$16 sps:$4 sm:$0xff]  }
 0x420   :  { %6316 = vmatpush1.bf16.msra.mxu1 %v8135_v29  ;;  %6153 = vmatprep.subr.bf16.mxu0 %v8140_v30  ;;  %v8197_v29 = vld [vmem:[#allocation11 + $0x6ac] ss:$16 sps:$4 sm:$0xff]   ;;  %v8192_v30 = vld [vmem:[#allocation11 + $0x6a0] ss:$16 sps:$4 sm:$0xff]  }
 0x421   :  { %6317 = vmatprep.subr.bf16.mxu1 %v8143_v31  ;;  %v8195_v31 = vld [vmem:[#allocation11 + $0x6a8] ss:$16 sps:$4 sm:$0xff]  }
 0x423   :  { %6154 = vmatpush1.bf16.msra.mxu0 %v8138_v32  ;;  %v8200_v32 = vld [vmem:[#allocation11 + $0x6c4] ss:$16 sps:$4 sm:$0xff]  }
 0x424   :  { %6318 = vmatpush1.bf16.msra.mxu1 %v8141_v33  ;;  %6155 = vmatprep.subr.bf16.mxu0 %v8146_v58  ;;  %v8203_v33 = vld [vmem:[#allocation11 + $0x6cc] ss:$16 sps:$4 sm:$0xff]   ;;  %v8198_v58 = vld [vmem:[#allocation11 + $0x6c0] ss:$16 sps:$4 sm:$0xff]  }
 0x425   :  { %6319 = vmatprep.subr.bf16.mxu1 %v8149_v34  ;;  %v8201_v34 = vld [vmem:[#allocation11 + $0x6c8] ss:$16 sps:$4 sm:$0xff]  }
 0x427   :  { %6156 = vmatpush1.bf16.msra.mxu0 %v8144_v35  ;;  %v8206_v35 = vld [vmem:[#allocation11 + $0x6e4] ss:$16 sps:$4 sm:$0xff]  }
 0x428   :  { %6320 = vmatpush1.bf16.msra.mxu1 %v8147_v38  ;;  %6157 = vmatprep.subr.bf16.mxu0 %v8152_v40  ;;  %v8209_v38 = vld [vmem:[#allocation11 + $0x6ec] ss:$16 sps:$4 sm:$0xff]   ;;  %v8204_v40 = vld [vmem:[#allocation11 + $0x6e0] ss:$16 sps:$4 sm:$0xff]  }
 0x429   :  { %6321 = vmatprep.subr.bf16.mxu1 %v8155_v3  ;;  %v8207_v3 = vld [vmem:[#allocation11 + $0x6e8] ss:$16 sps:$4 sm:$0xff]  }
 0x42b   :  { %6158 = vmatpush1.bf16.msra.mxu0 %v8150_v41  ;;  %v8260_v41 = vld [vmem:[#allocation10] sm:$0xff] }
 0x42c   :  { %6322 = vmatpush1.bf16.msra.mxu1 %v8153_v44  ;;  %6159 = vmatprep.subr.bf16.mxu0 %v8158_v42  ;;  %v1621_v44 = vrot.slane %v8260_v41, %v325_v45  ;;  %v8212_v42 = vld [vmem:[#allocation11 + $0x704] ss:$16 sps:$4 sm:$0xff]  }
 0x42d   :  { %6323 = vmatprep.subr.bf16.mxu1 %v8161_v27  ;;  %v8215_v27 = vld [vmem:[#allocation11 + $0x70c] ss:$16 sps:$4 sm:$0xff]   ;;  %v8227_v45 = vld [vmem:[#allocation14 + $0x40] sm:$0xff]  }
 0x42f   :  { %6160 = vmatpush1.bf16.msra.mxu0 %v8156_v20  ;;  %v8210_v20 = vld [vmem:[#allocation11 + $0x700] ss:$16 sps:$4 sm:$0xff]  }
 0x430   :  { %6324 = vmatpush1.bf16.msra.mxu1 %v8159_v8  ;;  %6170 = vmatprep.subr.bf16.mxu0 %v8164_v43  ;;  %v8213_v8 = vld [vmem:[#allocation11 + $0x708] ss:$16 sps:$4 sm:$0xff]  }
 0x431   :  { %6334 = vmatprep.subr.bf16.mxu1 %v8167_v36  ;;  %v8218_v36 = vld [vmem:[#allocation11 + $0x724] ss:$16 sps:$4 sm:$0xff]  }
 0x445   :  { %v4443_v49 = vpop.f32.mrb[12].mxu0 }
 0x446   :  { %v7765_v57 = vadd.f32 %v4443_v49, %v1613_v55  ;;  %v8929_v63 = vpop.f32.mrb[12].mxu1  ;;  %v4445_v1 = vpop.f32.mrb[13].mxu0  ;;  %v8221_v55 = vld [vmem:[#allocation11 + $0x72c] ss:$16 sps:$4 sm:$0xff]   ;;  %v8222_v49 = vld [vmem:[#allocation14 + $0x80] sm:$0xff]  }
 0x447   :  { %v7766_v2 = vadd.f32 %v4445_v1, %v1617_v52  ;;  %v4609_v13 = vpop.f32.mrb[13].mxu1  ;;  %v4447_v39 = vpop.f32.mrb[14].mxu0  ;;  %v7767_v43 = vadd.f32 %v8929_v63, %v1621_v44  ;;  %v8216_v52 = vld [vmem:[#allocation11 + $0x720] ss:$16 sps:$4 sm:$0xff]  }
 0x448   :  { %v4618_v46 = vmax.f32 %v7765_v57, 0.0  ;;  %v7768_v47 = vadd.f32 %v4609_v13, %v1625_v56  ;;  %v4611_v48 = vpop.f32.mrb[14].mxu1  ;;  %v4448_v60 = vpop.f32.mrb[15].mxu0  ;;  %v8219_v56 = vld [vmem:[#allocation11 + $0x728] ss:$16 sps:$4 sm:$0xff]   ;;  %v8230_v63 = vld [vmem:[#allocation14 + $0x48] sm:$0xff]  }
 0x449   :  { %v4619_v50 = vmax.f32 %v7766_v2, 0.0  ;;  %v4612_v51 = vpop.f32.mrb[15].mxu1  ;;  %v4620_v6 = vmax.f32 %v7767_v43, 0.0  ;;  %v8228_v57 = vld [vmem:[#allocation14] sm:$0xff]   ;;  %v8556_v2 = vmov 0   ;;  %v8223_v13 = vld [vmem:[#allocation14 + $0x88] sm:$0xff]  }
 0x44a   :  { %v4621_v53 = vmax.f32 %v7768_v47, 0.0  ;;  %v4626_v62 = vpack.c.bf16 %v4618_v46, %v4618_v46  ;;  %v8231_v39 = vld [vmem:[#allocation14 + $0x8] sm:$0xff]   ;;  %v8233_v46 = vld [vmem:[#allocation14 + $0x50] sm:$0xff]   ;;  %v8236_v60 = vld [vmem:[#allocation14 + $0x58] sm:$0xff]  }
 0x44b   :  { %v4627_v24 = vpack.c.bf16 %v4619_v50, %v4619_v50  ;;  %v4628_v1 = vpack.c.bf16 %v4620_v6, %v4620_v6  ;;  %v8224_v47 = vld [vmem:[#allocation14 + $0x90] sm:$0xff]   ;;  %v8225_v50 = vld [vmem:[#allocation14 + $0x98] sm:$0xff]  }
 0x44c   :  { %v4629_v26 = vpack.c.bf16 %v4621_v53, %v4621_v53  ;;  %v8234_v48 = vld [vmem:[#allocation14 + $0x10] sm:$0xff]   ;;  %v8237_v51 = vld [vmem:[#allocation14 + $0x18] sm:$0xff]   ;;  %v8239_v53 = vld [vmem:[#allocation14 + $0x60] sm:$0xff]  }
 0x44d   :  { %6161 = vmatprep.mubr.bf16.mxu0 %v4627_v24  ;;  %6325 = vmatprep.mubr.bf16.mxu1 %v4627_v24  ;;  %v8226_v24 = vld [vmem:[#allocation14 + $0xa0] sm:$0xff]   ;;  %v8252_v43 = vld [vmem:[#allocation17 + $0x8] sm:$0xff]  }
 0x44e   :  { %6162 = vmatmul.mubr.bf16.vlgmr.msra.gmra.mrb[16].mxu0 %v4626_v62  ;;  %6326 = vmatmul.mubr.bf16.vlgmr.msra.gmra.mrb[16].mxu1 %v4626_v62  ;;  %v8229_v62 = vld [vmem:[#allocation14 + $0xa8] sm:$0xff]   ;;  %v8257_v6 = vld [vmem:[#allocation17 + $0x30] sm:$0xff]  }
 0x44f   :  { %6171 = vmatpush1.bf16.msra.mxu0 %v8162_v54  ;;  %6335 = vmatpush1.bf16.msra.mxu1 %v8165_v61  ;;  %v8240_v54 = vld [vmem:[#allocation14 + $0x20] sm:$0xff]   ;;  %v8242_v61 = vld [vmem:[#allocation14 + $0x68] sm:$0xff]  }
 0x450   :  { %7668 = vmatprep.mubr.msk.bf16.mxu0 %vm3954_vm2, %v4629_v26  ;;  %7669 = vmatprep.mubr.msk.bf16.mxu1 %vm3954_vm2, %v4629_v26  ;;  %v8235_v26 = vld [vmem:[#allocation14 + $0xb8] sm:$0xff]  }
 0x451   :  { %6172 = vmatprep.subr.bf16.mxu0 %v8170_v16  ;;  %6336 = vmatprep.subr.bf16.mxu1 %v8173_v4  ;;  %v8243_v16 = vld [vmem:[#allocation14 + $0x28] sm:$0xff]   ;;  %v8232_v4 = vld [vmem:[#allocation14 + $0xb0] sm:$0xff]  }
 0x453   :  { %6173 = vmatpush1.bf16.msra.mxu0 %v8168_v37  ;;  %6337 = vmatpush1.bf16.msra.mxu1 %v8171_v5  ;;  %v8238_v37 = vld [vmem:[#allocation14 + $0xc0] sm:$0xff]   ;;  %v8241_v5 = vld [vmem:[#allocation14 + $0xc8] sm:$0xff]  }
 0x454   :  { %6174 = vmatprep.subr.bf16.mxu0 %v8176_v10  ;;  %6338 = vmatprep.subr.bf16.mxu1 %v8179_v59  ;;  %v8244_v10 = vld [vmem:[#allocation14 + $0xd0] sm:$0xff]  }
 0x455   :  { %v8245_v59 = vld [vmem:[#allocation14 + $0x70] sm:$0xff]  }
 0x457   :  { %6175 = vmatpush1.bf16.msra.mxu0 %v8174_v11  ;;  %6339 = vmatpush1.bf16.msra.mxu1 %v8177_v17  ;;  %v8246_v11 = vld [vmem:[#allocation14 + $0x30] sm:$0xff]   ;;  %v8247_v17 = vld [vmem:[#allocation14 + $0xd8] sm:$0xff]  }
 0x458   :  { %6176 = vmatprep.subr.bf16.mxu0 %v8182_v18  ;;  %6340 = vmatprep.subr.bf16.mxu1 %v8185_v0  ;;  %v8248_v18 = vld [vmem:[#allocation14 + $0x78] sm:$0xff]  }
 0x459   :  { %v8249_v0 = vld [vmem:[#allocation14 + $0x38] sm:$0xff]  }
 0x45b   :  { %6177 = vmatpush1.bf16.msra.mxu0 %v8180_v19  ;;  %6341 = vmatpush1.bf16.msra.mxu1 %v8183_v21  ;;  %v8250_v19 = vld [vmem:[#allocation14 + $0xe0] sm:$0xff]   ;;  %v8557_v21 = vmov 0.0  }
 0x45c   :  { %6178 = vmatprep.subr.bf16.mxu0 %v8188_v12  ;;  %6342 = vmatprep.subr.bf16.mxu1 %v8191_v22  ;;  %v4862_v12 = vld [vmem:[#allocation13] sm:$0xf] }
 0x45d   :  { %v4867_v22 = vrot.slane %v4862_v12, %v8795_v7 }
 0x45f   :  { %6179 = vmatpush1.bf16.msra.mxu0 %v8186_v15  ;;  %6343 = vmatpush1.bf16.msra.mxu1 %v8189_v23  ;;  %v4875_v15 = vrot.slane %v4862_v12, %v8832_v14  ;;  %v4871_v23 = vrot.slane %v4862_v12, %v8800_v9 }
 0x460   :  { %6180 = vmatprep.subr.bf16.mxu0 %v8194_v28  ;;  %6344 = vmatprep.subr.bf16.mxu1 %v8197_v29  ;;  %v4879_v28 = vrot.slane %v4862_v12, %v8807_v25  ;;  %v8251_v25 = vld [vmem:[#allocation17] sm:$0xff]  }
 0x463   :  { %6181 = vmatpush1.bf16.msra.mxu0 %v8192_v30  ;;  %6345 = vmatpush1.bf16.msra.mxu1 %v8195_v31 }
 0x464   :  { %6182 = vmatprep.subr.bf16.mxu0 %v8200_v32  ;;  %6346 = vmatprep.subr.bf16.mxu1 %v8203_v33 }
 0x467   :  { %6183 = vmatpush1.bf16.msra.mxu0 %v8198_v58  ;;  %6347 = vmatpush1.bf16.msra.mxu1 %v8201_v34 }
 0x468   :  { %6184 = vmatprep.subr.bf16.mxu0 %v8206_v35  ;;  %6348 = vmatprep.subr.bf16.mxu1 %v8209_v38 }
 0x46b   :  { %6185 = vmatpush1.bf16.msra.mxu0 %v8204_v40  ;;  %6349 = vmatpush1.bf16.msra.mxu1 %v8207_v3 }
 0x46c   :  { %6186 = vmatprep.subr.bf16.mxu0 %v8212_v42  ;;  %6350 = vmatprep.subr.bf16.mxu1 %v8215_v27 }
 0x46f   :  { %6187 = vmatpush1.bf16.msra.mxu0 %v8210_v20  ;;  %6351 = vmatpush1.bf16.msra.mxu1 %v8213_v8 }
 0x470   :  { %6188 = vmatprep.subr.bf16.mxu0 %v8218_v36  ;;  %6352 = vmatprep.subr.bf16.mxu1 %v8221_v55  ;;  %v8253_v36 = vld [vmem:[#allocation17 + $0x10] sm:$0xff]   ;;  %v8254_v55 = vld [vmem:[#allocation17 + $0x18] sm:$0xff]  }
 0x473   :  { %6189 = vmatpush1.bf16.msra.mxu0 %v8216_v52  ;;  %6353 = vmatpush1.bf16.msra.mxu1 %v8219_v56  ;;  %v8255_v52 = vld [vmem:[#allocation17 + $0x20] sm:$0xff]   ;;  %v8256_v56 = vld [vmem:[#allocation17 + $0x28] sm:$0xff]  }
 0x474   :  { %6666 = vmatprep.subr.bf16.mxu1 %v8556_v2  ;;  %7710 = vmatprep.subr.bf16.mxu0 %v8227_v45  ;;  %v8258_v45 = vld [vmem:[#allocation17 + $0x38] sm:$0xff]  }
 0x476   :  { %6203 = vmatmul.mubr.bf16.vlgmr.msra.gmra.mrb[16].mxu0 %v4628_v1  ;;  %6367 = vmatmul.mubr.bf16.vlgmr.msra.gmra.mrb[16].mxu1 %v4628_v1  ;;  %v7670_v1 = vld [vmem:[#allocation16] ss:$0 sm:$0xff] }
 0x477   :  { %6667 = vmatpush1.bf16.msra.mxu1 %v8222_v49  ;;  %7711 = vmatpush3.bf16.msra.mxu0 %v8228_v57 }
 0x478   :  { %6668 = vmatprep.subr.bf16.mxu1 %v8556_v2  ;;  %7712 = vmatprep.subr.bf16.mxu0 %v8230_v63 }
 0x47b   :  { %6669 = vmatpush1.bf16.msra.mxu1 %v8223_v13  ;;  %7713 = vmatpush3.bf16.msra.mxu0 %v8231_v39 }
 0x47c   :  { %6670 = vmatprep.subr.bf16.mxu1 %v8556_v2  ;;  %7714 = vmatprep.subr.bf16.mxu0 %v8233_v46 }
 0x47f   :  { %6671 = vmatpush1.bf16.msra.mxu1 %v8224_v47  ;;  %7715 = vmatpush3.bf16.msra.mxu0 %v8234_v48 }
 0x480   :  { %6672 = vmatprep.subr.bf16.mxu1 %v8556_v2  ;;  %7716 = vmatprep.subr.bf16.mxu0 %v8236_v60 }
 0x483   :  { %6673 = vmatpush1.bf16.msra.mxu1 %v8225_v50  ;;  %7717 = vmatpush3.bf16.msra.mxu0 %v8237_v51 }
 0x484   :  { %6674 = vmatprep.subr.bf16.mxu1 %v8556_v2  ;;  %7718 = vmatprep.subr.bf16.mxu0 %v8239_v53 }
 0x487   :  { %6675 = vmatpush1.bf16.msra.mxu1 %v8226_v24  ;;  %7719 = vmatpush3.bf16.msra.mxu0 %v8240_v54  ;;  %v7701_v24 = vld [vmem:[#allocation19] ss:$0 sm:$0xff] }
 0x488   :  { %6676 = vmatprep.subr.bf16.mxu1 %v8556_v2  ;;  %7720 = vmatprep.subr.bf16.mxu0 %v8242_v61 }
 0x48b   :  { %6677 = vmatpush1.bf16.msra.mxu1 %v8229_v62  ;;  %7721 = vmatpush3.bf16.msra.mxu0 %v8243_v16 }
 0x48c   :  { %6678 = vmatprep.subr.bf16.mxu1 %v8556_v2  ;;  %7722 = vmatprep.subr.bf16.mxu0 %v8245_v59 }
 0x48f   :  { %6679 = vmatpush1.bf16.msra.mxu1 %v8232_v4  ;;  %7723 = vmatpush3.bf16.msra.mxu0 %v8246_v11 }
 0x490   :  { %6680 = vmatprep.subr.bf16.mxu1 %v8556_v2  ;;  %7724 = vmatprep.subr.bf16.mxu0 %v8248_v18 }
 0x493   :  { %6681 = vmatpush1.bf16.msra.mxu1 %v8235_v26  ;;  %7725 = vmatpush3.bf16.msra.mxu0 %v8249_v0 }
 0x494   :  { %6682 = vmatprep.subr.bf16.mxu1 %v8556_v2  ;;  %7741 = vmatprep.subr.bf16.mxu0 %v8557_v21 }
 0x497   :  { %6683 = vmatpush1.bf16.msra.mxu1 %v8238_v37 }
 0x498   :  { %6684 = vmatprep.subr.bf16.mxu1 %v8556_v2 }
 0x49b   :  { %6685 = vmatpush1.bf16.msra.mxu1 %v8241_v5 }
 0x49c   :  { %6686 = vmatprep.subr.bf16.mxu1 %v8556_v2 }
 0x49f   :  { %6687 = vmatpush1.bf16.msra.mxu1 %v8244_v10 }
 0x4a0   :  { %6688 = vmatprep.subr.bf16.mxu1 %v8556_v2 }
 0x4a3   :  { %6689 = vmatpush1.bf16.msra.mxu1 %v8247_v17 }
 0x4a4   :  { %6690 = vmatprep.subr.bf16.mxu1 %v8556_v2 }
 0x4a7   :  { %6691 = vmatpush1.bf16.msra.mxu1 %v8250_v19 }
 0x549   :  { %v6204_v29 = vpop.f32.mrb[16].mxu0  ;;  %v6368_v30 = vpop.f32.mrb[16].mxu1 }
 0x54a   :  { %v7769_v31 = vadd.f32 %v6204_v29, %v4867_v22  ;;  %v7771_v32 = vadd.f32 %v6368_v30, %v4875_v15  ;;  %v6206_v33 = vpop.f32.mrb[17].mxu0  ;;  %v6370_v58 = vpop.f32.mrb[17].mxu1 }
 0x54b   :  { %v7770_v34 = vadd.f32 %v6206_v33, %v4871_v23  ;;  %v7772_v35 = vadd.f32 %v6370_v58, %v4879_v28  ;;  %v6208_v38 = vpop.f32.mrb[18].mxu0  ;;  %v6372_v40 = vpop.f32.mrb[18].mxu1 }
 0x54c   :  { %v6375_v3 = vmax.f32 %v7769_v31, 0.0  ;;  %v6377_v41 = vmax.f32 %v7771_v32, 0.0  ;;  %v6209_v44 = vpop.f32.mrb[19].mxu0  ;;  %v6373_v7 = vpop.f32.mrb[19].mxu1 }
 0x54d   :  { %v6376_v42 = vmax.f32 %v7770_v34, 0.0  ;;  %v6378_v14 = vmax.f32 %v7772_v35, 0.0 }
 0x54e   :  { %v6379_v20 = vpack.c.bf16 %v6375_v3, %v6375_v3  ;;  %v6381_v8 = vpack.c.bf16 %v6377_v41, %v6377_v41 }
 0x54f   :  { %v6380_v9 = vpack.c.bf16 %v6376_v42, %v6376_v42  ;;  %v6382_v27 = vpack.c.bf16 %v6378_v14, %v6378_v14 }
 0x551   :  { %6658 = vmatprep.mubr.bf16.mxu0 %v6380_v9  ;;  %7700 = vmatprep.mubr.msk.bf16.mxu1 %vm6622_vm3, %v6382_v27 }
 0x552   :  { %6659 = vmatmul.mubr.bf16.vlgmr.msra.gmra.mrb[20].mxu0 %v6379_v20  ;;  %6699 = vmatmul.mubr.bf16.vlgmr.msra.gmra.mrb[20].mxu1 %v6381_v8 }
 0x553   :  { %7742 = vmatpush3.bf16.msra.mxu0 %v8251_v25  ;;  %7757 = vmatprep.mubr.msk.bf16.mxu0 %vm8558_vm4, %v8557_v21 }
 0x554   :  { %7743 = vmatprep.subr.bf16.mxu0 %v8557_v21 }
 0x557   :  { %7744 = vmatpush3.bf16.msra.mxu0 %v8252_v43 }
 0x558   :  { %7745 = vmatprep.subr.bf16.mxu0 %v8557_v21 }
 0x55b   :  { %7746 = vmatpush3.bf16.msra.mxu0 %v8253_v36 }
 0x55c   :  { %7747 = vmatprep.subr.bf16.mxu0 %v8557_v21 }
 0x55f   :  { %7748 = vmatpush3.bf16.msra.mxu0 %v8254_v55 }
 0x560   :  { %7749 = vmatprep.subr.bf16.mxu0 %v8557_v21 }
 0x563   :  { %7750 = vmatpush3.bf16.msra.mxu0 %v8255_v52 }
 0x564   :  { %7751 = vmatprep.subr.bf16.mxu0 %v8557_v21 }
 0x567   :  { %7752 = vmatpush3.bf16.msra.mxu0 %v8256_v56 }
 0x568   :  { %7753 = vmatprep.subr.bf16.mxu0 %v8557_v21 }
 0x56b   :  { %7754 = vmatpush3.bf16.msra.mxu0 %v8257_v6 }
 0x56c   :  { %7755 = vmatprep.subr.bf16.mxu0 %v8557_v21 }
 0x56f   :  { %7756 = vmatpush3.bf16.msra.mxu0 %v8258_v45 }
 0x625   :  { %v7726_v49 = vpop.f32.mrb[20].mxu0  ;;  %v6700_v57 = vpop.f32.mrb[20].mxu1 }
 0x626   :  { %v7727_v2 = vpop.f32.mrb[21].mxu0  ;;  %v6702_v63 = vpop.f32.mrb[21].mxu1 }
 0x627   :  { %v7728_v13 = vadd.f32 %v7727_v2, %v7726_v49  ;;  %v7729_v39 = vpop.f32.mrb[22].mxu0  ;;  %v6703_v46 = vpop.f32.mrb[22].mxu1 }
 0x628   :  { %v7730_v47 = vpop.f32.mrb[23].mxu0  ;;  %v6704_v48 = vpop.f32.mrb[23].mxu1 }
 0x629   :  { %v6661_v60 = vadd.f32 %v7728_v13, %v7670_v1 }
 0x62b   :  { %v6701_v50 = vadd.f32 %v6700_v57, %v6661_v60 }
 0x62d   :  { %v6706_v51 = vmax.f32 %v6701_v50, 0.0 }
 0x62f   :  { %v6707_v53 = vpack.c.bf16 %v6706_v51, %v6706_v51 }
 0x631   :  { %7758 = vmatmul.mubr.bf16.vlgmr.msra.gmra.mrb[24].mxu0 %v6707_v53 }
 0x704   :  { %v6813_v54 = vpop.f32.mrb[24].mxu0 }
 0x705   :  { %v6814_v61 = vadd.f32 %v7701_v24, %v6813_v54  ;;  %v7759_v62 = vpop.f32.mrb[25].mxu0 }
 0x706   :  { %v6816_v16 = vpop.f32.mrb[26].mxu0 }
 0x707   :  { %6819 = vst [vmem:[#allocation20] sm:$0xff] %v6814_v61  ;;  %v7760_v4 = vpop.f32.mrb[27].mxu0 }
 0x708   :  { %8514 = shalt.err (!%p8511_p8)
}
 0x709   :  { %s8515_s7 = scalar_lea.hbm %s8976_s11, 128 }
 0x70a   :  { %p8516_p9 = scmp.ne.s32.totalorder %s8976_s11, %s8515_s7  ;;  %p8519_p10 = scmp.lt.u32.totalorder %s8515_s7, %s8976_s11 }
 0x70c   :  { %p8521_p11 = pnand %p8519_p10, %p8516_p9 }
 0x70e   :  { %8524 = shalt.err (!%p8521_p11)
}
 0x70f   :  { %6829 = dma.vmem_to_hbm [thread:$0]  %s6827_s21, 128, %s8976_s11, [#allocation4]  }
 0x710   :  { %8537 = dma.done.wait [#allocation4], 128  }
 0x711   :  { %8538 = vsyncadd [#allocation4], 4294967168 }
 0x712   :  { %6833 = vsyncpa [#allocation3], 1 }
 0x713   :  { %6834 = vsyncpa [#allocation6], 1 }
 0x714   :  { %6835 = vsyncpa [#allocation9], 1 }
 0x715   :  { %6836 = vsyncpa [#allocation12], 1 }
 0x716   :  { %6837 = vsyncpa [#allocation15], 1 }
 0x717   :  { %6838 = vsyncpa [#allocation18], 1 }
 0x718   :  { %6839 = vsyncpa [#allocation4], 1 }

</bundles_post_ra>
